<compile_context>
chip_gen: v7x
topology: tpu7x:2x2x1
jax: 0.10.0
libtpu: 0.0.40
codegen_flags: <defaults>
</compile_context>

<pallas_src>
import jax
import jax.numpy as jnp
from jax.experimental import pallas as pl
from jax.experimental.pallas import tpu as pltpu

# ----------------------------- sizes (small, synthetic) ---------------------
B = 8            # batch
NSEG = 13        # the "13" from x.reshape(B, 13, -1)
dv = 32          # per-segment complex-interleaved width (must be even)
D = NSEG * dv    # input feature dim = 416
E = 128          # per-head encoder output dim (lane-dense)
NUM_HEADS = 5
SEGPAD = 128     # segment-indicator matrix padded to a full lane tile


# ----------------------------- Pallas kernel --------------------------------
def encoder_select_kernel(x_ref, xsw_ref, seg_ref, w_enc_ref, b_enc_ref,
                          w_dec_ref, b_dec_ref, out_ref):
    # x_ref    : VMEM f32[B, D]        input (also the complex_corr reference y_)
    # xsw_ref  : VMEM f32[B, D]        x with (re,im) swapped / sign-flipped
    # seg_ref  : VMEM f32[D, SEGPAD]   0/1 segment-indicator matrix
    # w_enc_ref: VMEM f32[D, 5*E]      all 5 encoder weights, concatenated
    # b_enc_ref: VMEM f32[1, 5*E]
    # w_dec_ref: VMEM f32[5, E, D]     per-head decoder weights
    # b_dec_ref: VMEM f32[5, 1, D]
    # out_ref  : VMEM f32[B, E]
    x = x_ref[...]
    xsw = xsw_ref[...]
    seg = seg_ref[...]

    # All 5 encoders in a single batched MXU call: (B, D) @ (D, 5E) -> (B, 5E).
    out_all = jnp.dot(x, w_enc_ref[...],
                      preferred_element_type=jnp.float32) + b_enc_ref[...]

    inv_nseg = jnp.float32(1.0 / NSEG)
    best_score = None
    best_out = None
    for h in range(NUM_HEADS):                       # static unroll (5 heads)
        out_h = out_all[:, h * E:(h + 1) * E]        # (B, E), 128-aligned lane slice
        y_h = jnp.dot(out_h, w_dec_ref[h],
                      preferred_element_type=jnp.float32) + b_dec_ref[h]   # (B, D)
        # Per-segment real / imaginary parts of the complex correlation.
        re = jnp.dot(y_h * x, seg, preferred_element_type=jnp.float32)     # (B, SEGPAD)
        im = jnp.dot(y_h * xsw, seg, preferred_element_type=jnp.float32)   # (B, SEGPAD)
        c = re * re + im * im                        # zero outside the 13 real segments
        score_h = jnp.sum(c, axis=-1, keepdims=True) * inv_nseg            # (B, 1)
        if h == 0:
            best_score, best_out = score_h, out_h
        else:
            better = score_h > best_score            # strict '>' keeps the first max
            best_score = jnp.where(better, score_h, best_score)
            best_out = jnp.where(better, out_h, best_out)

    out_ref[...] = best_out.astype(out_ref.dtype)


def encoder_forward(x, w_enc, b_enc, w_dec, b_dec):
    """x: [B, D]; w_enc: [5, D, E]; b_enc: [5, E]; w_dec: [5, E, D]; b_dec: [5, D]."""
    Bx, Dx = x.shape
    H, _, Ex = w_enc.shape

    # Concatenate encoder heads along the output dim -> one big matmul in-kernel.
    w_enc_cat = jnp.transpose(w_enc, (1, 0, 2)).reshape(Dx, H * Ex)
    b_enc_cat = b_enc.reshape(1, H * Ex)
    b_dec3 = b_dec[:, None, :]                       # [H, 1, D]

    # Swapped / sign-flipped reference for the imaginary part of complex_corr:
    #   xsw[:, 2n] = x[:, 2n+1],  xsw[:, 2n+1] = -x[:, 2n]
    xp = x.reshape(Bx, Dx // 2, 2)
    xsw = jnp.stack([xp[..., 1], -xp[..., 0]], axis=-1).reshape(Bx, Dx)

    # Segment-indicator matrix (columns >= NSEG are zero padding).
    seg_id = jnp.arange(Dx, dtype=jnp.int32) // dv
    seg = (seg_id[:, None] == jnp.arange(SEGPAD, dtype=jnp.int32)[None, :]
           ).astype(jnp.float32)

    return pl.pallas_call(
        encoder_select_kernel,
        out_shape=jax.ShapeDtypeStruct((Bx, Ex), jnp.float32),
        grid=(1,),
        in_specs=[
            pl.BlockSpec((Bx, Dx), lambda i: (0, 0)),
            pl.BlockSpec((Bx, Dx), lambda i: (0, 0)),
            pl.BlockSpec((Dx, SEGPAD), lambda i: (0, 0)),
            pl.BlockSpec((Dx, H * Ex), lambda i: (0, 0)),
            pl.BlockSpec((1, H * Ex), lambda i: (0, 0)),
            pl.BlockSpec((H, Ex, Dx), lambda i: (0, 0, 0)),
            pl.BlockSpec((H, 1, Dx), lambda i: (0, 0, 0)),
        ],
        out_specs=pl.BlockSpec((Bx, Ex), lambda i: (0, 0)),
        compiler_params=pltpu.CompilerParams(
            dimension_semantics=("arbitrary",)),
    )(x, xsw, seg, w_enc_cat, b_enc_cat, w_dec, b_dec3)


# ----------------------------- pure-JAX reference ----------------------------
def encoder_reference(x, w_enc, b_enc, w_dec, b_dec):
    Bx, Dx = x.shape
    outs = jnp.einsum("bd,hde->hbe", x, w_enc) + b_enc[:, None, :]    # [H, B, E]
    ys = jnp.einsum("hbe,hed->hbd", outs, w_dec) + b_dec[:, None, :]  # [H, B, D]
    yr = ys.reshape(NUM_HEADS, Bx, NSEG, dv)
    xr = x.reshape(Bx, NSEG, dv)
    ai, aj = yr[..., 0::2], yr[..., 1::2]
    bi, bj = xr[..., 0::2], xr[..., 1::2]
    i = jnp.sum(ai * bi + aj * bj, axis=-1)
    j = jnp.sum(ai * bj - aj * bi, axis=-1)
    c = i * i + j * j                                                 # [H, B, NSEG]
    scores = jnp.mean(c, axis=-1)                                     # [H, B]
    idx = jnp.argmax(scores, axis=0)                                  # [B]
    out_stack = jnp.transpose(outs, (1, 0, 2))                        # [B, H, E]
    return jnp.take_along_axis(out_stack, idx[:, None, None], axis=1)[:, 0, :]


# ----------------------------- main ------------------------------------------
if __name__ == "__main__":
    key = jax.random.PRNGKey(0)
    kx, kwe, kbe, kwd, kbd = jax.random.split(key, 5)

    x = jax.random.normal(kx, (B, D), dtype=jnp.float32)

    bound_e = 1.0 / (D ** 0.5)
    w_enc = jax.random.uniform(kwe, (NUM_HEADS, D, E), jnp.float32,
                               minval=-bound_e, maxval=bound_e)
    b_enc = jax.random.uniform(kbe, (NUM_HEADS, E), jnp.float32,
                               minval=-bound_e, maxval=bound_e)
    bound_d = 1.0 / (E ** 0.5)
    w_dec = jax.random.uniform(kwd, (NUM_HEADS, E, D), jnp.float32,
                               minval=-bound_d, maxval=bound_d)
    b_dec = jax.random.uniform(kbd, (NUM_HEADS, D), jnp.float32,
                               minval=-bound_d, maxval=bound_d)

    out = encoder_forward(x, w_enc, b_enc, w_dec, b_dec)
    out = jax.block_until_ready(out)

    ref = encoder_reference(x, w_enc, b_enc, w_dec, b_dec)
    assert out.shape == (B, E)
    assert jnp.allclose(out, ref, atol=1e-4, rtol=1e-4), "mismatch vs reference"

    print("KERNEL_OK")
</pallas_src>

<mosaic_0001>
module attributes {stable_mosaic.version = 11 : i64} {
  func.func @encoder_select_kernel(%arg0: i32, %arg1: memref<8x416xf32, #tpu.memory_space<vmem>>, %arg2: memref<8x416xf32, #tpu.memory_space<vmem>>, %arg3: memref<416x128xf32, #tpu.memory_space<vmem>>, %arg4: memref<416x640xf32, #tpu.memory_space<vmem>>, %arg5: memref<1x640xf32, #tpu.memory_space<vmem>>, %arg6: memref<5x128x416xf32, #tpu.memory_space<vmem>>, %arg7: memref<5x1x416xf32, #tpu.memory_space<vmem>>, %arg8: memref<8x128xf32, #tpu.memory_space<vmem>>) attributes {dimension_semantics = [#tpu.dimension_semantics<arbitrary>], iteration_bounds = array<i64: 1>, scalar_prefetch = 0 : i64, scratch_operands = 0 : i64, tpu.core_type = #tpu.core_type<tc>, window_params = [{pipeline_mode = #tpu.pipeline_mode<synchronous>, transform_indices = @transform_0, window_bounds = array<i64: 8, 416>}, {pipeline_mode = #tpu.pipeline_mode<synchronous>, transform_indices = @transform_1, window_bounds = array<i64: 8, 416>}, {pipeline_mode = #tpu.pipeline_mode<synchronous>, transform_indices = @transform_2, window_bounds = array<i64: 416, 128>}, {pipeline_mode = #tpu.pipeline_mode<synchronous>, transform_indices = @transform_3, window_bounds = array<i64: 416, 640>}, {pipeline_mode = #tpu.pipeline_mode<synchronous>, transform_indices = @transform_4, window_bounds = array<i64: 1, 640>}, {pipeline_mode = #tpu.pipeline_mode<synchronous>, transform_indices = @transform_5, window_bounds = array<i64: 5, 128, 416>}, {pipeline_mode = #tpu.pipeline_mode<synchronous>, transform_indices = @transform_6, window_bounds = array<i64: 5, 1, 416>}, {pipeline_mode = #tpu.pipeline_mode<synchronous>, transform_indices = @transform_7, window_bounds = array<i64: 8, 128>}]} {
    %c0 = arith.constant 0 : index
    %c0_0 = arith.constant 0 : index
    %0 = vector.load %arg1[%c0, %c0_0] : memref<8x416xf32, #tpu.memory_space<vmem>>, vector<8x416xf32>
    %c0_1 = arith.constant 0 : index
    %c0_2 = arith.constant 0 : index
    %1 = vector.load %arg2[%c0_1, %c0_2] : memref<8x416xf32, #tpu.memory_space<vmem>>, vector<8x416xf32>
    %c0_3 = arith.constant 0 : index
    %c0_4 = arith.constant 0 : index
    %2 = vector.load %arg3[%c0_3, %c0_4] : memref<416x128xf32, #tpu.memory_space<vmem>>, vector<416x128xf32>
    %c0_5 = arith.constant 0 : index
    %c0_6 = arith.constant 0 : index
    %3 = vector.load %arg4[%c0_5, %c0_6] : memref<416x640xf32, #tpu.memory_space<vmem>>, vector<416x640xf32>
    %cst = arith.constant dense<0.000000e+00> : vector<8x640xf32>
    %4 = tpu.matmul %0, %3, %cst {dimension_numbers = #tpu.dot_dimension_numbers<[1], [0], [0], [1], [0, 0, 1, 1], [], []>} : vector<8x416xf32>, vector<416x640xf32>, vector<8x640xf32> -> vector<8x640xf32>
    %c0_7 = arith.constant 0 : index
    %c0_8 = arith.constant 0 : index
    %5 = vector.load %arg5[%c0_7, %c0_8] : memref<1x640xf32, #tpu.memory_space<vmem>>, vector<1x640xf32>
    %6 = vector.broadcast %5 : vector<1x640xf32> to vector<8x640xf32>
    %7 = arith.addf %4, %6 : vector<8x640xf32>
    %8 = vector.extract_strided_slice %7 {offsets = [0, 0], sizes = [8, 128], strides = [1, 1]} : vector<8x640xf32> to vector<8x128xf32>
    %c0_9 = arith.constant 0 : index
    %c0_10 = arith.constant 0 : index
    %c0_11 = arith.constant 0 : index
    %9 = vector.load %arg6[%c0_9, %c0_10, %c0_11] : memref<5x128x416xf32, #tpu.memory_space<vmem>>, vector<1x128x416xf32>
    %10 = vector.shape_cast %9 : vector<1x128x416xf32> to vector<128x416xf32>
    %cst_12 = arith.constant dense<0.000000e+00> : vector<8x416xf32>
    %11 = tpu.matmul %8, %10, %cst_12 {dimension_numbers = #tpu.dot_dimension_numbers<[1], [0], [0], [1], [0, 0, 1, 1], [], []>} : vector<8x128xf32>, vector<128x416xf32>, vector<8x416xf32> -> vector<8x416xf32>
    %c0_13 = arith.constant 0 : index
    %c0_14 = arith.constant 0 : index
    %c0_15 = arith.constant 0 : index
    %12 = vector.load %arg7[%c0_13, %c0_14, %c0_15] : memref<5x1x416xf32, #tpu.memory_space<vmem>>, vector<1x1x416xf32>
    %13 = vector.shape_cast %12 : vector<1x1x416xf32> to vector<1x416xf32>
    %14 = vector.broadcast %13 : vector<1x416xf32> to vector<8x416xf32>
    %15 = arith.addf %11, %14 : vector<8x416xf32>
    %16 = arith.mulf %15, %0 : vector<8x416xf32>
    %cst_16 = arith.constant dense<0.000000e+00> : vector<8x128xf32>
    %17 = tpu.matmul %16, %2, %cst_16 {dimension_numbers = #tpu.dot_dimension_numbers<[1], [0], [0], [1], [0, 0, 1, 1], [], []>} : vector<8x416xf32>, vector<416x128xf32>, vector<8x128xf32> -> vector<8x128xf32>
    %18 = arith.mulf %15, %1 : vector<8x416xf32>
    %cst_17 = arith.constant dense<0.000000e+00> : vector<8x128xf32>
    %19 = tpu.matmul %18, %2, %cst_17 {dimension_numbers = #tpu.dot_dimension_numbers<[1], [0], [0], [1], [0, 0, 1, 1], [], []>} : vector<8x416xf32>, vector<416x128xf32>, vector<8x128xf32> -> vector<8x128xf32>
    %20 = arith.mulf %17, %17 : vector<8x128xf32>
    %21 = arith.mulf %19, %19 : vector<8x128xf32>
    %22 = arith.addf %20, %21 : vector<8x128xf32>
    %cst_18 = arith.constant dense<0.000000e+00> : vector<8xf32>
    %23 = vector.multi_reduction <add>, %22, %cst_18 [1] : vector<8x128xf32> to vector<8xf32>
    %24 = vector.shape_cast %23 : vector<8xf32> to vector<8x1xf32>
    %cst_19 = arith.constant 0.0769230798 : f32
    %25 = vector.broadcast %cst_19 : f32 to vector<8x1xf32>
    %26 = arith.mulf %24, %25 : vector<8x1xf32>
    %27 = vector.extract_strided_slice %7 {offsets = [0, 128], sizes = [8, 128], strides = [1, 1]} : vector<8x640xf32> to vector<8x128xf32>
    %c1 = arith.constant 1 : index
    %c0_20 = arith.constant 0 : index
    %c0_21 = arith.constant 0 : index
    %28 = vector.load %arg6[%c1, %c0_20, %c0_21] : memref<5x128x416xf32, #tpu.memory_space<vmem>>, vector<1x128x416xf32>
    %29 = vector.shape_cast %28 : vector<1x128x416xf32> to vector<128x416xf32>
    %cst_22 = arith.constant dense<0.000000e+00> : vector<8x416xf32>
    %30 = tpu.matmul %27, %29, %cst_22 {dimension_numbers = #tpu.dot_dimension_numbers<[1], [0], [0], [1], [0, 0, 1, 1], [], []>} : vector<8x128xf32>, vector<128x416xf32>, vector<8x416xf32> -> vector<8x416xf32>
    %c1_23 = arith.constant 1 : index
    %c0_24 = arith.constant 0 : index
    %c0_25 = arith.constant 0 : index
    %31 = vector.load %arg7[%c1_23, %c0_24, %c0_25] : memref<5x1x416xf32, #tpu.memory_space<vmem>>, vector<1x1x416xf32>
    %32 = vector.shape_cast %31 : vector<1x1x416xf32> to vector<1x416xf32>
    %33 = vector.broadcast %32 : vector<1x416xf32> to vector<8x416xf32>
    %34 = arith.addf %30, %33 : vector<8x416xf32>
    %35 = arith.mulf %34, %0 : vector<8x416xf32>
    %cst_26 = arith.constant dense<0.000000e+00> : vector<8x128xf32>
    %36 = tpu.matmul %35, %2, %cst_26 {dimension_numbers = #tpu.dot_dimension_numbers<[1], [0], [0], [1], [0, 0, 1, 1], [], []>} : vector<8x416xf32>, vector<416x128xf32>, vector<8x128xf32> -> vector<8x128xf32>
    %37 = arith.mulf %34, %1 : vector<8x416xf32>
    %cst_27 = arith.constant dense<0.000000e+00> : vector<8x128xf32>
    %38 = tpu.matmul %37, %2, %cst_27 {dimension_numbers = #tpu.dot_dimension_numbers<[1], [0], [0], [1], [0, 0, 1, 1], [], []>} : vector<8x416xf32>, vector<416x128xf32>, vector<8x128xf32> -> vector<8x128xf32>
    %39 = arith.mulf %36, %36 : vector<8x128xf32>
    %40 = arith.mulf %38, %38 : vector<8x128xf32>
    %41 = arith.addf %39, %40 : vector<8x128xf32>
    %cst_28 = arith.constant dense<0.000000e+00> : vector<8xf32>
    %42 = vector.multi_reduction <add>, %41, %cst_28 [1] : vector<8x128xf32> to vector<8xf32>
    %43 = vector.shape_cast %42 : vector<8xf32> to vector<8x1xf32>
    %cst_29 = arith.constant 0.0769230798 : f32
    %44 = vector.broadcast %cst_29 : f32 to vector<8x1xf32>
    %45 = arith.mulf %43, %44 : vector<8x1xf32>
    %46 = arith.cmpf ogt, %45, %26 : vector<8x1xf32>
    %47 = arith.select %46, %45, %26 : vector<8x1xi1>, vector<8x1xf32>
    %48 = vector.shape_cast %46 : vector<8x1xi1> to vector<8x1xi1>
    %49 = vector.broadcast %48 : vector<8x1xi1> to vector<8x128xi1>
    %50 = arith.select %49, %27, %8 : vector<8x128xi1>, vector<8x128xf32>
    %51 = vector.extract_strided_slice %7 {offsets = [0, 256], sizes = [8, 128], strides = [1, 1]} : vector<8x640xf32> to vector<8x128xf32>
    %c2 = arith.constant 2 : index
    %c0_30 = arith.constant 0 : index
    %c0_31 = arith.constant 0 : index
    %52 = vector.load %arg6[%c2, %c0_30, %c0_31] : memref<5x128x416xf32, #tpu.memory_space<vmem>>, vector<1x128x416xf32>
    %53 = vector.shape_cast %52 : vector<1x128x416xf32> to vector<128x416xf32>
    %cst_32 = arith.constant dense<0.000000e+00> : vector<8x416xf32>
    %54 = tpu.matmul %51, %53, %cst_32 {dimension_numbers = #tpu.dot_dimension_numbers<[1], [0], [0], [1], [0, 0, 1, 1], [], []>} : vector<8x128xf32>, vector<128x416xf32>, vector<8x416xf32> -> vector<8x416xf32>
    %c2_33 = arith.constant 2 : index
    %c0_34 = arith.constant 0 : index
    %c0_35 = arith.constant 0 : index
    %55 = vector.load %arg7[%c2_33, %c0_34, %c0_35] : memref<5x1x416xf32, #tpu.memory_space<vmem>>, vector<1x1x416xf32>
    %56 = vector.shape_cast %55 : vector<1x1x416xf32> to vector<1x416xf32>
    %57 = vector.broadcast %56 : vector<1x416xf32> to vector<8x416xf32>
    %58 = arith.addf %54, %57 : vector<8x416xf32>
    %59 = arith.mulf %58, %0 : vector<8x416xf32>
    %cst_36 = arith.constant dense<0.000000e+00> : vector<8x128xf32>
    %60 = tpu.matmul %59, %2, %cst_36 {dimension_numbers = #tpu.dot_dimension_numbers<[1], [0], [0], [1], [0, 0, 1, 1], [], []>} : vector<8x416xf32>, vector<416x128xf32>, vector<8x128xf32> -> vector<8x128xf32>
    %61 = arith.mulf %58, %1 : vector<8x416xf32>
    %cst_37 = arith.constant dense<0.000000e+00> : vector<8x128xf32>
    %62 = tpu.matmul %61, %2, %cst_37 {dimension_numbers = #tpu.dot_dimension_numbers<[1], [0], [0], [1], [0, 0, 1, 1], [], []>} : vector<8x416xf32>, vector<416x128xf32>, vector<8x128xf32> -> vector<8x128xf32>
    %63 = arith.mulf %60, %60 : vector<8x128xf32>
    %64 = arith.mulf %62, %62 : vector<8x128xf32>
    %65 = arith.addf %63, %64 : vector<8x128xf32>
    %cst_38 = arith.constant dense<0.000000e+00> : vector<8xf32>
    %66 = vector.multi_reduction <add>, %65, %cst_38 [1] : vector<8x128xf32> to vector<8xf32>
    %67 = vector.shape_cast %66 : vector<8xf32> to vector<8x1xf32>
    %cst_39 = arith.constant 0.0769230798 : f32
    %68 = vector.broadcast %cst_39 : f32 to vector<8x1xf32>
    %69 = arith.mulf %67, %68 : vector<8x1xf32>
    %70 = arith.cmpf ogt, %69, %47 : vector<8x1xf32>
    %71 = arith.select %70, %69, %47 : vector<8x1xi1>, vector<8x1xf32>
    %72 = vector.shape_cast %70 : vector<8x1xi1> to vector<8x1xi1>
    %73 = vector.broadcast %72 : vector<8x1xi1> to vector<8x128xi1>
    %74 = arith.select %73, %51, %50 : vector<8x128xi1>, vector<8x128xf32>
    %75 = vector.extract_strided_slice %7 {offsets = [0, 384], sizes = [8, 128], strides = [1, 1]} : vector<8x640xf32> to vector<8x128xf32>
    %c3 = arith.constant 3 : index
    %c0_40 = arith.constant 0 : index
    %c0_41 = arith.constant 0 : index
    %76 = vector.load %arg6[%c3, %c0_40, %c0_41] : memref<5x128x416xf32, #tpu.memory_space<vmem>>, vector<1x128x416xf32>
    %77 = vector.shape_cast %76 : vector<1x128x416xf32> to vector<128x416xf32>
    %cst_42 = arith.constant dense<0.000000e+00> : vector<8x416xf32>
    %78 = tpu.matmul %75, %77, %cst_42 {dimension_numbers = #tpu.dot_dimension_numbers<[1], [0], [0], [1], [0, 0, 1, 1], [], []>} : vector<8x128xf32>, vector<128x416xf32>, vector<8x416xf32> -> vector<8x416xf32>
    %c3_43 = arith.constant 3 : index
    %c0_44 = arith.constant 0 : index
    %c0_45 = arith.constant 0 : index
    %79 = vector.load %arg7[%c3_43, %c0_44, %c0_45] : memref<5x1x416xf32, #tpu.memory_space<vmem>>, vector<1x1x416xf32>
    %80 = vector.shape_cast %79 : vector<1x1x416xf32> to vector<1x416xf32>
    %81 = vector.broadcast %80 : vector<1x416xf32> to vector<8x416xf32>
    %82 = arith.addf %78, %81 : vector<8x416xf32>
    %83 = arith.mulf %82, %0 : vector<8x416xf32>
    %cst_46 = arith.constant dense<0.000000e+00> : vector<8x128xf32>
    %84 = tpu.matmul %83, %2, %cst_46 {dimension_numbers = #tpu.dot_dimension_numbers<[1], [0], [0], [1], [0, 0, 1, 1], [], []>} : vector<8x416xf32>, vector<416x128xf32>, vector<8x128xf32> -> vector<8x128xf32>
    %85 = arith.mulf %82, %1 : vector<8x416xf32>
    %cst_47 = arith.constant dense<0.000000e+00> : vector<8x128xf32>
    %86 = tpu.matmul %85, %2, %cst_47 {dimension_numbers = #tpu.dot_dimension_numbers<[1], [0], [0], [1], [0, 0, 1, 1], [], []>} : vector<8x416xf32>, vector<416x128xf32>, vector<8x128xf32> -> vector<8x128xf32>
    %87 = arith.mulf %84, %84 : vector<8x128xf32>
    %88 = arith.mulf %86, %86 : vector<8x128xf32>
    %89 = arith.addf %87, %88 : vector<8x128xf32>
    %cst_48 = arith.constant dense<0.000000e+00> : vector<8xf32>
    %90 = vector.multi_reduction <add>, %89, %cst_48 [1] : vector<8x128xf32> to vector<8xf32>
    %91 = vector.shape_cast %90 : vector<8xf32> to vector<8x1xf32>
    %cst_49 = arith.constant 0.0769230798 : f32
    %92 = vector.broadcast %cst_49 : f32 to vector<8x1xf32>
    %93 = arith.mulf %91, %92 : vector<8x1xf32>
    %94 = arith.cmpf ogt, %93, %71 : vector<8x1xf32>
    %95 = arith.select %94, %93, %71 : vector<8x1xi1>, vector<8x1xf32>
    %96 = vector.shape_cast %94 : vector<8x1xi1> to vector<8x1xi1>
    %97 = vector.broadcast %96 : vector<8x1xi1> to vector<8x128xi1>
    %98 = arith.select %97, %75, %74 : vector<8x128xi1>, vector<8x128xf32>
    %99 = vector.extract_strided_slice %7 {offsets = [0, 512], sizes = [8, 128], strides = [1, 1]} : vector<8x640xf32> to vector<8x128xf32>
    %c4 = arith.constant 4 : index
    %c0_50 = arith.constant 0 : index
    %c0_51 = arith.constant 0 : index
    %100 = vector.load %arg6[%c4, %c0_50, %c0_51] : memref<5x128x416xf32, #tpu.memory_space<vmem>>, vector<1x128x416xf32>
    %101 = vector.shape_cast %100 : vector<1x128x416xf32> to vector<128x416xf32>
    %cst_52 = arith.constant dense<0.000000e+00> : vector<8x416xf32>
    %102 = tpu.matmul %99, %101, %cst_52 {dimension_numbers = #tpu.dot_dimension_numbers<[1], [0], [0], [1], [0, 0, 1, 1], [], []>} : vector<8x128xf32>, vector<128x416xf32>, vector<8x416xf32> -> vector<8x416xf32>
    %c4_53 = arith.constant 4 : index
    %c0_54 = arith.constant 0 : index
    %c0_55 = arith.constant 0 : index
    %103 = vector.load %arg7[%c4_53, %c0_54, %c0_55] : memref<5x1x416xf32, #tpu.memory_space<vmem>>, vector<1x1x416xf32>
    %104 = vector.shape_cast %103 : vector<1x1x416xf32> to vector<1x416xf32>
    %105 = vector.broadcast %104 : vector<1x416xf32> to vector<8x416xf32>
    %106 = arith.addf %102, %105 : vector<8x416xf32>
    %107 = arith.mulf %106, %0 : vector<8x416xf32>
    %cst_56 = arith.constant dense<0.000000e+00> : vector<8x128xf32>
    %108 = tpu.matmul %107, %2, %cst_56 {dimension_numbers = #tpu.dot_dimension_numbers<[1], [0], [0], [1], [0, 0, 1, 1], [], []>} : vector<8x416xf32>, vector<416x128xf32>, vector<8x128xf32> -> vector<8x128xf32>
    %109 = arith.mulf %106, %1 : vector<8x416xf32>
    %cst_57 = arith.constant dense<0.000000e+00> : vector<8x128xf32>
    %110 = tpu.matmul %109, %2, %cst_57 {dimension_numbers = #tpu.dot_dimension_numbers<[1], [0], [0], [1], [0, 0, 1, 1], [], []>} : vector<8x416xf32>, vector<416x128xf32>, vector<8x128xf32> -> vector<8x128xf32>
    %111 = arith.mulf %108, %108 : vector<8x128xf32>
    %112 = arith.mulf %110, %110 : vector<8x128xf32>
    %113 = arith.addf %111, %112 : vector<8x128xf32>
    %cst_58 = arith.constant dense<0.000000e+00> : vector<8xf32>
    %114 = vector.multi_reduction <add>, %113, %cst_58 [1] : vector<8x128xf32> to vector<8xf32>
    %115 = vector.shape_cast %114 : vector<8xf32> to vector<8x1xf32>
    %cst_59 = arith.constant 0.0769230798 : f32
    %116 = vector.broadcast %cst_59 : f32 to vector<8x1xf32>
    %117 = arith.mulf %115, %116 : vector<8x1xf32>
    %118 = arith.cmpf ogt, %117, %95 : vector<8x1xf32>
    %119 = vector.shape_cast %118 : vector<8x1xi1> to vector<8x1xi1>
    %120 = vector.broadcast %119 : vector<8x1xi1> to vector<8x128xi1>
    %121 = arith.select %120, %99, %98 : vector<8x128xi1>, vector<8x128xf32>
    %c0_60 = arith.constant 0 : index
    %c0_61 = arith.constant 0 : index
    %122 = vector.load %arg8[%c0_60, %c0_61] : memref<8x128xf32, #tpu.memory_space<vmem>>, vector<8x128xf32>
    tpu.vector_store %arg8[%c0_60, %c0_61], %121 {strides = array<i32>} : memref<8x128xf32, #tpu.memory_space<vmem>>, vector<8x128xf32>,
    return
  }
  func.func @transform_0(%arg0: i32) -> (i32, i32) {
    %c0_i32 = arith.constant 0 : i32
    %c0_i32_0 = arith.constant 0 : i32
    %c0_i32_1 = arith.constant 0 : i32
    return %c0_i32, %c0_i32_0 : i32, i32
  }
  func.func @transform_1(%arg0: i32) -> (i32, i32) {
    %c0_i32 = arith.constant 0 : i32
    %c0_i32_0 = arith.constant 0 : i32
    %c0_i32_1 = arith.constant 0 : i32
    return %c0_i32, %c0_i32_0 : i32, i32
  }
  func.func @transform_2(%arg0: i32) -> (i32, i32) {
    %c0_i32 = arith.constant 0 : i32
    %c0_i32_0 = arith.constant 0 : i32
    %c0_i32_1 = arith.constant 0 : i32
    return %c0_i32, %c0_i32_0 : i32, i32
  }
  func.func @transform_3(%arg0: i32) -> (i32, i32) {
    %c0_i32 = arith.constant 0 : i32
    %c0_i32_0 = arith.constant 0 : i32
    %c0_i32_1 = arith.constant 0 : i32
    return %c0_i32, %c0_i32_0 : i32, i32
  }
  func.func @transform_4(%arg0: i32) -> (i32, i32) {
    %c0_i32 = arith.constant 0 : i32
    %c0_i32_0 = arith.constant 0 : i32
    %c0_i32_1 = arith.constant 0 : i32
    return %c0_i32, %c0_i32_0 : i32, i32
  }
  func.func @transform_5(%arg0: i32) -> (i32, i32, i32) {
    %c0_i32 = arith.constant 0 : i32
    %c0_i32_0 = arith.constant 0 : i32
    %c0_i32_1 = arith.constant 0 : i32
    %c0_i32_2 = arith.constant 0 : i32
    return %c0_i32, %c0_i32_0, %c0_i32_1 : i32, i32, i32
  }
  func.func @transform_6(%arg0: i32) -> (i32, i32, i32) {
    %c0_i32 = arith.constant 0 : i32
    %c0_i32_0 = arith.constant 0 : i32
    %c0_i32_1 = arith.constant 0 : i32
    %c0_i32_2 = arith.constant 0 : i32
    return %c0_i32, %c0_i32_0, %c0_i32_1 : i32, i32, i32
  }
  func.func @transform_7(%arg0: i32) -> (i32, i32) {
    %c0_i32 = arith.constant 0 : i32
    %c0_i32_0 = arith.constant 0 : i32
    %c0_i32_1 = arith.constant 0 : i32
    return %c0_i32, %c0_i32_0 : i32, i32
  }
}

</mosaic_0001>

<bundles_post_ra>
// kernel: tpu_custom_call.1
= control target key start
LH: loop header
LB: loop body
LE: loop exit
PB: predicated region body
PF: predicated region fallthrough
CT: control target
= control target key end

     0   :  { %vm374_vm0 = vcmask 261120   ;;  %s8072_s0 = inlined_call_operand.vmem [shape: f32[8,416], index: 0, kind: input, shape index: {}]   ;;  %s8073_s1 = inlined_call_operand.vmem [shape: f32[8,416], index: 1, kind: input, shape index: {}]   ;;  %s8074_s2 = inlined_call_operand.vmem [shape: f32[416,128], index: 2, kind: input, shape index: {}]   ;;  %s8075_s3 = inlined_call_operand.vmem [shape: f32[416,640], index: 3, kind: input, shape index: {}]   ;;  %s8076_s4 = inlined_call_operand.vmem [shape: f32[1,640], index: 4, kind: input, shape index: {}]   ;;  %s8077_s5 = inlined_call_operand.vmem [shape: f32[5,128,416], index: 5, kind: input, shape index: {}]   ;;  %s8078_s6 = inlined_call_operand.vmem [shape: f32[5,1,416], index: 6, kind: input, shape index: {}]   ;;  %s8079_s7 = inlined_call_operand.hbm [shape: f32[8,128], index: 7, kind: output, shape index: {}]  }
   0x1   :  { %v88_v0 = vld [vmem:[%s8075_s3 + $0x8] sm:$0xff]  ;;  %v93_v1 = vld [vmem:[%s8075_s3 + $0x30] sm:$0xff]  ;;  %v87_v2 = vld [vmem:[%s8075_s3] sm:$0xff] }
   0x2   :  { %v4142_v3 = vpack.c.bf16 %v93_v1, %v88_v0  ;;  %v92_v4 = vld [vmem:[%s8075_s3 + $0x28] sm:$0xff]  ;;  %v98_v5 = vld [vmem:[%s8075_s3 + $0x58] sm:$0xff]  ;;  %v103_v6 = vld [vmem:[%s8075_s3 + $0x80] sm:$0xff] }
   0x3   :  { %v4144_v7 = vpack.c.bf16 %v92_v4, %v87_v2  ;;  %v4146_v8 = vpack.c.bf16 %v103_v6, %v98_v5  ;;  %v97_v9 = vld [vmem:[%s8075_s3 + $0x50] sm:$0xff]  ;;  %v102_v10 = vld [vmem:[%s8075_s3 + $0x78] sm:$0xff]  ;;  %v108_v11 = vld [vmem:[%s8075_s3 + $0xa8] sm:$0xff] }
   0x4   :  { %4143 = vmatprep.subr.bf16.mxu0 %v4142_v3  ;;  %v113_v12 = vld [vmem:[%s8075_s3 + $0xd0] sm:$0xff]  ;;  %v4148_v13 = vpack.c.bf16 %v102_v10, %v97_v9  ;;  %v107_v15 = vld [vmem:[%s8075_s3 + $0xa0] sm:$0xff]  ;;  %v112_v16 = vld [vmem:[%s8075_s3 + $0xc8] sm:$0xff] }
   0x5   :  { %4145 = vmatpush1.bf16.msra.mxu0 %v4144_v7  ;;  %v4150_v14 = vpack.c.bf16 %v113_v12, %v108_v11  ;;  %v118_v17 = vld [vmem:[%s8075_s3 + $0xf8] sm:$0xff]  ;;  %v123_v18 = vld [vmem:[%s8075_s3 + $0x120] sm:$0xff]  ;;  %v4152_v19 = vpack.c.bf16 %v112_v16, %v107_v15  ;;  %v117_v21 = vld [vmem:[%s8075_s3 + $0xf0] sm:$0xff] }
   0x6   :  { %4147 = vmatprep.subr.bf16.mxu0 %v4146_v8  ;;  %v4154_v20 = vpack.c.bf16 %v123_v18, %v118_v17  ;;  %v122_v22 = vld [vmem:[%s8075_s3 + $0x118] sm:$0xff]  ;;  %v128_v23 = vld [vmem:[%s8075_s3 + $0x148] sm:$0xff]  ;;  %v133_v24 = vld [vmem:[%s8075_s3 + $0x170] sm:$0xff] }
   0x7   :  { %v4156_v25 = vpack.c.bf16 %v122_v22, %v117_v21  ;;  %v4158_v26 = vpack.c.bf16 %v133_v24, %v128_v23  ;;  %v127_v27 = vld [vmem:[%s8075_s3 + $0x140] sm:$0xff]  ;;  %v132_v28 = vld [vmem:[%s8075_s3 + $0x168] sm:$0xff]  ;;  %v138_v29 = vld [vmem:[%s8075_s3 + $0x198] sm:$0xff] }
   0x8   :  { %v143_v30 = vld [vmem:[%s8075_s3 + $0x1c0] sm:$0xff]  ;;  %v4160_v31 = vpack.c.bf16 %v132_v28, %v127_v27  ;;  %v137_v33 = vld [vmem:[%s8075_s3 + $0x190] sm:$0xff]  ;;  %v142_v34 = vld [vmem:[%s8075_s3 + $0x1b8] sm:$0xff] }
   0x9   :  { %4149 = vmatpush1.bf16.msra.mxu0 %v4148_v13  ;;  %v4162_v32 = vpack.c.bf16 %v143_v30, %v138_v29  ;;  %v148_v35 = vld [vmem:[%s8075_s3 + $0x1e8] sm:$0xff]  ;;  %v153_v36 = vld [vmem:[%s8075_s3 + $0x210] sm:$0xff]  ;;  %v4164_v37 = vpack.c.bf16 %v142_v34, %v137_v33  ;;  %v147_v39 = vld [vmem:[%s8075_s3 + $0x1e0] sm:$0xff] }
   0xa   :  { %4151 = vmatprep.subr.bf16.mxu0 %v4150_v14  ;;  %v4166_v38 = vpack.c.bf16 %v153_v36, %v148_v35  ;;  %v152_v40 = vld [vmem:[%s8075_s3 + $0x208] sm:$0xff]  ;;  %v158_v42 = vld [vmem:[%s8075_s3 + $0x238] sm:$0xff]  ;;  %v163_v43 = vld [vmem:[%s8075_s3 + $0x260] sm:$0xff] }
   0xb   :  { %v5530_v41 = vld [vmem:[%s8072_s0 + $0x8] sm:$0xff]  ;;  %v4168_v44 = vpack.c.bf16 %v152_v40, %v147_v39  ;;  %v157_v45 = vld [vmem:[%s8075_s3 + $0x230] sm:$0xff]  ;;  %v162_v46 = vld [vmem:[%s8075_s3 + $0x258] sm:$0xff]  ;;  %v4170_v48 = vpack.c.bf16 %v163_v43, %v158_v42 }
   0xc   :  { %442 = vmatprep.mubr.f32.mxu0 %v5530_v41  ;;  %584 = vmatprep.mubr.f32.mxu1 %v5530_v41  ;;  %v90_v47 = vld [vmem:[%s8075_s3 + $0x18] sm:$0xff]  ;;  %v95_v49 = vld [vmem:[%s8075_s3 + $0x40] sm:$0xff]  ;;  %v89_v50 = vld [vmem:[%s8075_s3 + $0x10] sm:$0xff]  ;;  %v4172_v58 = vpack.c.bf16 %v162_v46, %v157_v45 }
   0xd   :  { %4153 = vmatpush1.bf16.msra.mxu0 %v4152_v19  ;;  %v94_v51 = vld [vmem:[%s8075_s3 + $0x38] sm:$0xff]  ;;  %v168_v52 = vld [vmem:[%s8075_s3 + $0x288] sm:$0xff]  ;;  %v173_v53 = vld [vmem:[%s8075_s3 + $0x2b0] sm:$0xff]  ;;  %v4246_v54 = vpack.c.bf16 %v95_v49, %v90_v47 }
   0xe   :  { %4155 = vmatprep.subr.bf16.mxu0 %v4154_v20  ;;  %v4248_v55 = vpack.c.bf16 %v94_v51, %v89_v50  ;;  %v100_v56 = vld [vmem:[%s8075_s3 + $0x68] sm:$0xff]  ;;  %v105_v57 = vld [vmem:[%s8075_s3 + $0x90] sm:$0xff]  ;;  %v167_v59 = vld [vmem:[%s8075_s3 + $0x280] sm:$0xff]  ;;  %v4174_v63 = vpack.c.bf16 %v173_v53, %v168_v52 }
   0xf   :  { %4247 = vmatprep.subr.bf16.mxu1 %v4246_v54  ;;  %v4250_v60 = vpack.c.bf16 %v105_v57, %v100_v56  ;;  %v99_v61 = vld [vmem:[%s8075_s3 + $0x60] sm:$0xff]  ;;  %v104_v62 = vld [vmem:[%s8075_s3 + $0x88] sm:$0xff]  ;;  %v178_v1 = vld [vmem:[%s8075_s3 + $0x2d8] sm:$0xff] }
  0x10   :  { %v172_v0 = vld [vmem:[%s8075_s3 + $0x2a8] sm:$0xff]  ;;  %v183_v2 = vld [vmem:[%s8075_s3 + $0x300] sm:$0xff]  ;;  %4249 = vmatpush1.bf16.msra.mxu1 %v4248_v55  ;;  %v4252_v3 = vpack.c.bf16 %v104_v62, %v99_v61  ;;  %v110_v4 = vld [vmem:[%s8075_s3 + $0xb8] sm:$0xff] }
  0x11   :  { %4157 = vmatpush1.bf16.msra.mxu0 %v4156_v25  ;;  %4251 = vmatprep.subr.bf16.mxu1 %v4250_v60  ;;  %v115_v5 = vld [vmem:[%s8075_s3 + $0xe0] sm:$0xff]  ;;  %v109_v6 = vld [vmem:[%s8075_s3 + $0xb0] sm:$0xff]  ;;  %v114_v8 = vld [vmem:[%s8075_s3 + $0xd8] sm:$0xff]  ;;  %v4176_v9 = vpack.c.bf16 %v172_v0, %v167_v59  ;;  %v4178_v12 = vpack.c.bf16 %v183_v2, %v178_v1 }
  0x12   :  { %4159 = vmatprep.subr.bf16.mxu0 %v4158_v26  ;;  %v4254_v7 = vpack.c.bf16 %v115_v5, %v110_v4  ;;  %v177_v10 = vld [vmem:[%s8075_s3 + $0x2d0] sm:$0xff]  ;;  %v120_v11 = vld [vmem:[%s8075_s3 + $0x108] sm:$0xff]  ;;  %v182_v13 = vld [vmem:[%s8075_s3 + $0x2f8] sm:$0xff]  ;;  %v4256_v15 = vpack.c.bf16 %v114_v8, %v109_v6 }
  0x13   :  { %v188_v14 = vld [vmem:[%s8075_s3 + $0x328] sm:$0xff]  ;;  %v125_v16 = vld [vmem:[%s8075_s3 + $0x130] sm:$0xff]  ;;  %v119_v19 = vld [vmem:[%s8075_s3 + $0x100] sm:$0xff]  ;;  %v4180_v23 = vpack.c.bf16 %v182_v13, %v177_v10 }
  0x14   :  { %4253 = vmatpush1.bf16.msra.mxu1 %v4252_v3  ;;  %v193_v17 = vld [vmem:[%s8075_s3 + $0x350] sm:$0xff]  ;;  %v4258_v18 = vpack.c.bf16 %v125_v16, %v120_v11  ;;  %v124_v20 = vld [vmem:[%s8075_s3 + $0x128] sm:$0xff]  ;;  %v130_v21 = vld [vmem:[%s8075_s3 + $0x158] sm:$0xff] }
  0x15   :  { %4161 = vmatpush1.bf16.msra.mxu0 %v4160_v31  ;;  %4255 = vmatprep.subr.bf16.mxu1 %v4254_v7  ;;  %v135_v22 = vld [vmem:[%s8075_s3 + $0x180] sm:$0xff]  ;;  %v4182_v24 = vpack.c.bf16 %v193_v17, %v188_v14  ;;  %v192_v26 = vld [vmem:[%s8075_s3 + $0x348] sm:$0xff]  ;;  %v198_v27 = vld [vmem:[%s8075_s3 + $0x378] sm:$0xff]  ;;  %v4260_v28 = vpack.c.bf16 %v124_v20, %v119_v19 }
  0x16   :  { %4163 = vmatprep.subr.bf16.mxu0 %v4162_v32  ;;  %v187_v25 = vld [vmem:[%s8075_s3 + $0x320] sm:$0xff]  ;;  %v4262_v30 = vpack.c.bf16 %v135_v22, %v130_v21  ;;  %v129_v31 = vld [vmem:[%s8075_s3 + $0x150] sm:$0xff]  ;;  %v134_v32 = vld [vmem:[%s8075_s3 + $0x178] sm:$0xff] }
  0x17   :  { %v203_v29 = vld [vmem:[%s8075_s3 + $0x3a0] sm:$0xff]  ;;  %v140_v33 = vld [vmem:[%s8075_s3 + $0x1a8] sm:$0xff]  ;;  %v145_v34 = vld [vmem:[%s8075_s3 + $0x1d0] sm:$0xff]  ;;  %v4184_v35 = vpack.c.bf16 %v192_v26, %v187_v25  ;;  %v4264_v40 = vpack.c.bf16 %v134_v32, %v129_v31 }
  0x18   :  { %4257 = vmatpush1.bf16.msra.mxu1 %v4256_v15  ;;  %v4186_v36 = vpack.c.bf16 %v203_v29, %v198_v27  ;;  %v208_v39 = vld [vmem:[%s8075_s3 + $0x3c8] sm:$0xff]  ;;  %v213_v42 = vld [vmem:[%s8075_s3 + $0x3f0] sm:$0xff]  ;;  %v4266_v43 = vpack.c.bf16 %v145_v34, %v140_v33  ;;  %v150_v46 = vld [vmem:[%s8075_s3 + $0x1f8] sm:$0xff] }
  0x19   :  { %4165 = vmatpush1.bf16.msra.mxu0 %v4164_v37  ;;  %4259 = vmatprep.subr.bf16.mxu1 %v4258_v18  ;;  %v197_v37 = vld [vmem:[%s8075_s3 + $0x370] sm:$0xff]  ;;  %v144_v45 = vld [vmem:[%s8075_s3 + $0x1c8] sm:$0xff]  ;;  %v155_v47 = vld [vmem:[%s8075_s3 + $0x220] sm:$0xff]  ;;  %v4190_v49 = vpack.c.bf16 %v213_v42, %v208_v39 }
  0x1a   :  { %4167 = vmatprep.subr.bf16.mxu0 %v4166_v38  ;;  %v202_v38 = vld [vmem:[%s8075_s3 + $0x398] sm:$0xff]  ;;  %v207_v50 = vld [vmem:[%s8075_s3 + $0x3c0] sm:$0xff]  ;;  %v212_v51 = vld [vmem:[%s8075_s3 + $0x3e8] sm:$0xff]  ;;  %v4270_v55 = vpack.c.bf16 %v155_v47, %v150_v46 }
  0x1b   :  { %v218_v52 = vld [vmem:[%s8075_s3 + $0x418] sm:$0xff]  ;;  %v223_v54 = vld [vmem:[%s8075_s3 + $0x440] sm:$0xff]  ;;  %v149_v56 = vld [vmem:[%s8075_s3 + $0x1f0] sm:$0xff]  ;;  %v4192_v60 = vpack.c.bf16 %v212_v51, %v207_v50 }
  0x1c   :  { %4261 = vmatpush1.bf16.msra.mxu1 %v4260_v28  ;;  %v154_v57 = vld [vmem:[%s8075_s3 + $0x218] sm:$0xff]  ;;  %v165_v59 = vld [vmem:[%s8075_s3 + $0x270] sm:$0xff]  ;;  %v4194_v61 = vpack.c.bf16 %v223_v54, %v218_v52  ;;  %v228_v0 = vld [vmem:[%s8075_s3 + $0x468] sm:$0xff] }
  0x1d   :  { %4169 = vmatpush1.bf16.msra.mxu0 %v4168_v44  ;;  %4263 = vmatprep.subr.bf16.mxu1 %v4262_v30  ;;  %v139_v44 = vld [vmem:[%s8075_s3 + $0x1a0] sm:$0xff]  ;;  %v217_v62 = vld [vmem:[%s8075_s3 + $0x410] sm:$0xff]  ;;  %v4272_v1 = vpack.c.bf16 %v154_v57, %v149_v56  ;;  %v164_v5 = vld [vmem:[%s8075_s3 + $0x268] sm:$0xff] }
  0x1e   :  { %4171 = vmatprep.subr.bf16.mxu0 %v4170_v48  ;;  %v4188_v48 = vpack.c.bf16 %v202_v38, %v197_v37  ;;  %v4268_v53 = vpack.c.bf16 %v144_v45, %v139_v44  ;;  %v233_v2 = vld [vmem:[%s8075_s3 + $0x490] sm:$0xff]  ;;  %v159_v4 = vld [vmem:[%s8075_s3 + $0x240] sm:$0xff]  ;;  %v170_v6 = vld [vmem:[%s8075_s3 + $0x298] sm:$0xff] }
  0x1f   :  { %v175_v7 = vld [vmem:[%s8075_s3 + $0x2c0] sm:$0xff]  ;;  %v232_v11 = vld [vmem:[%s8075_s3 + $0x488] sm:$0xff]  ;;  %v4276_v13 = vpack.c.bf16 %v164_v5, %v159_v4  ;;  %v169_v16 = vld [vmem:[%s8075_s3 + $0x290] sm:$0xff] }
  0x20   :  { %4265 = vmatpush1.bf16.msra.mxu1 %v4264_v40  ;;  %v227_v10 = vld [vmem:[%s8075_s3 + $0x460] sm:$0xff]  ;;  %v4278_v15 = vpack.c.bf16 %v175_v7, %v170_v6  ;;  %v174_v17 = vld [vmem:[%s8075_s3 + $0x2b8] sm:$0xff]  ;;  %v180_v18 = vld [vmem:[%s8075_s3 + $0x2e8] sm:$0xff] }
  0x21   :  { %4173 = vmatpush1.bf16.msra.mxu0 %v4172_v58  ;;  %4267 = vmatprep.subr.bf16.mxu1 %v4266_v43  ;;  %v160_v58 = vld [vmem:[%s8075_s3 + $0x248] sm:$0xff]  ;;  %v243_v14 = vld [vmem:[%s8075_s3 + $0x4e0] sm:$0xff]  ;;  %v185_v19 = vld [vmem:[%s8075_s3 + $0x310] sm:$0xff]  ;;  %v4200_v20 = vpack.c.bf16 %v232_v11, %v227_v10  ;;  %v4280_v25 = vpack.c.bf16 %v174_v17, %v169_v16 }
  0x22   :  { %4175 = vmatprep.subr.bf16.mxu0 %v4174_v63  ;;  %v222_v63 = vld [vmem:[%s8075_s3 + $0x438] sm:$0xff]  ;;  %v4274_v3 = vpack.c.bf16 %v165_v59, %v160_v58  ;;  %v237_v22 = vld [vmem:[%s8075_s3 + $0x4b0] sm:$0xff]  ;;  %v4282_v27 = vpack.c.bf16 %v185_v19, %v180_v18  ;;  %v179_v28 = vld [vmem:[%s8075_s3 + $0x2e0] sm:$0xff] }
  0x23   :  { %v4196_v8 = vpack.c.bf16 %v222_v63, %v217_v62  ;;  %v253_v26 = vld [vmem:[%s8075_s3 + $0x530] sm:$0xff]  ;;  %v184_v29 = vld [vmem:[%s8075_s3 + $0x308] sm:$0xff]  ;;  %v190_v30 = vld [vmem:[%s8075_s3 + $0x338] sm:$0xff] }
  0x24   :  { %4269 = vmatpush1.bf16.msra.mxu1 %v4268_v53  ;;  %v195_v31 = vld [vmem:[%s8075_s3 + $0x360] sm:$0xff]  ;;  %v4284_v37 = vpack.c.bf16 %v184_v29, %v179_v28  ;;  %v189_v40 = vld [vmem:[%s8075_s3 + $0x330] sm:$0xff]  ;;  %v194_v42 = vld [vmem:[%s8075_s3 + $0x358] sm:$0xff] }
  0x25   :  { %4177 = vmatpush1.bf16.msra.mxu0 %v4176_v9  ;;  %4271 = vmatprep.subr.bf16.mxu1 %v4270_v55  ;;  %v4198_v9 = vpack.c.bf16 %v233_v2, %v228_v0  ;;  %v247_v34 = vld [vmem:[%s8075_s3 + $0x500] sm:$0xff]  ;;  %v4286_v39 = vpack.c.bf16 %v195_v31, %v190_v30  ;;  %v200_v43 = vld [vmem:[%s8075_s3 + $0x388] sm:$0xff]  ;;  %v205_v44 = vld [vmem:[%s8075_s3 + $0x3b0] sm:$0xff]  ;;  %v4288_v52 = vpack.c.bf16 %v194_v42, %v189_v40 }
  0x26   :  { %4179 = vmatprep.subr.bf16.mxu0 %v4178_v12  ;;  %v238_v12 = vld [vmem:[%s8075_s3 + $0x4b8] sm:$0xff]  ;;  %v263_v38 = vld [vmem:[%s8075_s3 + $0x580] sm:$0xff]  ;;  %v257_v47 = vld [vmem:[%s8075_s3 + $0x550] sm:$0xff]  ;;  %v4290_v54 = vpack.c.bf16 %v205_v44, %v200_v43 }
  0x27   :  { %v4202_v21 = vpack.c.bf16 %v243_v14, %v238_v12  ;;  %v5801_v45 = vld [vmem:[%s8072_s0] sm:$0xff]  ;;  %v268_v50 = vld [vmem:[%s8075_s3 + $0x5a8] sm:$0xff]  ;;  %v5815_v51 = vld [vmem:[%s8072_s0 + $0x18] sm:$0xff] }
  0x28   :  { %4273 = vmatpush1.bf16.msra.mxu1 %v4272_v1  ;;  %v273_v53 = vld [vmem:[%s8075_s3 + $0x5d0] sm:$0xff]  ;;  %v199_v55 = vld [vmem:[%s8075_s3 + $0x380] sm:$0xff]  ;;  %v204_v56 = vld [vmem:[%s8075_s3 + $0x3a8] sm:$0xff] }
  0x29   :  { %4181 = vmatpush1.bf16.msra.mxu0 %v4180_v23  ;;  %4275 = vmatprep.subr.bf16.mxu1 %v4274_v3  ;;  %v242_v23 = vld [vmem:[%s8075_s3 + $0x4d8] sm:$0xff]  ;;  %v215_v58 = vld [vmem:[%s8075_s3 + $0x400] sm:$0xff]  ;;  %v272_v62 = vld [vmem:[%s8075_s3 + $0x5c8] sm:$0xff]  ;;  %v4292_v0 = vpack.c.bf16 %v204_v56, %v199_v55 }
  0x2a   :  { %4183 = vmatprep.subr.bf16.mxu0 %v4182_v24  ;;  %v248_v24 = vld [vmem:[%s8075_s3 + $0x508] sm:$0xff]  ;;  %v4204_v32 = vpack.c.bf16 %v242_v23, %v237_v22  ;;  %v210_v57 = vld [vmem:[%s8075_s3 + $0x3d8] sm:$0xff]  ;;  %v283_v1 = vld [vmem:[%s8075_s3 + $0x620] sm:$0xff] }
  0x2b   :  { %v4206_v33 = vpack.c.bf16 %v253_v26, %v248_v24  ;;  %v278_v63 = vld [vmem:[%s8075_s3 + $0x5f8] sm:$0xff]  ;;  %v4294_v2 = vpack.c.bf16 %v215_v58, %v210_v57  ;;  %v209_v3 = vld [vmem:[%s8075_s3 + $0x3d0] sm:$0xff]  ;;  %v220_v5 = vld [vmem:[%s8075_s3 + $0x428] sm:$0xff] }
  0x2c   :  { %4277 = vmatpush1.bf16.msra.mxu1 %v4276_v13  ;;  %v214_v4 = vld [vmem:[%s8075_s3 + $0x3f8] sm:$0xff]  ;;  %v225_v6 = vld [vmem:[%s8075_s3 + $0x450] sm:$0xff]  ;;  %v288_v11 = vld [vmem:[%s8075_s3 + $0x648] sm:$0xff] }
  0x2d   :  { %4185 = vmatpush1.bf16.msra.mxu0 %v4184_v35  ;;  %4279 = vmatprep.subr.bf16.mxu1 %v4278_v15  ;;  %v252_v35 = vld [vmem:[%s8075_s3 + $0x528] sm:$0xff]  ;;  %v282_v10 = vld [vmem:[%s8075_s3 + $0x618] sm:$0xff]  ;;  %v4296_v12 = vpack.c.bf16 %v214_v4, %v209_v3  ;;  %v293_v13 = vld [vmem:[%s8075_s3 + $0x670] sm:$0xff]  ;;  %v4298_v14 = vpack.c.bf16 %v225_v6, %v220_v5 }
  0x2e   :  { %4187 = vmatprep.subr.bf16.mxu0 %v4186_v36  ;;  %v258_v36 = vld [vmem:[%s8075_s3 + $0x558] sm:$0xff]  ;;  %v4208_v46 = vpack.c.bf16 %v252_v35, %v247_v34  ;;  %v219_v15 = vld [vmem:[%s8075_s3 + $0x420] sm:$0xff]  ;;  %v224_v16 = vld [vmem:[%s8075_s3 + $0x448] sm:$0xff] }
  0x2f   :  { %v230_v17 = vld [vmem:[%s8075_s3 + $0x478] sm:$0xff]  ;;  %v235_v18 = vld [vmem:[%s8075_s3 + $0x4a0] sm:$0xff]  ;;  %v292_v22 = vld [vmem:[%s8075_s3 + $0x668] sm:$0xff]  ;;  %v4300_v24 = vpack.c.bf16 %v224_v16, %v219_v15 }
  0x30   :  { %4281 = vmatpush1.bf16.msra.mxu1 %v4280_v25  ;;  %v298_v23 = vld [vmem:[%s8075_s3 + $0x698] sm:$0xff]  ;;  %v303_v25 = vld [vmem:[%s8075_s3 + $0x6c0] sm:$0xff]  ;;  %v4302_v26 = vpack.c.bf16 %v235_v18, %v230_v17  ;;  %v240_v29 = vld [vmem:[%s8075_s3 + $0x4c8] sm:$0xff] }
  0x31   :  { %4189 = vmatpush1.bf16.msra.mxu0 %v4188_v48  ;;  %4283 = vmatprep.subr.bf16.mxu1 %v4282_v27  ;;  %v4210_v48 = vpack.c.bf16 %v263_v38, %v258_v36  ;;  %v229_v27 = vld [vmem:[%s8075_s3 + $0x470] sm:$0xff]  ;;  %v234_v28 = vld [vmem:[%s8075_s3 + $0x498] sm:$0xff]  ;;  %v308_v35 = vld [vmem:[%s8075_s3 + $0x6e8] sm:$0xff] }
  0x32   :  { %4191 = vmatprep.subr.bf16.mxu0 %v4190_v49  ;;  %v262_v49 = vld [vmem:[%s8075_s3 + $0x578] sm:$0xff]  ;;  %v245_v30 = vld [vmem:[%s8075_s3 + $0x4f0] sm:$0xff]  ;;  %v4304_v36 = vpack.c.bf16 %v234_v28, %v229_v27  ;;  %v244_v40 = vld [vmem:[%s8075_s3 + $0x4e8] sm:$0xff] }
  0x33   :  { %v4212_v59 = vpack.c.bf16 %v262_v49, %v257_v47  ;;  %v302_v34 = vld [vmem:[%s8075_s3 + $0x6b8] sm:$0xff]  ;;  %v4306_v38 = vpack.c.bf16 %v245_v30, %v240_v29  ;;  %v255_v43 = vld [vmem:[%s8075_s3 + $0x540] sm:$0xff]  ;;  %v260_v56 = vld [vmem:[%s8075_s3 + $0x568] sm:$0xff] }
  0x34   :  { %4285 = vmatpush1.bf16.msra.mxu1 %v4284_v37  ;;  %v313_v37 = vld [vmem:[%s8075_s3 + $0x710] sm:$0xff]  ;;  %v250_v42 = vld [vmem:[%s8075_s3 + $0x518] sm:$0xff]  ;;  %v307_v47 = vld [vmem:[%s8075_s3 + $0x6e0] sm:$0xff] }
  0x35   :  { %4193 = vmatpush1.bf16.msra.mxu0 %v4192_v60  ;;  %4287 = vmatprep.subr.bf16.mxu1 %v4286_v39  ;;  %v4214_v60 = vpack.c.bf16 %v273_v53, %v268_v50  ;;  %v239_v39 = vld [vmem:[%s8075_s3 + $0x4c0] sm:$0xff]  ;;  %v318_v49 = vld [vmem:[%s8075_s3 + $0x738] sm:$0xff]  ;;  %v4310_v53 = vpack.c.bf16 %v255_v43, %v250_v42  ;;  %v265_v57 = vld [vmem:[%s8075_s3 + $0x590] sm:$0xff] }
  0x36   :  { %4195 = vmatprep.subr.bf16.mxu0 %v4194_v61  ;;  %v267_v61 = vld [vmem:[%s8075_s3 + $0x5a0] sm:$0xff]  ;;  %v4308_v50 = vpack.c.bf16 %v244_v40, %v239_v39  ;;  %v254_v55 = vld [vmem:[%s8075_s3 + $0x538] sm:$0xff]  ;;  %v264_v3 = vld [vmem:[%s8075_s3 + $0x588] sm:$0xff] }
  0x37   :  { %v4216_v7 = vpack.c.bf16 %v272_v62, %v267_v61  ;;  %v322_v61 = vld [vmem:[%s8075_s3 + $0x758] sm:$0xff]  ;;  %v328_v62 = vld [vmem:[%s8075_s3 + $0x788] sm:$0xff]  ;;  %v275_v5 = vld [vmem:[%s8075_s3 + $0x5e0] sm:$0xff] }
  0x38   :  { %4289 = vmatpush1.bf16.msra.mxu1 %v4288_v52  ;;  %v323_v52 = vld [vmem:[%s8075_s3 + $0x760] sm:$0xff]  ;;  %v270_v4 = vld [vmem:[%s8075_s3 + $0x5b8] sm:$0xff]  ;;  %v280_v16 = vld [vmem:[%s8075_s3 + $0x608] sm:$0xff] }
  0x39   :  { %4197 = vmatpush1.bf16.msra.mxu0 %v4196_v8  ;;  %4291 = vmatprep.subr.bf16.mxu1 %v4290_v54  ;;  %v4218_v8 = vpack.c.bf16 %v283_v1, %v278_v63  ;;  %v249_v54 = vld [vmem:[%s8075_s3 + $0x510] sm:$0xff]  ;;  %v4314_v1 = vpack.c.bf16 %v265_v57, %v260_v56  ;;  %v274_v15 = vld [vmem:[%s8075_s3 + $0x5d8] sm:$0xff]  ;;  %v807_v27 = vld [vmem:[%s8077_s5 + $0x28] sm:$0xff] }
  0x3a   :  { %4199 = vmatprep.subr.bf16.mxu0 %v4198_v9  ;;  %v277_v9 = vld [vmem:[%s8075_s3 + $0x5f0] sm:$0xff]  ;;  %v4312_v63 = vpack.c.bf16 %v254_v55, %v249_v54  ;;  %v290_v28 = vld [vmem:[%s8075_s3 + $0x658] sm:$0xff]  ;;  %v295_v29 = vld [vmem:[%s8075_s3 + $0x680] sm:$0xff] }
  0x3b   :  { %v4220_v19 = vpack.c.bf16 %v282_v10, %v277_v9  ;;  %v332_v9 = vld [vmem:[%s8075_s3 + $0x7a8] sm:$0xff]  ;;  %v338_v10 = vld [vmem:[%s8075_s3 + $0x7d8] sm:$0xff]  ;;  %v285_v17 = vld [vmem:[%s8075_s3 + $0x630] sm:$0xff] }
  0x3c   :  { %4293 = vmatpush1.bf16.msra.mxu1 %v4292_v0  ;;  %v333_v0 = vld [vmem:[%s8075_s3 + $0x7b0] sm:$0xff]  ;;  %v815_v39 = vld [vmem:[%s8077_s5 + $0x68] sm:$0xff]  ;;  %v310_v56 = vld [vmem:[%s8075_s3 + $0x6f8] sm:$0xff] }
  0x3d   :  { %4201 = vmatpush1.bf16.msra.mxu0 %v4200_v20  ;;  %4295 = vmatprep.subr.bf16.mxu1 %v4294_v2  ;;  %v4222_v20 = vpack.c.bf16 %v293_v13, %v288_v11  ;;  %v259_v2 = vld [vmem:[%s8075_s3 + $0x560] sm:$0xff]  ;;  %v4318_v13 = vpack.c.bf16 %v275_v5, %v270_v4  ;;  %v300_v40 = vld [vmem:[%s8075_s3 + $0x6a8] sm:$0xff]  ;;  %v305_v42 = vld [vmem:[%s8075_s3 + $0x6d0] sm:$0xff] }
  0x3e   :  { %4203 = vmatprep.subr.bf16.mxu0 %v4202_v21  ;;  %v287_v21 = vld [vmem:[%s8075_s3 + $0x640] sm:$0xff]  ;;  %v4316_v11 = vpack.c.bf16 %v264_v3, %v259_v2  ;;  %v6057_v43 = vld [vmem:[%s8072_s0 + $0x10] sm:$0xff]  ;;  %v819_v54 = vld [vmem:[%s8077_s5 + $0x88] sm:$0xff] }
  0x3f   :  { %v4224_v31 = vpack.c.bf16 %v292_v22, %v287_v21  ;;  %v342_v21 = vld [vmem:[%s8075_s3 + $0x7f8] sm:$0xff]  ;;  %v823_v55 = vld [vmem:[%s8077_s5 + $0xa8] sm:$0xff]  ;;  %v315_v57 = vld [vmem:[%s8075_s3 + $0x720] sm:$0xff] }
  0x40   :  { %4297 = vmatpush1.bf16.msra.mxu1 %v4296_v12  ;;  %v343_v12 = vld [vmem:[%s8075_s3 + $0x800] sm:$0xff] }
  0x41   :  { %4205 = vmatpush1.bf16.msra.mxu0 %v4204_v32  ;;  %4299 = vmatprep.subr.bf16.mxu1 %v4298_v14  ;;  %v4226_v32 = vpack.c.bf16 %v303_v25, %v298_v23  ;;  %v269_v14 = vld [vmem:[%s8075_s3 + $0x5b0] sm:$0xff]  ;;  %v279_v23 = vld [vmem:[%s8075_s3 + $0x600] sm:$0xff]  ;;  %v284_v25 = vld [vmem:[%s8075_s3 + $0x628] sm:$0xff] }
  0x42   :  { %4207 = vmatprep.subr.bf16.mxu0 %v4206_v33  ;;  %v297_v33 = vld [vmem:[%s8075_s3 + $0x690] sm:$0xff]  ;;  %v4320_v22 = vpack.c.bf16 %v274_v15, %v269_v14 }
  0x43   :  { %v4228_v44 = vpack.c.bf16 %v302_v34, %v297_v33  ;;  %v802_v34 = vld [vmem:[%s8077_s5] sm:$0xff] }
  0x44   :  { %443 = vmatmul.mubr.f32.vlgmr.msra.gmra.mrb[0].mxu0 %v5801_v45  ;;  %4301 = vmatpush1.bf16.msra.mxu1 %v4300_v24  ;;  %v4322_v24 = vpack.c.bf16 %v285_v17, %v280_v16 }
  0x45   :  { %4209 = vmatpush1.bf16.msra.mxu0 %v4208_v46  ;;  %3484 = vmatprep.mubr.msk.f32.mxu0 %vm374_vm0, %v5815_v51  ;;  %v4230_v46 = vpack.c.bf16 %v313_v37, %v308_v35  ;;  %v806_v35 = vld [vmem:[%s8077_s5 + $0x20] sm:$0xff]  ;;  %v294_v37 = vld [vmem:[%s8075_s3 + $0x678] sm:$0xff] }
  0x46   :  { %4211 = vmatprep.subr.bf16.mxu0 %v4210_v48  ;;  %4303 = vmatprep.subr.bf16.mxu1 %v4302_v26  ;;  %v312_v48 = vld [vmem:[%s8075_s3 + $0x708] sm:$0xff] }
  0x47   :  { %v4232_v58 = vpack.c.bf16 %v312_v48, %v307_v47  ;;  %v803_v26 = vld [vmem:[%s8077_s5 + $0x8] sm:$0xff]  ;;  %v299_v47 = vld [vmem:[%s8075_s3 + $0x6a0] sm:$0xff] }
  0x48   :  { %4305 = vmatpush1.bf16.msra.mxu1 %v4304_v36  ;;  %v4412_v33 = vpack.c.bf16 %v807_v27, %v803_v26  ;;  %v4326_v36 = vpack.c.bf16 %v295_v29, %v290_v28 }
  0x49   :  { %4213 = vmatpush1.bf16.msra.mxu0 %v4212_v59  ;;  %4307 = vmatprep.subr.bf16.mxu1 %v4306_v38  ;;  %v4234_v59 = vpack.c.bf16 %v323_v52, %v318_v49  ;;  %v811_v38 = vld [vmem:[%s8077_s5 + $0x48] sm:$0xff]  ;;  %v810_v49 = vld [vmem:[%s8077_s5 + $0x40] sm:$0xff]  ;;  %v4330_v52 = vpack.c.bf16 %v305_v42, %v300_v40 }
  0x4a   :  { %4215 = vmatprep.subr.bf16.mxu0 %v4214_v60  ;;  %v317_v60 = vld [vmem:[%s8075_s3 + $0x730] sm:$0xff]  ;;  %v4416_v48 = vpack.c.bf16 %v815_v39, %v811_v38 }
  0x4b   :  { %v4236_v6 = vpack.c.bf16 %v322_v61, %v317_v60 }
  0x4c   :  { %4309 = vmatpush1.bf16.msra.mxu1 %v4308_v50  ;;  %v814_v50 = vld [vmem:[%s8077_s5 + $0x60] sm:$0xff] }
  0x4d   :  { %4217 = vmatpush1.bf16.msra.mxu0 %v4216_v7  ;;  %4311 = vmatprep.subr.bf16.mxu1 %v4310_v53  ;;  %v4238_v7 = vpack.c.bf16 %v333_v0, %v328_v62  ;;  %v304_v53 = vld [vmem:[%s8075_s3 + $0x6c8] sm:$0xff] }
  0x4e   :  { %4219 = vmatprep.subr.bf16.mxu0 %v4218_v8  ;;  %v327_v8 = vld [vmem:[%s8075_s3 + $0x780] sm:$0xff] }
  0x4f   :  { %585 = vmatmul.mubr.f32.vlgmr.msra.gmra.mrb[0].mxu1 %v5801_v45  ;;  %v4240_v18 = vpack.c.bf16 %v332_v9, %v327_v8 }
  0x50   :  { %4313 = vmatpush1.bf16.msra.mxu1 %v4312_v63  ;;  %3485 = vmatprep.mubr.msk.f32.mxu1 %vm374_vm0, %v5815_v51 }
  0x51   :  { %4221 = vmatpush1.bf16.msra.mxu0 %v4220_v19  ;;  %4315 = vmatprep.subr.bf16.mxu1 %v4314_v1  ;;  %v4242_v19 = vpack.c.bf16 %v343_v12, %v338_v10 }
  0x52   :  { %4223 = vmatprep.subr.bf16.mxu0 %v4222_v20  ;;  %v337_v20 = vld [vmem:[%s8075_s3 + $0x7d0] sm:$0xff] }
  0x53   :  { %v4244_v30 = vpack.c.bf16 %v342_v21, %v337_v20 }
  0x54   :  { %4317 = vmatpush1.bf16.msra.mxu1 %v4316_v11 }
  0x55   :  { %4225 = vmatpush1.bf16.msra.mxu0 %v4224_v31  ;;  %4319 = vmatprep.subr.bf16.mxu1 %v4318_v13  ;;  %v4324_v31 = vpack.c.bf16 %v284_v25, %v279_v23 }
  0x56   :  { %4227 = vmatprep.subr.bf16.mxu0 %v4226_v32  ;;  %v289_v32 = vld [vmem:[%s8075_s3 + $0x650] sm:$0xff] }
  0x58   :  { %4321 = vmatpush1.bf16.msra.mxu1 %v4320_v22 }
  0x59   :  { %4229 = vmatpush1.bf16.msra.mxu0 %v4228_v44  ;;  %4323 = vmatprep.subr.bf16.mxu1 %v4322_v24  ;;  %v4414_v44 = vpack.c.bf16 %v806_v35, %v802_v34 }
  0x5a   :  { %4231 = vmatprep.subr.bf16.mxu0 %v4230_v46  ;;  %v4328_v46 = vpack.c.bf16 %v294_v37, %v289_v32 }
  0x5c   :  { %4325 = vmatpush1.bf16.msra.mxu1 %v4324_v31 }
  0x5d   :  { %4233 = vmatpush1.bf16.msra.mxu0 %v4232_v58  ;;  %4327 = vmatprep.subr.bf16.mxu1 %v4326_v36  ;;  %v4418_v58 = vpack.c.bf16 %v814_v50, %v810_v49 }
  0x5e   :  { %4235 = vmatprep.subr.bf16.mxu0 %v4234_v59 }
  0x61   :  { %4237 = vmatpush1.bf16.msra.mxu0 %v4236_v6 }
  0x62   :  { %4239 = vmatprep.subr.bf16.mxu0 %v4238_v7 }
  0x65   :  { %4241 = vmatpush1.bf16.msra.mxu0 %v4240_v18 }
  0x66   :  { %4243 = vmatprep.subr.bf16.mxu0 %v4242_v19 }
  0x69   :  { %4245 = vmatpush1.bf16.msra.mxu0 %v4244_v30 }
  0x6a   :  { %4413 = vmatprep.subr.bf16.mxu0 %v4412_v33 }
  0x6c   :  { %514 = vmatmul.mubr.f32.vlgmr.msra.gmra.mrb[0].mxu0 %v6057_v43 }
  0x6d   :  { %4415 = vmatpush1.bf16.msra.mxu0 %v4414_v44 }
  0x6e   :  { %12 = vsyncpa [#allocation3], 0  ;;  %4329 = vmatpush1.bf16.msra.mxu1 %v4328_v46  ;;  %v4332_v59 = vpack.c.bf16 %v304_v53, %v299_v47  ;;  %v309_v60 = vld [vmem:[%s8075_s3 + $0x6f0] sm:$0xff]  ;;  %4417 = vmatprep.subr.bf16.mxu0 %v4416_v48  ;;  %v4420_v61 = vpack.c.bf16 %v823_v55, %v819_v54  ;;  %v818_v62 = vld [vmem:[%s8077_s5 + $0x80] sm:$0xff]  ;;  %v4334_v0 = vpack.c.bf16 %v315_v57, %v310_v56 }
  0x6f   :  { %v822_v63 = vld [vmem:[%s8077_s5 + $0xa0] sm:$0xff]  ;;  %4331 = vmatprep.subr.bf16.mxu1 %v4330_v52  ;;  %v314_v1 = vld [vmem:[%s8075_s3 + $0x718] sm:$0xff]  ;;  %v827_v2 = vld [vmem:[%s8077_s5 + $0xc8] sm:$0xff] }
  0x70   :  { %v831_v3 = vld [vmem:[%s8077_s5 + $0xe8] sm:$0xff]  ;;  %v325_v5 = vld [vmem:[%s8075_s3 + $0x770] sm:$0xff]  ;;  %v4422_v6 = vpack.c.bf16 %v822_v63, %v818_v62  ;;  %v4336_v7 = vpack.c.bf16 %v314_v1, %v309_v60  ;;  %v319_v8 = vld [vmem:[%s8075_s3 + $0x740] sm:$0xff] }
  0x71   :  { %v320_v4 = vld [vmem:[%s8075_s3 + $0x748] sm:$0xff]  ;;  %4419 = vmatpush1.bf16.msra.mxu0 %v4418_v58  ;;  %v4424_v9 = vpack.c.bf16 %v831_v3, %v827_v2  ;;  %v826_v10 = vld [vmem:[%s8077_s5 + $0xc0] sm:$0xff]  ;;  %v330_v16 = vld [vmem:[%s8075_s3 + $0x798] sm:$0xff] }
  0x72   :  { %4333 = vmatpush1.bf16.msra.mxu1 %v4332_v59  ;;  %4421 = vmatprep.subr.bf16.mxu0 %v4420_v61  ;;  %v830_v11 = vld [vmem:[%s8077_s5 + $0xe0] sm:$0xff]  ;;  %v4338_v12 = vpack.c.bf16 %v325_v5, %v320_v4  ;;  %v324_v13 = vld [vmem:[%s8075_s3 + $0x768] sm:$0xff]  ;;  %v329_v20 = vld [vmem:[%s8075_s3 + $0x790] sm:$0xff] }
  0x73   :  { %4335 = vmatprep.subr.bf16.mxu1 %v4334_v0  ;;  %v835_v14 = vld [vmem:[%s8077_s5 + $0x108] sm:$0xff]  ;;  %v335_v17 = vld [vmem:[%s8075_s3 + $0x7c0] sm:$0xff]  ;;  %v4426_v18 = vpack.c.bf16 %v830_v11, %v826_v10  ;;  %v4340_v19 = vpack.c.bf16 %v324_v13, %v319_v8  ;;  %v334_v25 = vld [vmem:[%s8075_s3 + $0x7b8] sm:$0xff] }
  0x74   :  { %v839_v15 = vld [vmem:[%s8077_s5 + $0x128] sm:$0xff]  ;;  %v834_v22 = vld [vmem:[%s8077_s5 + $0x100] sm:$0xff]  ;;  %v4342_v24 = vpack.c.bf16 %v335_v17, %v330_v16  ;;  %v345_v29 = vld [vmem:[%s8075_s3 + $0x810] sm:$0xff]  ;;  %v4344_v31 = vpack.c.bf16 %v334_v25, %v329_v20 }
  0x75   :  { %4423 = vmatpush1.bf16.msra.mxu0 %v4422_v6  ;;  %v4428_v21 = vpack.c.bf16 %v839_v15, %v835_v14  ;;  %v838_v23 = vld [vmem:[%s8077_s5 + $0x120] sm:$0xff]  ;;  %v843_v26 = vld [vmem:[%s8077_s5 + $0x148] sm:$0xff]  ;;  %v181_v54 = vld [vmem:[%s8075_s3 + $0x2f0] sm:$0xff] }
  0x76   :  { %4337 = vmatpush1.bf16.msra.mxu1 %v4336_v7  ;;  %4425 = vmatprep.subr.bf16.mxu0 %v4424_v9  ;;  %v847_v27 = vld [vmem:[%s8077_s5 + $0x168] sm:$0xff]  ;;  %v4430_v30 = vpack.c.bf16 %v838_v23, %v834_v22  ;;  %v339_v32 = vld [vmem:[%s8075_s3 + $0x7e0] sm:$0xff]  ;;  %v186_v55 = vld [vmem:[%s8075_s3 + $0x318] sm:$0xff] }
  0x77   :  { %4339 = vmatprep.subr.bf16.mxu1 %v4338_v12  ;;  %v340_v28 = vld [vmem:[%s8075_s3 + $0x7e8] sm:$0xff]  ;;  %v4432_v33 = vpack.c.bf16 %v847_v27, %v843_v26  ;;  %v842_v34 = vld [vmem:[%s8077_s5 + $0x140] sm:$0xff]  ;;  %v4354_v60 = vpack.c.bf16 %v186_v55, %v181_v54  ;;  %v101_v61 = vld [vmem:[%s8075_s3 + $0x70] sm:$0xff] }
  0x78   :  { %v846_v35 = vld [vmem:[%s8077_s5 + $0x160] sm:$0xff]  ;;  %v4346_v36 = vpack.c.bf16 %v345_v29, %v340_v28  ;;  %v344_v37 = vld [vmem:[%s8075_s3 + $0x808] sm:$0xff]  ;;  %v106_v62 = vld [vmem:[%s8075_s3 + $0x98] sm:$0xff] }
  0x79   :  { %4427 = vmatpush1.bf16.msra.mxu0 %v4426_v18  ;;  %v851_v38 = vld [vmem:[%s8077_s5 + $0x188] sm:$0xff]  ;;  %v171_v40 = vld [vmem:[%s8075_s3 + $0x2a0] sm:$0xff]  ;;  %v4434_v44 = vpack.c.bf16 %v846_v35, %v842_v34  ;;  %v4348_v46 = vpack.c.bf16 %v344_v37, %v339_v32  ;;  %v4356_v2 = vpack.c.bf16 %v106_v62, %v101_v61  ;;  %v201_v6 = vld [vmem:[%s8075_s3 + $0x390] sm:$0xff] }
  0x7a   :  { %4341 = vmatpush1.bf16.msra.mxu1 %v4340_v19  ;;  %4429 = vmatprep.subr.bf16.mxu0 %v4428_v21  ;;  %v855_v39 = vld [vmem:[%s8077_s5 + $0x1a8] sm:$0xff]  ;;  %v850_v48 = vld [vmem:[%s8077_s5 + $0x180] sm:$0xff]  ;;  %v206_v7 = vld [vmem:[%s8075_s3 + $0x3b8] sm:$0xff] }
  0x7b   :  { %4343 = vmatprep.subr.bf16.mxu1 %v4342_v24  ;;  %v176_v42 = vld [vmem:[%s8075_s3 + $0x2c8] sm:$0xff]  ;;  %v4436_v47 = vpack.c.bf16 %v855_v39, %v851_v38  ;;  %v854_v49 = vld [vmem:[%s8077_s5 + $0x1a0] sm:$0xff]  ;;  %v4362_v8 = vpack.c.bf16 %v206_v7, %v201_v6  ;;  %v121_v9 = vld [vmem:[%s8075_s3 + $0x110] sm:$0xff]  ;;  %v5400_v39 = vmov 0.0|0.0  }
  0x7c   :  { %v4350_v50 = vpack.c.bf16 %v176_v42, %v171_v40  ;;  %v91_v52 = vld [vmem:[%s8075_s3 + $0x20] sm:$0xff]  ;;  %v96_v53 = vld [vmem:[%s8075_s3 + $0x48] sm:$0xff]  ;;  %v4438_v58 = vpack.c.bf16 %v854_v49, %v850_v48  ;;  %v126_v10 = vld [vmem:[%s8075_s3 + $0x138] sm:$0xff] }
  0x7d   :  { %4431 = vmatpush1.bf16.msra.mxu0 %v4430_v30  ;;  %v859_v56 = vld [vmem:[%s8077_s5 + $0x1c8] sm:$0xff]  ;;  %v4352_v59 = vpack.c.bf16 %v96_v53, %v91_v52  ;;  %v191_v0 = vld [vmem:[%s8075_s3 + $0x340] sm:$0xff]  ;;  %v4364_v13 = vpack.c.bf16 %v126_v10, %v121_v9  ;;  %v221_v17 = vld [vmem:[%s8075_s3 + $0x430] sm:$0xff] }
  0x7e   :  { %4345 = vmatpush1.bf16.msra.mxu1 %v4344_v31  ;;  %4433 = vmatprep.subr.bf16.mxu0 %v4432_v33  ;;  %v863_v57 = vld [vmem:[%s8077_s5 + $0x1e8] sm:$0xff]  ;;  %v111_v4 = vld [vmem:[%s8075_s3 + $0xc0] sm:$0xff]  ;;  %v226_v18 = vld [vmem:[%s8075_s3 + $0x458] sm:$0xff] }
  0x7f   :  { %4347 = vmatprep.subr.bf16.mxu1 %v4346_v36  ;;  %v4440_v63 = vpack.c.bf16 %v863_v57, %v859_v56  ;;  %v196_v1 = vld [vmem:[%s8075_s3 + $0x368] sm:$0xff]  ;;  %v211_v11 = vld [vmem:[%s8075_s3 + $0x3e0] sm:$0xff]  ;;  %v4370_v20 = vpack.c.bf16 %v226_v18, %v221_v17  ;;  %v141_v21 = vld [vmem:[%s8075_s3 + $0x1b0] sm:$0xff] }
  0x80   :  { %v4358_v3 = vpack.c.bf16 %v196_v1, %v191_v0  ;;  %v116_v5 = vld [vmem:[%s8075_s3 + $0xe8] sm:$0xff]  ;;  %v131_v15 = vld [vmem:[%s8075_s3 + $0x160] sm:$0xff]  ;;  %v146_v22 = vld [vmem:[%s8075_s3 + $0x1d8] sm:$0xff] }
  0x81   :  { %4435 = vmatpush1.bf16.msra.mxu0 %v4434_v44  ;;  %v216_v12 = vld [vmem:[%s8075_s3 + $0x408] sm:$0xff]  ;;  %v231_v23 = vld [vmem:[%s8075_s3 + $0x480] sm:$0xff]  ;;  %v4372_v25 = vpack.c.bf16 %v146_v22, %v141_v21  ;;  %v241_v29 = vld [vmem:[%s8075_s3 + $0x4d0] sm:$0xff] }
  0x82   :  { %4349 = vmatpush1.bf16.msra.mxu1 %v4348_v46  ;;  %4437 = vmatprep.subr.bf16.mxu0 %v4436_v47  ;;  %v4366_v14 = vpack.c.bf16 %v216_v12, %v211_v11  ;;  %v136_v16 = vld [vmem:[%s8075_s3 + $0x188] sm:$0xff]  ;;  %v151_v27 = vld [vmem:[%s8075_s3 + $0x200] sm:$0xff]  ;;  %v246_v30 = vld [vmem:[%s8075_s3 + $0x4f8] sm:$0xff] }
  0x83   :  { %4351 = vmatprep.subr.bf16.mxu1 %v4350_v50  ;;  %v4368_v19 = vpack.c.bf16 %v136_v16, %v131_v15  ;;  %v236_v24 = vld [vmem:[%s8075_s3 + $0x4a8] sm:$0xff]  ;;  %v4378_v32 = vpack.c.bf16 %v246_v30, %v241_v29  ;;  %v161_v33 = vld [vmem:[%s8075_s3 + $0x250] sm:$0xff]  ;;  %v166_v34 = vld [vmem:[%s8075_s3 + $0x278] sm:$0xff] }
  0x84   :  { %v4374_v26 = vpack.c.bf16 %v236_v24, %v231_v23  ;;  %v156_v28 = vld [vmem:[%s8075_s3 + $0x228] sm:$0xff]  ;;  %v4380_v35 = vpack.c.bf16 %v166_v34, %v161_v33  ;;  %v251_v36 = vld [vmem:[%s8075_s3 + $0x520] sm:$0xff]  ;;  %v261_v40 = vld [vmem:[%s8075_s3 + $0x570] sm:$0xff] }
  0x85   :  { %656 = vmatmul.mubr.f32.vlgmr.msra.gmra.mrb[0].mxu1 %v6057_v43  ;;  %4439 = vmatpush1.bf16.msra.mxu0 %v4438_v58  ;;  %v4376_v31 = vpack.c.bf16 %v156_v28, %v151_v27  ;;  %v256_v37 = vld [vmem:[%s8075_s3 + $0x548] sm:$0xff]  ;;  %v266_v42 = vld [vmem:[%s8075_s3 + $0x598] sm:$0xff]  ;;  %v271_v46 = vld [vmem:[%s8075_s3 + $0x5c0] sm:$0xff] }
  0x86   :  { %4353 = vmatpush3.bf16.msra.mxu1 %v4352_v59  ;;  %726 = vmatprep.mubr.f32.mxu1 %v5530_v41  ;;  %v4360_v41 = vpack.c.bf16 %v116_v5, %v111_v4  ;;  %v4383_v38 = vpack.c.bf16 %v256_v37, %v251_v36  ;;  %v4386_v44 = vpack.c.bf16 %v266_v42, %v261_v40  ;;  %v276_v47 = vld [vmem:[%s8075_s3 + $0x5e8] sm:$0xff]  ;;  %v291_v50 = vld [vmem:[%s8075_s3 + $0x660] sm:$0xff]  ;;  %v301_v54 = vld [vmem:[%s8075_s3 + $0x6b0] sm:$0xff]  ;;  %v5401_v4 = vmov 0.0  }
  0x87   :  { %4355 = vmatprep.subr.bf16.mxu1 %v4354_v60  ;;  %4441 = vmatprep.subr.bf16.mxu0 %v4440_v63  ;;  %v4389_v48 = vpack.c.bf16 %v276_v47, %v271_v46  ;;  %v296_v52 = vld [vmem:[%s8075_s3 + $0x688] sm:$0xff]  ;;  %v306_v55 = vld [vmem:[%s8075_s3 + $0x6d8] sm:$0xff]  ;;  %v311_v57 = vld [vmem:[%s8075_s3 + $0x700] sm:$0xff] }
  0x88   :  { %v4395_v53 = vpack.c.bf16 %v296_v52, %v291_v50  ;;  %v4398_v56 = vpack.c.bf16 %v306_v55, %v301_v54  ;;  %v316_v58 = vld [vmem:[%s8075_s3 + $0x728] sm:$0xff]  ;;  %v321_v60 = vld [vmem:[%s8075_s3 + $0x750] sm:$0xff]  ;;  %v326_v61 = vld [vmem:[%s8075_s3 + $0x778] sm:$0xff]  ;;  %952 = vmatprep.mubr.f32.mxu0 %v5401_v4 }
  0x89   :  { %v4401_v59 = vpack.c.bf16 %v316_v58, %v311_v57  ;;  %v858_v62 = vld [vmem:[%s8077_s5 + $0x1c0] sm:$0xff]  ;;  %v4404_v1 = vpack.c.bf16 %v326_v61, %v321_v60  ;;  %v341_v6 = vld [vmem:[%s8075_s3 + $0x7f0] sm:$0xff]  ;;  %v346_v7 = vld [vmem:[%s8075_s3 + $0x818] sm:$0xff] }
  0x8a   :  { %4357 = vmatpush3.bf16.msra.mxu1 %v4356_v2  ;;  %v862_v63 = vld [vmem:[%s8077_s5 + $0x1e0] sm:$0xff]  ;;  %v4410_v9 = vpack.c.bf16 %v346_v7, %v341_v6  ;;  %v804_v11 = vld [vmem:[%s8077_s5 + $0x10] sm:$0xff]  ;;  %v845_v37 = vld [vmem:[%s8077_s5 + $0x158] sm:$0xff] }
  0x8b   :  { %4359 = vmatprep.subr.bf16.mxu1 %v4358_v3  ;;  %v4442_v0 = vpack.c.bf16 %v862_v63, %v858_v62  ;;  %v331_v2 = vld [vmem:[%s8075_s3 + $0x7a0] sm:$0xff]  ;;  %v336_v3 = vld [vmem:[%s8075_s3 + $0x7c8] sm:$0xff]  ;;  %v808_v12 = vld [vmem:[%s8077_s5 + $0x30] sm:$0xff]  ;;  %v349_v62 = vlaneseq }
  0x8c   :  { %v4407_v5 = vpack.c.bf16 %v336_v3, %v331_v2  ;;  %v4446_v15 = vpack.c.bf16 %v808_v12, %v804_v11  ;;  %v812_v17 = vld [vmem:[%s8077_s5 + $0x50] sm:$0xff]  ;;  %v853_v47 = vld [vmem:[%s8077_s5 + $0x198] sm:$0xff]  ;;  %v52_v60 = vld [vmem:[%s8074_s2 + $0x88] sm:$0xff] }
  0x8d   :  { %4443 = vmatpush1.bf16.msra.mxu0 %v4442_v0  ;;  %v816_v18 = vld [vmem:[%s8077_s5 + $0x70] sm:$0xff]  ;;  %v861_v52 = vld [vmem:[%s8077_s5 + $0x1d8] sm:$0xff]  ;;  %v6472_v63 = vshrl.u32 %v349_v62, 7  ;;  %v67_v2 = vld [vmem:[%s8074_s2 + $0x100] sm:$0xff] }
  0x8e   :  { %4361 = vmatpush3.bf16.msra.mxu1 %v4360_v41  ;;  %v805_v41 = vld [vmem:[%s8077_s5 + $0x18] sm:$0xff]  ;;  %v4450_v21 = vpack.c.bf16 %v816_v18, %v812_v17  ;;  %v820_v23 = vld [vmem:[%s8077_s5 + $0x90] sm:$0xff]  ;;  %v35_v6 = vld [vmem:[%s8074_s2] sm:$0xff] }
  0x8f   :  { %4363 = vmatprep.subr.bf16.mxu1 %v4362_v8  ;;  %v809_v8 = vld [vmem:[%s8077_s5 + $0x38] sm:$0xff]  ;;  %v824_v24 = vld [vmem:[%s8077_s5 + $0xb0] sm:$0xff]  ;;  %v6475_v0 = vsub.s32 0, %v6472_v63  ;;  %v36_v7 = vld [vmem:[%s8074_s2 + $0x8] sm:$0xff] }
  0x90   :  { %v4444_v10 = vpack.c.bf16 %v809_v8, %v805_v41  ;;  %v4454_v27 = vpack.c.bf16 %v824_v24, %v820_v23  ;;  %v828_v29 = vld [vmem:[%s8077_s5 + $0xd0] sm:$0xff]  ;;  %v54_v8 = vld [vmem:[%s8074_s2 + $0x98] sm:$0xff]  ;;  %v6507_v12 = vpack.c.bf16 %v36_v7, %v35_v6  ;;  %v72_v24 = vld [vmem:[%s8074_s2 + $0x128] sm:$0xff] }
  0x91   :  { %v832_v30 = vld [vmem:[%s8077_s5 + $0xf0] sm:$0xff]  ;;  %v38_v18 = vld [vmem:[%s8074_s2 + $0x18] sm:$0xff]  ;;  %v79_v62 = vld [vmem:[%s8074_s2 + $0x160] sm:$0xff] }
  0x92   :  { %4365 = vmatpush3.bf16.msra.mxu1 %v4364_v13  ;;  %v813_v13 = vld [vmem:[%s8077_s5 + $0x58] sm:$0xff]  ;;  %v4458_v33 = vpack.c.bf16 %v832_v30, %v828_v29  ;;  %v840_v36 = vld [vmem:[%s8077_s5 + $0x130] sm:$0xff]  ;;  %v47_v6 = vld [vmem:[%s8074_s2 + $0x60] sm:$0xff] }
  0x93   :  { %4367 = vmatprep.subr.bf16.mxu1 %v4366_v14  ;;  %v817_v14 = vld [vmem:[%s8077_s5 + $0x78] sm:$0xff]  ;;  %v848_v46 = vld [vmem:[%s8077_s5 + $0x170] sm:$0xff]  ;;  %v48_v7 = vld [vmem:[%s8074_s2 + $0x68] sm:$0xff] }
  0x94   :  { %v4448_v16 = vpack.c.bf16 %v817_v14, %v813_v13  ;;  %v856_v50 = vld [vmem:[%s8077_s5 + $0x1b0] sm:$0xff]  ;;  %v58_v29 = vld [vmem:[%s8074_s2 + $0xb8] sm:$0xff] }
  0x95   :  { %v864_v57 = vld [vmem:[%s8077_s5 + $0x1f0] sm:$0xff] }
  0x96   :  { %4369 = vmatpush3.bf16.msra.mxu1 %v4368_v19  ;;  %v821_v19 = vld [vmem:[%s8077_s5 + $0x98] sm:$0xff]  ;;  %v53_v41 = vld [vmem:[%s8074_s2 + $0x90] sm:$0xff] }
  0x97   :  { %4371 = vmatprep.subr.bf16.mxu1 %v4370_v20  ;;  %v825_v20 = vld [vmem:[%s8077_s5 + $0xb8] sm:$0xff]  ;;  %v69_v11 = vld [vmem:[%s8074_s2 + $0x110] sm:$0xff] }
  0x98   :  { %v4452_v22 = vpack.c.bf16 %v825_v20, %v821_v19  ;;  %v37_v17 = vld [vmem:[%s8074_s2 + $0x10] sm:$0xff]  ;;  %v55_v19 = vld [vmem:[%s8074_s2 + $0xa0] sm:$0xff]  ;;  %v56_v20 = vld [vmem:[%s8074_s2 + $0xa8] sm:$0xff] }
  0x99   :  { %v6539_v23 = vpack.c.bf16 %v38_v18, %v37_v17 }
  0x9a   :  { %4373 = vmatpush3.bf16.msra.mxu1 %v4372_v25  ;;  %v829_v25 = vld [vmem:[%s8077_s5 + $0xd8] sm:$0xff] }
  0x9b   :  { %4375 = vmatprep.subr.bf16.mxu1 %v4374_v26  ;;  %v833_v26 = vld [vmem:[%s8077_s5 + $0xf8] sm:$0xff] }
  0x9c   :  { %v4456_v28 = vpack.c.bf16 %v833_v26, %v829_v25  ;;  %v6546_v25 = vpack.c.bf16 %v56_v20, %v55_v19  ;;  %v39_v26 = vld [vmem:[%s8074_s2 + $0x20] sm:$0xff]  ;;  %v84_v20 = vld [vmem:[%s8074_s2 + $0x188] sm:$0xff] }
  0x9d   :  { %v83_v19 = vld [vmem:[%s8074_s2 + $0x180] sm:$0xff] }
  0x9e   :  { %4377 = vmatpush3.bf16.msra.mxu1 %v4376_v31  ;;  %v837_v31 = vld [vmem:[%s8077_s5 + $0x118] sm:$0xff] }
  0x9f   :  { %4379 = vmatprep.subr.bf16.mxu1 %v4378_v32  ;;  %v841_v32 = vld [vmem:[%s8077_s5 + $0x138] sm:$0xff] }
  0xa0   :  { %v4460_v34 = vpack.c.bf16 %v841_v32, %v837_v31  ;;  %v73_v31 = vld [vmem:[%s8074_s2 + $0x130] sm:$0xff] }
  0xa2   :  { %4381 = vmatpush3.bf16.msra.mxu1 %v4380_v35  ;;  %v836_v35 = vld [vmem:[%s8077_s5 + $0x110] sm:$0xff] }
  0xa3   :  { %4382 = vmatprep.subr.bf16.mxu1 %v5400_v39  ;;  %v4462_v40 = vpack.c.bf16 %v840_v36, %v836_v35  ;;  %v41_v35 = vld [vmem:[%s8074_s2 + $0x30] sm:$0xff]  ;;  %v42_v36 = vld [vmem:[%s8074_s2 + $0x38] sm:$0xff] }
  0xa5   :  { %727 = vmatmul.mubr.f32.vlgmr.msra.gmra.mrb[2].mxu1 %v5801_v45  ;;  %v281_v45 = vld [vmem:[%s8075_s3 + $0x610] sm:$0xff] }
  0xa6   :  { %4384 = vmatpush1.bf16.msra.mxu1 %v4383_v38  ;;  %3486 = vmatprep.mubr.msk.f32.mxu1 %vm374_vm0, %v5815_v51  ;;  %v286_v51 = vld [vmem:[%s8075_s3 + $0x638] sm:$0xff] }
  0xa7   :  { %4385 = vmatprep.subr.bf16.mxu1 %v5400_v39  ;;  %v4392_v49 = vpack.c.bf16 %v286_v51, %v281_v45  ;;  %v849_v38 = vld [vmem:[%s8077_s5 + $0x178] sm:$0xff] }
  0xa8   :  { %v4464_v42 = vpack.c.bf16 %v849_v38, %v845_v37  ;;  %v59_v37 = vld [vmem:[%s8074_s2 + $0xc0] sm:$0xff]  ;;  %v60_v38 = vld [vmem:[%s8074_s2 + $0xc8] sm:$0xff] }
  0xaa   :  { %4387 = vmatpush1.bf16.msra.mxu1 %v4386_v44  ;;  %v844_v44 = vld [vmem:[%s8077_s5 + $0x150] sm:$0xff] }
  0xab   :  { %4388 = vmatprep.subr.bf16.mxu1 %v5400_v39  ;;  %v4466_v45 = vpack.c.bf16 %v848_v46, %v844_v44  ;;  %v6595_v44 = vpack.c.bf16 %v42_v36, %v41_v35  ;;  %v76_v46 = vld [vmem:[%s8074_s2 + $0x148] sm:$0xff]  ;;  %v49_v35 = vld [vmem:[%s8074_s2 + $0x70] sm:$0xff]  ;;  %v50_v36 = vld [vmem:[%s8074_s2 + $0x78] sm:$0xff] }
  0xae   :  { %4390 = vmatpush1.bf16.msra.mxu1 %v4389_v48  ;;  %v857_v48 = vld [vmem:[%s8077_s5 + $0x1b8] sm:$0xff] }
  0xaf   :  { %4391 = vmatprep.subr.bf16.mxu1 %v5400_v39  ;;  %v4468_v51 = vpack.c.bf16 %v857_v48, %v853_v47  ;;  %v6602_v47 = vpack.c.bf16 %v60_v38, %v59_v37  ;;  %v43_v48 = vld [vmem:[%s8074_s2 + $0x40] sm:$0xff]  ;;  %v85_v37 = vld [vmem:[%s8074_s2 + $0x190] sm:$0xff]  ;;  %v6719_v38 = vpack.c.bf16 %v50_v36, %v49_v35  ;;  %v6771_v35 = vld [vmem:[%s8072_s0 + $0x18] sm:$0xff] }
  0xb2   :  { %4393 = vmatpush1.bf16.msra.mxu1 %v4392_v49  ;;  %v852_v49 = vld [vmem:[%s8077_s5 + $0x190] sm:$0xff] }
  0xb3   :  { %4394 = vmatprep.subr.bf16.mxu1 %v5400_v39  ;;  %v4470_v54 = vpack.c.bf16 %v856_v50, %v852_v49  ;;  %v62_v49 = vld [vmem:[%s8074_s2 + $0xd8] sm:$0xff] }
  0xb6   :  { %4396 = vmatpush1.bf16.msra.mxu1 %v4395_v53  ;;  %v865_v53 = vld [vmem:[%s8077_s5 + $0x1f8] sm:$0xff] }
  0xb7   :  { %4397 = vmatprep.subr.bf16.mxu1 %v5400_v39  ;;  %v4472_v55 = vpack.c.bf16 %v865_v53, %v861_v52  ;;  %v77_v52 = vld [vmem:[%s8074_s2 + $0x150] sm:$0xff] }
  0xba   :  { %4399 = vmatpush1.bf16.msra.mxu1 %v4398_v56  ;;  %v860_v56 = vld [vmem:[%s8077_s5 + $0x1d0] sm:$0xff] }
  0xbb   :  { %4400 = vmatprep.subr.bf16.mxu1 %v5400_v39  ;;  %v4474_v58 = vpack.c.bf16 %v864_v57, %v860_v56  ;;  %v45_v56 = vld [vmem:[%s8074_s2 + $0x50] sm:$0xff]  ;;  %v46_v57 = vld [vmem:[%s8074_s2 + $0x58] sm:$0xff] }
  0xbe   :  { %4402 = vmatpush1.bf16.msra.mxu1 %v4401_v59  ;;  %v51_v59 = vld [vmem:[%s8074_s2 + $0x80] sm:$0xff] }
  0xbf   :  { %4403 = vmatprep.subr.bf16.mxu1 %v5400_v39  ;;  %v6469_v61 = vpack.c.bf16 %v52_v60, %v51_v59  ;;  %v64_v59 = vld [vmem:[%s8074_s2 + $0xe8] sm:$0xff] }
  0xc1   :  { %4477 = vmatprep.subr.bf16.mxu0 %v6469_v61 }
  0xc2   :  { %4405 = vmatpush1.bf16.msra.mxu1 %v4404_v1  ;;  %v6480_v1 = vld [vmem:[%s8076_s4] sm:$0x1f] }
  0xc3   :  { %4406 = vmatprep.subr.bf16.mxu1 %v5400_v39  ;;  %v352_v3 = vrot.slane %v6480_v1, %v6475_v0 }
  0xc6   :  { %4408 = vmatpush1.bf16.msra.mxu1 %v4407_v5  ;;  %v68_v5 = vld [vmem:[%s8074_s2 + $0x108] sm:$0xff] }
  0xc7   :  { %4409 = vmatprep.subr.bf16.mxu1 %v5400_v39 }
  0xca   :  { %4411 = vmatpush1.bf16.msra.mxu1 %v4410_v9 }
  0xcb   :  { %4445 = vmatprep.subr.bf16.mxu1 %v4444_v10  ;;  %v6502_v10 = vpack.c.bf16 %v68_v5, %v67_v2  ;;  %v6651_v2 = vpack.c.bf16 %v46_v57, %v45_v56  ;;  %v6738_v56 = vsub.s32 2, %v6472_v63  ;;  %v6741_v57 = vsub.s32 1, %v6472_v63 }
  0xcd   :  { %797 = vmatmul.mubr.f32.vlgmr.msra.gmra.mrb[4].mxu1 %v6057_v43 }
  0xce   :  { %4447 = vmatpush1.bf16.msra.mxu1 %v4446_v15  ;;  %1023 = vmatprep.mubr.f32.mxu1 %v5401_v4  ;;  %v70_v15 = vld [vmem:[%s8074_s2 + $0x118] sm:$0xff] }
  0xcf   :  { %4449 = vmatprep.subr.bf16.mxu1 %v4448_v16  ;;  %v6516_v16 = vpack.c.bf16 %v54_v8, %v53_v41  ;;  %v6670_v8 = vpack.c.bf16 %v48_v7, %v47_v6 }
  0xd2   :  { %4451 = vmatpush1.bf16.msra.mxu1 %v4450_v21  ;;  %v6533_v21 = vpack.c.bf16 %v70_v15, %v69_v11  ;;  %v81_v11 = vld [vmem:[%s8074_s2 + $0x170] sm:$0xff]  ;;  %v82_v15 = vld [vmem:[%s8074_s2 + $0x178] sm:$0xff] }
  0xd3   :  { %4453 = vmatprep.subr.bf16.mxu1 %v4452_v22  ;;  %v71_v22 = vld [vmem:[%s8074_s2 + $0x120] sm:$0xff]  ;;  %v6685_v18 = vpack.c.bf16 %v82_v15, %v81_v11 }
  0xd4   :  { %v6561_v30 = vpack.c.bf16 %v72_v24, %v71_v22  ;;  %v6696_v22 = vpack.c.bf16 %v84_v20, %v83_v19 }
  0xd6   :  { %4455 = vmatpush1.bf16.msra.mxu1 %v4454_v27  ;;  %v40_v27 = vld [vmem:[%s8074_s2 + $0x28] sm:$0xff] }
  0xd7   :  { %4457 = vmatprep.subr.bf16.mxu1 %v4456_v28  ;;  %v57_v28 = vld [vmem:[%s8074_s2 + $0xb0] sm:$0xff]  ;;  %v6567_v32 = vpack.c.bf16 %v40_v27, %v39_v26 }
  0xda   :  { %4459 = vmatpush1.bf16.msra.mxu1 %v4458_v33  ;;  %v74_v33 = vld [vmem:[%s8074_s2 + $0x138] sm:$0xff] }
  0xdb   :  { %4461 = vmatprep.subr.bf16.mxu1 %v4460_v34  ;;  %v6574_v34 = vpack.c.bf16 %v58_v29, %v57_v28  ;;  %v65_v28 = vld [vmem:[%s8074_s2 + $0xf0] sm:$0xff]  ;;  %v66_v29 = vld [vmem:[%s8074_s2 + $0xf8] sm:$0xff] }
  0xde   :  { %4463 = vmatpush1.bf16.msra.mxu1 %v4462_v40  ;;  %v6589_v40 = vpack.c.bf16 %v74_v33, %v73_v31  ;;  %v367_v31 = vsub.s32 4, %v6472_v63  ;;  %v6708_v33 = vpack.c.bf16 %v66_v29, %v65_v28  ;;  %v6760_v28 = vld [vmem:[%s8072_s0 + $0x8] sm:$0xff] }
  0xdf   :  { %4465 = vmatprep.subr.bf16.mxu1 %v4464_v42  ;;  %v75_v42 = vld [vmem:[%s8074_s2 + $0x140] sm:$0xff] }
  0xe0   :  { %v6617_v50 = vpack.c.bf16 %v76_v46, %v75_v42  ;;  %v86_v42 = vld [vmem:[%s8074_s2 + $0x198] sm:$0xff] }
  0xe1   :  { %v6725_v46 = vpack.c.bf16 %v86_v42, %v85_v37  ;;  %v6777_v37 = vld [vmem:[%s8072_s0] sm:$0xff] }
  0xe2   :  { %4467 = vmatpush1.bf16.msra.mxu1 %v4466_v45  ;;  %v44_v45 = vld [vmem:[%s8074_s2 + $0x48] sm:$0xff] }
  0xe3   :  { %4469 = vmatprep.subr.bf16.mxu1 %v4468_v51  ;;  %v61_v51 = vld [vmem:[%s8074_s2 + $0xd0] sm:$0xff]  ;;  %v6623_v53 = vpack.c.bf16 %v44_v45, %v43_v48  ;;  %v368_v48 = vrot.slane %v6480_v1, %v367_v31  ;;  %v6766_v31 = vld [vmem:[%s8073_s1 + $0x18] sm:$0xff] }
  0xe6   :  { %4471 = vmatpush1.bf16.msra.mxu1 %v4470_v54  ;;  %v78_v54 = vld [vmem:[%s8074_s2 + $0x158] sm:$0xff] }
  0xe7   :  { %4473 = vmatprep.subr.bf16.mxu1 %v4472_v55  ;;  %v6630_v55 = vpack.c.bf16 %v62_v49, %v61_v51  ;;  %v6645_v60 = vpack.c.bf16 %v78_v54, %v77_v52  ;;  %v866_v54 = vld [vmem:[%s8078_s6] sm:$0xf] }
  0xea   :  { %4475 = vmatpush1.bf16.msra.mxu1 %v4474_v58  ;;  %v63_v58 = vld [vmem:[%s8074_s2 + $0xe0] sm:$0xff] }
  0xeb   :  { %4508 = vmatprep.subr.bf16.mxu1 %v5400_v39  ;;  %v6658_v5 = vpack.c.bf16 %v64_v59, %v63_v58  ;;  %v6744_v58 = vsub.s32 3, %v6472_v63  ;;  %v871_v59 = vrot.slane %v866_v54, %v6475_v0  ;;  %v6755_v63 = vld [vmem:[%s8073_s1 + $0x8] sm:$0xff] }
  0xed   :  { %v883_v6 = vrot.slane %v866_v54, %v6744_v58 }
 0x13f   :  { %v515_v9 = vpop.f32.mrb[0].mxu0 }
 0x140   :  { %v6509_v13 = vadd.f32 %v515_v9, %v352_v3  ;;  %v6511_v14 = vpop.f32.mrb[1].mxu0  ;;  %v80_v3 = vld [vmem:[%s8074_s2 + $0x168] sm:$0xff] }
 0x141   :  { %v6667_v41 = vpack.c.bf16 %v80_v3, %v79_v62  ;;  %v879_v62 = vrot.slane %v866_v54, %v6738_v56  ;;  %v875_v3 = vrot.slane %v866_v54, %v6741_v57 }
 0x142   :  { %953 = vmatmul.mubr.f32.vlgmr.msra.gmra.mrb[2].mxu0 %v6509_v13  ;;  %1024 = vmatmul.mubr.f32.vlgmr.msra.gmra.mrb[6].mxu1 %v6509_v13 }
 0x143   :  { %4510 = vmatpush1.bf16.msra.mxu1 %v6502_v10  ;;  %4479 = vmatpush3.bf16.msra.mxu0 %v6507_v12 }
 0x144   :  { %4511 = vmatprep.subr.bf16.mxu1 %v5400_v39  ;;  %4481 = vmatprep.subr.bf16.mxu0 %v6516_v16 }
 0x147   :  { %4513 = vmatpush1.bf16.msra.mxu1 %v6533_v21  ;;  %4483 = vmatpush3.bf16.msra.mxu0 %v6539_v23 }
 0x148   :  { %4514 = vmatprep.subr.bf16.mxu1 %v5400_v39  ;;  %4485 = vmatprep.subr.bf16.mxu0 %v6546_v25 }
 0x14b   :  { %4516 = vmatpush1.bf16.msra.mxu1 %v6561_v30  ;;  %4487 = vmatpush3.bf16.msra.mxu0 %v6567_v32 }
 0x14c   :  { %4517 = vmatprep.subr.bf16.mxu1 %v5400_v39  ;;  %4489 = vmatprep.subr.bf16.mxu0 %v6574_v34 }
 0x14f   :  { %4519 = vmatpush1.bf16.msra.mxu1 %v6589_v40  ;;  %4491 = vmatpush3.bf16.msra.mxu0 %v6595_v44 }
 0x150   :  { %4520 = vmatprep.subr.bf16.mxu1 %v5400_v39  ;;  %4493 = vmatprep.subr.bf16.mxu0 %v6602_v47 }
 0x153   :  { %4522 = vmatpush1.bf16.msra.mxu1 %v6617_v50  ;;  %4495 = vmatpush3.bf16.msra.mxu0 %v6623_v53 }
 0x154   :  { %4523 = vmatprep.subr.bf16.mxu1 %v5400_v39  ;;  %4497 = vmatprep.subr.bf16.mxu0 %v6630_v55 }
 0x157   :  { %4525 = vmatpush1.bf16.msra.mxu1 %v6645_v60  ;;  %4499 = vmatpush3.bf16.msra.mxu0 %v6651_v2 }
 0x158   :  { %v6672_v9 = vpop.f32.mrb[0].mxu1  ;;  %4526 = vmatprep.subr.bf16.mxu1 %v5400_v39  ;;  %4501 = vmatprep.subr.bf16.mxu0 %v6658_v5 }
 0x159   :  { %v6682_v17 = vpop.f32.mrb[1].mxu1 }
 0x15b   :  { %4528 = vmatpush1.bf16.msra.mxu1 %v6667_v41  ;;  %4503 = vmatpush3.bf16.msra.mxu0 %v6670_v8 }
 0x15c   :  { %4529 = vmatprep.subr.bf16.mxu1 %v5400_v39  ;;  %4505 = vmatprep.subr.bf16.mxu0 %v6708_v33 }
 0x15f   :  { %4531 = vmatpush1.bf16.msra.mxu1 %v6685_v18  ;;  %4507 = vmatpush3.bf16.msra.mxu0 %v6719_v38 }
 0x160   :  { %4532 = vmatprep.subr.bf16.mxu1 %v5400_v39  ;;  %4539 = vmatprep.subr.bf16.mxu0 %v6469_v61 }
 0x163   :  { %4534 = vmatpush1.bf16.msra.mxu1 %v6696_v22 }
 0x164   :  { %4535 = vmatprep.subr.bf16.mxu1 %v5400_v39 }
 0x167   :  { %4537 = vmatpush1.bf16.msra.mxu1 %v6725_v46 }
 0x168   :  { %4570 = vmatprep.subr.bf16.mxu1 %v5400_v39 }
 0x178   :  { %v3789_v24 = vpop.f32.mrb[2].mxu1 }
 0x179   :  { %v3790_v26 = vpop.f32.mrb[3].mxu1 }
 0x17a   :  { %v3791_v27 = vadd.f32 %v3790_v26, %v3789_v24 }
 0x17c   :  { %v729_v45 = vadd.f32 %v3791_v27, %v368_v48 }
 0x1a0   :  { %v798_v51 = vpop.f32.mrb[4].mxu1 }
 0x1a1   :  { %v6732_v49 = vadd.f32 %v798_v51, %v729_v45  ;;  %v800_v52 = vpop.f32.mrb[5].mxu1 }
 0x1a2   :  { %v3494_v52 = vld [vmem:[%s8077_s5 + $0x228] sm:$0xff] }
 0x215   :  { %v954_v7 = vpop.f32.mrb[2].mxu0  ;;  %v1025_v11 = vpop.f32.mrb[6].mxu1 }
 0x216   :  { %v955_v15 = vadd.f32 %v954_v7, %v871_v59  ;;  %v6750_v19 = vadd.f32 %v1025_v11, %v879_v62  ;;  %v956_v20 = vpop.f32.mrb[3].mxu0  ;;  %v1027_v24 = vpop.f32.mrb[7].mxu1  ;;  %v3489_v59 = vld [vmem:[%s8077_s5 + $0x200] sm:$0xff]  ;;  %v3502_v7 = vld [vmem:[%s8077_s5 + $0x268] sm:$0xff] }
 0x217   :  { %v957_v26 = vadd.f32 %v956_v20, %v875_v3  ;;  %v1028_v27 = vadd.f32 %v1027_v24, %v883_v6  ;;  %v3493_v62 = vld [vmem:[%s8077_s5 + $0x220] sm:$0xff]  ;;  %v3498_v6 = vld [vmem:[%s8077_s5 + $0x248] sm:$0xff] }
 0x218   :  { %v1030_v42 = vmul.f32 %v6777_v37, %v955_v15  ;;  %v1032_v48 = vmul.f32 %v6750_v19, %v6057_v43  ;;  %v3490_v43 = vld [vmem:[%s8077_s5 + $0x208] sm:$0xff]  ;;  %v6829_v3 = vld [vmem:[%s8073_s1] sm:$0xff]  ;;  %v4602_v11 = vpack.c.bf16 %v3493_v62, %v3489_v59  ;;  %v4604_v24 = vpack.c.bf16 %v3502_v7, %v3498_v6  ;;  %v3491_v59 = vld [vmem:[%s8077_s5 + $0x210] sm:$0xff] }
 0x219   :  { %v1031_v29 = vmul.f32 %v6760_v28, %v957_v26  ;;  %v1033_v36 = vmul.f32 %v6771_v35, %v1028_v27  ;;  %v1178_v45 = vmul.f32 %v957_v26, %v6755_v63  ;;  %v1180_v51 = vmul.f32 %v1028_v27, %v6766_v31  ;;  %v3497_v26 = vld [vmem:[%s8077_s5 + $0x240] sm:$0xff]  ;;  %v3495_v62 = vld [vmem:[%s8077_s5 + $0x230] sm:$0xff]  ;;  %v3514_v6 = vld [vmem:[%s8077_s5 + $0x2c8] sm:$0xff] }
 0x21a   :  { %v4600_v54 = vpack.c.bf16 %v3494_v52, %v3490_v43  ;;  %v1177_v20 = vmul.f32 %v955_v15, %v6829_v3  ;;  %v3501_v27 = vld [vmem:[%s8077_s5 + $0x260] sm:$0xff]  ;;  %v3510_v15 = vld [vmem:[%s8077_s5 + $0x2a8] sm:$0xff] }
 0x21b   :  { %1101 = vmatprep.mubr.f32.mxu0 %v1031_v29  ;;  %3487 = vmatprep.mubr.msk.f32.mxu1 %vm374_vm0, %v1033_v36  ;;  %v3506_v29 = vld [vmem:[%s8077_s5 + $0x288] sm:$0xff]  ;;  %v3492_v36 = vld [vmem:[%s8077_s5 + $0x218] sm:$0xff]  ;;  %v3509_v43 = vld [vmem:[%s8077_s5 + $0x2a0] sm:$0xff] }
 0x21c   :  { %1102 = vmatmul.mubr.f32.vlgmr.msra.gmra.mrb[4].mxu0 %v1030_v42  ;;  %1172 = vmatmul.mubr.f32.vlgmr.msra.gmra.mrb[8].mxu1 %v1032_v48  ;;  %v3496_v42 = vld [vmem:[%s8077_s5 + $0x238] sm:$0xff]  ;;  %v6862_v48 = vld [vmem:[%s8073_s1 + $0x10] sm:$0xff]  ;;  %v4608_v52 = vpack.c.bf16 %v3510_v15, %v3506_v29  ;;  %v3518_v7 = vld [vmem:[%s8077_s5 + $0x2e8] sm:$0xff] }
 0x21d   :  { %4541 = vmatpush3.bf16.msra.mxu0 %v6507_v12  ;;  %4572 = vmatpush1.bf16.msra.mxu1 %v6502_v10  ;;  %v3517_v29 = vld [vmem:[%s8077_s5 + $0x2e0] sm:$0xff]  ;;  %v1179_v15 = vmul.f32 %v6750_v19, %v6862_v48  ;;  %v3526_v19 = vld [vmem:[%s8077_s5 + $0x328] sm:$0xff] }
 0x21e   :  { %1248 = vmatprep.mubr.f32.mxu0 %v1178_v45  ;;  %3488 = vmatprep.mubr.msk.f32.mxu1 %vm374_vm0, %v1180_v51  ;;  %v4606_v45 = vpack.c.bf16 %v3501_v27, %v3497_v26  ;;  %v3505_v51 = vld [vmem:[%s8077_s5 + $0x280] sm:$0xff]  ;;  %v4634_v26 = vpack.c.bf16 %v3495_v62, %v3491_v59 }
 0x21f   :  { %4543 = vmatprep.subr.bf16.mxu0 %v6516_v16  ;;  %4573 = vmatprep.subr.bf16.mxu1 %v5400_v39  ;;  %v3513_v27 = vld [vmem:[%s8077_s5 + $0x2c0] sm:$0xff] }
 0x220   :  { %v4614_v59 = vpack.c.bf16 %v3517_v29, %v3513_v27  ;;  %v3534_v27 = vld [vmem:[%s8077_s5 + $0x368] sm:$0xff]  ;;  %v3516_v29 = vld [vmem:[%s8077_s5 + $0x2d8] sm:$0xff] }
 0x221   :  { %4545 = vmatpush3.bf16.msra.mxu0 %v6539_v23  ;;  %4575 = vmatpush1.bf16.msra.mxu1 %v6533_v21 }
 0x222   :  { %4547 = vmatprep.subr.bf16.mxu0 %v6546_v25  ;;  %4576 = vmatprep.subr.bf16.mxu1 %v5400_v39 }
 0x225   :  { %4549 = vmatpush3.bf16.msra.mxu0 %v6567_v32  ;;  %4578 = vmatpush1.bf16.msra.mxu1 %v6561_v30 }
 0x226   :  { %4551 = vmatprep.subr.bf16.mxu0 %v6574_v34  ;;  %4579 = vmatprep.subr.bf16.mxu1 %v5400_v39 }
 0x229   :  { %4553 = vmatpush3.bf16.msra.mxu0 %v6595_v44  ;;  %4581 = vmatpush1.bf16.msra.mxu1 %v6589_v40 }
 0x22a   :  { %4555 = vmatprep.subr.bf16.mxu0 %v6602_v47  ;;  %4582 = vmatprep.subr.bf16.mxu1 %v5400_v39 }
 0x22d   :  { %4557 = vmatpush3.bf16.msra.mxu0 %v6623_v53  ;;  %4584 = vmatpush1.bf16.msra.mxu1 %v6617_v50 }
 0x22e   :  { %4559 = vmatprep.subr.bf16.mxu0 %v6630_v55  ;;  %4585 = vmatprep.subr.bf16.mxu1 %v5400_v39 }
 0x231   :  { %4561 = vmatpush3.bf16.msra.mxu0 %v6651_v2  ;;  %4587 = vmatpush1.bf16.msra.mxu1 %v6645_v60 }
 0x232   :  { %4563 = vmatprep.subr.bf16.mxu0 %v6658_v5  ;;  %4588 = vmatprep.subr.bf16.mxu1 %v5400_v39 }
 0x235   :  { %4565 = vmatpush3.bf16.msra.mxu0 %v6670_v8  ;;  %4590 = vmatpush1.bf16.msra.mxu1 %v6667_v41 }
 0x236   :  { %4567 = vmatprep.subr.bf16.mxu0 %v6708_v33  ;;  %4591 = vmatprep.subr.bf16.mxu1 %v5400_v39 }
 0x239   :  { %4569 = vmatpush3.bf16.msra.mxu0 %v6719_v38  ;;  %4593 = vmatpush1.bf16.msra.mxu1 %v6685_v18 }
 0x23a   :  { %4594 = vmatprep.subr.bf16.mxu1 %v5400_v39  ;;  %4601 = vmatprep.subr.bf16.mxu0 %v4600_v54  ;;  %v4632_v54 = vpack.c.bf16 %v3496_v42, %v3492_v36  ;;  %v4612_v36 = vpack.c.bf16 %v3518_v7, %v3514_v6  ;;  %v3521_v6 = vld [vmem:[%s8077_s5 + $0x300] sm:$0xff] }
 0x23b   :  { %v3525_v7 = vld [vmem:[%s8077_s5 + $0x320] sm:$0xff] }
 0x23c   :  { %1249 = vmatmul.mubr.f32.vlgmr.msra.gmra.mrb[6].mxu0 %v1177_v20  ;;  %v3504_v20 = vld [vmem:[%s8077_s5 + $0x278] sm:$0xff] }
 0x23d   :  { %4596 = vmatpush1.bf16.msra.mxu1 %v6696_v22  ;;  %4603 = vmatpush1.bf16.msra.mxu0 %v4602_v11  ;;  %v3500_v11 = vld [vmem:[%s8077_s5 + $0x258] sm:$0xff] }
 0x23e   :  { %4597 = vmatprep.subr.bf16.mxu1 %v5400_v39  ;;  %4605 = vmatprep.subr.bf16.mxu0 %v4604_v24  ;;  %v4610_v24 = vpack.c.bf16 %v3509_v43, %v3505_v51  ;;  %v4636_v42 = vpack.c.bf16 %v3504_v20, %v3500_v11  ;;  %v3503_v51 = vld [vmem:[%s8077_s5 + $0x270] sm:$0xff]  ;;  %v3522_v43 = vld [vmem:[%s8077_s5 + $0x308] sm:$0xff] }
 0x23f   :  { %1482 = vmatprep.mubr.f32.mxu0 %v5401_v4  ;;  %v4616_v11 = vpack.c.bf16 %v3526_v19, %v3522_v43  ;;  %v3533_v43 = vld [vmem:[%s8077_s5 + $0x360] sm:$0xff] }
 0x241   :  { %4599 = vmatpush1.bf16.msra.mxu1 %v6725_v46  ;;  %4607 = vmatpush1.bf16.msra.mxu0 %v4606_v45  ;;  %v3499_v45 = vld [vmem:[%s8077_s5 + $0x250] sm:$0xff] }
 0x242   :  { %4609 = vmatprep.subr.bf16.mxu0 %v4608_v52  ;;  %4633 = vmatprep.subr.bf16.mxu1 %v4632_v54  ;;  %v3508_v52 = vld [vmem:[%s8077_s5 + $0x298] sm:$0xff]  ;;  %v4638_v62 = vpack.c.bf16 %v3503_v51, %v3499_v45  ;;  %v3529_v51 = vld [vmem:[%s8077_s5 + $0x340] sm:$0xff] }
 0x243   :  { %v3512_v54 = vld [vmem:[%s8077_s5 + $0x2b8] sm:$0xff] }
 0x244   :  { %1319 = vmatmul.mubr.f32.vlgmr.msra.gmra.mrb[10].mxu1 %v1179_v15  ;;  %v4640_v20 = vpack.c.bf16 %v3512_v54, %v3508_v52  ;;  %v3507_v15 = vld [vmem:[%s8077_s5 + $0x290] sm:$0xff] }
 0x245   :  { %4611 = vmatpush1.bf16.msra.mxu0 %v4610_v24  ;;  %4635 = vmatpush1.bf16.msra.mxu1 %v4634_v26  ;;  %v3511_v24 = vld [vmem:[%s8077_s5 + $0x2b0] sm:$0xff]  ;;  %v3530_v26 = vld [vmem:[%s8077_s5 + $0x348] sm:$0xff] }
 0x246   :  { %4613 = vmatprep.subr.bf16.mxu0 %v4612_v36  ;;  %4637 = vmatprep.subr.bf16.mxu1 %v4636_v42  ;;  %v3520_v36 = vld [vmem:[%s8077_s5 + $0x2f8] sm:$0xff]  ;;  %v4618_v42 = vpack.c.bf16 %v3525_v7, %v3521_v6  ;;  %v4642_v45 = vpack.c.bf16 %v3511_v24, %v3507_v15  ;;  %v4620_v19 = vpack.c.bf16 %v3534_v27, %v3530_v26  ;;  %v3515_v54 = vld [vmem:[%s8077_s5 + $0x2d0] sm:$0xff]  ;;  %v3542_v6 = vld [vmem:[%s8077_s5 + $0x3a8] sm:$0xff] }
 0x247   :  { %1553 = vmatprep.mubr.f32.mxu1 %v5401_v4  ;;  %v4644_v52 = vpack.c.bf16 %v3520_v36, %v3516_v29  ;;  %v3524_v7 = vld [vmem:[%s8077_s5 + $0x318] sm:$0xff]  ;;  %v3537_v24 = vld [vmem:[%s8077_s5 + $0x380] sm:$0xff]  ;;  %v3523_v36 = vld [vmem:[%s8077_s5 + $0x310] sm:$0xff] }
 0x248   :  { %v3541_v26 = vld [vmem:[%s8077_s5 + $0x3a0] sm:$0xff] }
 0x249   :  { %4615 = vmatpush1.bf16.msra.mxu0 %v4614_v59  ;;  %4639 = vmatpush1.bf16.msra.mxu1 %v4638_v62  ;;  %v3519_v59 = vld [vmem:[%s8077_s5 + $0x2f0] sm:$0xff]  ;;  %v3538_v62 = vld [vmem:[%s8077_s5 + $0x388] sm:$0xff] }
 0x24a   :  { %4617 = vmatprep.subr.bf16.mxu0 %v4616_v11  ;;  %4641 = vmatprep.subr.bf16.mxu1 %v4640_v20  ;;  %v3528_v11 = vld [vmem:[%s8077_s5 + $0x338] sm:$0xff]  ;;  %v4622_v20 = vpack.c.bf16 %v3533_v43, %v3529_v51  ;;  %v4646_v15 = vpack.c.bf16 %v3519_v59, %v3515_v54  ;;  %v4624_v27 = vpack.c.bf16 %v3542_v6, %v3538_v62  ;;  %v3550_v51 = vld [vmem:[%s8077_s5 + $0x3e8] sm:$0xff]  ;;  %v3545_v59 = vld [vmem:[%s8077_s5 + $0x3c0] sm:$0xff] }
 0x24b   :  { %v4648_v29 = vpack.c.bf16 %v3528_v11, %v3524_v7  ;;  %v3532_v43 = vld [vmem:[%s8077_s5 + $0x358] sm:$0xff]  ;;  %v3549_v7 = vld [vmem:[%s8077_s5 + $0x3e0] sm:$0xff]  ;;  %v3531_v11 = vld [vmem:[%s8077_s5 + $0x350] sm:$0xff] }
 0x24d   :  { %4619 = vmatpush1.bf16.msra.mxu0 %v4618_v42  ;;  %4643 = vmatpush1.bf16.msra.mxu1 %v4642_v45  ;;  %v3527_v42 = vld [vmem:[%s8077_s5 + $0x330] sm:$0xff]  ;;  %v3546_v45 = vld [vmem:[%s8077_s5 + $0x3c8] sm:$0xff] }
 0x24e   :  { %4621 = vmatprep.subr.bf16.mxu0 %v4620_v19  ;;  %4645 = vmatprep.subr.bf16.mxu1 %v4644_v52  ;;  %v3536_v19 = vld [vmem:[%s8077_s5 + $0x378] sm:$0xff]  ;;  %v4626_v52 = vpack.c.bf16 %v3541_v26, %v3537_v24  ;;  %v4650_v54 = vpack.c.bf16 %v3527_v42, %v3523_v36  ;;  %v4628_v62 = vpack.c.bf16 %v3550_v51, %v3546_v45  ;;  %v3539_v42 = vld [vmem:[%s8077_s5 + $0x390] sm:$0xff] }
 0x24f   :  { %v4652_v6 = vpack.c.bf16 %v3536_v19, %v3532_v43  ;;  %v3544_v24 = vld [vmem:[%s8077_s5 + $0x3b8] sm:$0xff]  ;;  %v4630_v26 = vpack.c.bf16 %v3549_v7, %v3545_v59  ;;  %v3543_v45 = vld [vmem:[%s8077_s5 + $0x3b0] sm:$0xff]  ;;  %v3561_v7 = vld [vmem:[%s8077_s5 + $0x428] sm:$0xff] }
 0x250   :  { %v3548_v51 = vld [vmem:[%s8077_s5 + $0x3d8] sm:$0xff]  ;;  %v4658_v19 = vpack.c.bf16 %v3543_v45, %v3539_v42  ;;  %v3547_v59 = vld [vmem:[%s8077_s5 + $0x3d0] sm:$0xff] }
 0x251   :  { %4623 = vmatpush1.bf16.msra.mxu0 %v4622_v20  ;;  %4647 = vmatpush1.bf16.msra.mxu1 %v4646_v15  ;;  %v3535_v20 = vld [vmem:[%s8077_s5 + $0x370] sm:$0xff]  ;;  %v3540_v15 = vld [vmem:[%s8077_s5 + $0x398] sm:$0xff] }
 0x252   :  { %4625 = vmatprep.subr.bf16.mxu0 %v4624_v27  ;;  %4649 = vmatprep.subr.bf16.mxu1 %v4648_v29  ;;  %v4654_v27 = vpack.c.bf16 %v3535_v20, %v3531_v11  ;;  %v356_v29 = vrot.slane %v6480_v1, %v6741_v57  ;;  %v4656_v36 = vpack.c.bf16 %v3544_v24, %v3540_v15  ;;  %v3552_v43 = vld [vmem:[%s8077_s5 + $0x3f8] sm:$0xff] }
 0x255   :  { %4627 = vmatpush1.bf16.msra.mxu0 %v4626_v52  ;;  %4651 = vmatpush1.bf16.msra.mxu1 %v4650_v54  ;;  %v7024_v52 = vadd.f32 %v6511_v14, %v356_v29  ;;  %v4660_v54 = vpack.c.bf16 %v3552_v43, %v3548_v51  ;;  %v3557_v14 = vld [vmem:[%s8077_s5 + $0x408] sm:$0xff] }
 0x256   :  { %4629 = vmatprep.subr.bf16.mxu0 %v4628_v62  ;;  %4653 = vmatprep.subr.bf16.mxu1 %v4652_v6  ;;  %v3551_v62 = vld [vmem:[%s8077_s5 + $0x3f0] sm:$0xff]  ;;  %v4788_v11 = vpack.c.bf16 %v3561_v7, %v3557_v14 }
 0x257   :  { %v4662_v6 = vpack.c.bf16 %v3551_v62, %v3547_v59 }
 0x259   :  { %4631 = vmatpush1.bf16.msra.mxu0 %v4630_v26  ;;  %4655 = vmatpush1.bf16.msra.mxu1 %v4654_v27 }
 0x25a   :  { %4657 = vmatprep.subr.bf16.mxu1 %v4656_v36  ;;  %4665 = vmatprep.subr.bf16.mxu0 %v6469_v61 }
 0x25c   :  { %1483 = vmatmul.mubr.f32.vlgmr.msra.gmra.mrb[8].mxu0 %v7024_v52 }
 0x25d   :  { %4659 = vmatpush1.bf16.msra.mxu1 %v4658_v19  ;;  %4667 = vmatpush3.bf16.msra.mxu0 %v6507_v12 }
 0x25e   :  { %4661 = vmatprep.subr.bf16.mxu1 %v4660_v54  ;;  %4669 = vmatprep.subr.bf16.mxu0 %v6516_v16 }
 0x261   :  { %4663 = vmatpush1.bf16.msra.mxu1 %v4662_v6  ;;  %4671 = vmatpush3.bf16.msra.mxu0 %v6539_v23  ;;  %v3553_v6 = vld [vmem:[%s8078_s6 + $0x4] sm:$0xf] }
 0x262   :  { %4696 = vmatprep.subr.bf16.mxu1 %v5400_v39  ;;  %4673 = vmatprep.subr.bf16.mxu0 %v6546_v25  ;;  %v1401_v14 = vrot.slane %v3553_v6, %v6475_v0  ;;  %v1405_v7 = vrot.slane %v3553_v6, %v6741_v57 }
 0x264   :  { %1554 = vmatmul.mubr.f32.vlgmr.msra.gmra.mrb[12].mxu1 %v7024_v52 }
 0x265   :  { %4698 = vmatpush1.bf16.msra.mxu1 %v6502_v10  ;;  %4675 = vmatpush3.bf16.msra.mxu0 %v6567_v32 }
 0x266   :  { %4699 = vmatprep.subr.bf16.mxu1 %v5400_v39  ;;  %4677 = vmatprep.subr.bf16.mxu0 %v6574_v34 }
 0x269   :  { %4701 = vmatpush1.bf16.msra.mxu1 %v6533_v21  ;;  %4679 = vmatpush3.bf16.msra.mxu0 %v6595_v44 }
 0x26a   :  { %4702 = vmatprep.subr.bf16.mxu1 %v5400_v39  ;;  %4681 = vmatprep.subr.bf16.mxu0 %v6602_v47 }
 0x26d   :  { %4704 = vmatpush1.bf16.msra.mxu1 %v6561_v30  ;;  %4683 = vmatpush3.bf16.msra.mxu0 %v6623_v53 }
 0x26e   :  { %4705 = vmatprep.subr.bf16.mxu1 %v5400_v39  ;;  %4685 = vmatprep.subr.bf16.mxu0 %v6630_v55 }
 0x271   :  { %4707 = vmatpush1.bf16.msra.mxu1 %v6589_v40  ;;  %4687 = vmatpush3.bf16.msra.mxu0 %v6651_v2 }
 0x272   :  { %4708 = vmatprep.subr.bf16.mxu1 %v5400_v39  ;;  %4689 = vmatprep.subr.bf16.mxu0 %v6658_v5 }
 0x275   :  { %4710 = vmatpush1.bf16.msra.mxu1 %v6617_v50  ;;  %4691 = vmatpush3.bf16.msra.mxu0 %v6670_v8 }
 0x276   :  { %4711 = vmatprep.subr.bf16.mxu1 %v5400_v39  ;;  %4693 = vmatprep.subr.bf16.mxu0 %v6708_v33 }
 0x279   :  { %4713 = vmatpush1.bf16.msra.mxu1 %v6645_v60  ;;  %4695 = vmatpush3.bf16.msra.mxu0 %v6719_v38 }
 0x27a   :  { %4714 = vmatprep.subr.bf16.mxu1 %v5400_v39  ;;  %4727 = vmatprep.subr.bf16.mxu0 %v6469_v61 }
 0x27d   :  { %4716 = vmatpush1.bf16.msra.mxu1 %v6667_v41 }
 0x27e   :  { %4717 = vmatprep.subr.bf16.mxu1 %v5400_v39 }
 0x281   :  { %4719 = vmatpush1.bf16.msra.mxu1 %v6685_v18 }
 0x282   :  { %4720 = vmatprep.subr.bf16.mxu1 %v5400_v39 }
 0x285   :  { %4722 = vmatpush1.bf16.msra.mxu1 %v6696_v22 }
 0x286   :  { %4723 = vmatprep.subr.bf16.mxu1 %v5400_v39 }
 0x289   :  { %4725 = vmatpush1.bf16.msra.mxu1 %v6725_v46 }
 0x28a   :  { %4789 = vmatprep.subr.bf16.mxu1 %v4788_v11 }
 0x2ef   :  { %v3824_v20 = vpop.f32.mrb[4].mxu0  ;;  %v1173_v15 = vpop.f32.mrb[8].mxu1 }
 0x2f0   :  { %v3825_v24 = vpop.f32.mrb[5].mxu0  ;;  %v1175_v26 = vpop.f32.mrb[9].mxu1 }
 0x2f1   :  { %v3826_v27 = vadd.f32 %v3825_v24, %v3824_v20 }
 0x2f3   :  { %v1174_v29 = vadd.f32 %v3826_v27, %v1173_v15 }
 0x2f5   :  { %v1324_v59 = vmul.f32 %v1174_v29, %v1174_v29  ;;  %v1409_v29 = vrot.slane %v3553_v6, %v6738_v56 }
 0x30f   :  { %v3859_v36 = vpop.f32.mrb[6].mxu0 }
 0x310   :  { %v3860_v42 = vpop.f32.mrb[7].mxu0 }
 0x311   :  { %v3861_v45 = vadd.f32 %v3860_v42, %v3859_v36  ;;  %v1413_v42 = vrot.slane %v3553_v6, %v6744_v58  ;;  %v3569_v6 = vld [vmem:[%s8077_s5 + $0x468] sm:$0xff] }
 0x317   :  { %v1320_v51 = vpop.f32.mrb[10].mxu1 }
 0x318   :  { %v1321_v43 = vadd.f32 %v3861_v45, %v1320_v51  ;;  %v1322_v19 = vpop.f32.mrb[11].mxu1 }
 0x319   :  { %v3556_v19 = vld [vmem:[%s8077_s5 + $0x400] sm:$0xff] }
 0x31a   :  { %v1325_v54 = vmul.f32 %v1321_v43, %v1321_v43 }
 0x31c   :  { %v1326_v62 = vadd.f32 %v1325_v54, %v1324_v59  ;;  %v3560_v54 = vld [vmem:[%s8077_s5 + $0x420] sm:$0xff] }
 0x31e   :  { %1327 = vadd.xlane.f32.xlu0 %v1326_v62  ;;  %v3565_v62 = vld [vmem:[%s8077_s5 + $0x448] sm:$0xff] }
 0x32f   :  { %v1484_v11 = vpop.f32.mrb[8].mxu0 }
 0x330   :  { %v7082_v20 = vadd.f32 %v1484_v11, %v1401_v14  ;;  %v1486_v15 = vpop.f32.mrb[9].mxu0  ;;  %v7114_v11 = vld [vmem:[%s8072_s0 + $0x10] sm:$0xff] }
 0x331   :  { %v1487_v24 = vadd.f32 %v1486_v15, %v1405_v7  ;;  %v4790_v7 = vpack.c.bf16 %v3560_v54, %v3556_v19  ;;  %v3581_v19 = vld [vmem:[%s8077_s5 + $0x4c8] sm:$0xff] }
 0x332   :  { %v1560_v27 = vmul.f32 %v6777_v37, %v7082_v20  ;;  %v3585_v54 = vld [vmem:[%s8077_s5 + $0x4e8] sm:$0xff] }
 0x333   :  { %v1561_v26 = vmul.f32 %v6760_v28, %v1487_v24  ;;  %v1708_v36 = vmul.f32 %v1487_v24, %v6755_v63  ;;  %v4792_v24 = vpack.c.bf16 %v3569_v6, %v3565_v62  ;;  %v4800_v6 = vpack.c.bf16 %v3585_v54, %v3581_v19  ;;  %v3596_v19 = vld [vmem:[%s8077_s5 + $0x540] sm:$0xff] }
 0x334   :  { %v3600_v54 = vld [vmem:[%s8077_s5 + $0x560] sm:$0xff] }
 0x335   :  { %1631 = vmatprep.mubr.f32.mxu0 %v1561_v26  ;;  %v3564_v26 = vld [vmem:[%s8077_s5 + $0x440] sm:$0xff] }
 0x336   :  { %1632 = vmatmul.mubr.f32.vlgmr.msra.gmra.mrb[10].mxu0 %v1560_v27  ;;  %v3573_v27 = vld [vmem:[%s8077_s5 + $0x488] sm:$0xff] }
 0x337   :  { %4729 = vmatpush3.bf16.msra.mxu0 %v6507_v12  ;;  %v1555_v45 = vpop.f32.mrb[12].mxu1  ;;  %1778 = vmatprep.mubr.f32.mxu0 %v1708_v36 }
 0x338   :  { %v7091_v51 = vadd.f32 %v1555_v45, %v1409_v29  ;;  %v1557_v43 = vpop.f32.mrb[13].mxu1  ;;  %4731 = vmatprep.subr.bf16.mxu0 %v6516_v16  ;;  %v3577_v29 = vld [vmem:[%s8077_s5 + $0x4a8] sm:$0xff]  ;;  %v3572_v45 = vld [vmem:[%s8077_s5 + $0x480] sm:$0xff] }
 0x339   :  { %v7100_v59 = vadd.f32 %v1557_v43, %v1413_v42  ;;  %v4796_v42 = vpack.c.bf16 %v3577_v29, %v3573_v27  ;;  %v3576_v43 = vld [vmem:[%s8077_s5 + $0x4a0] sm:$0xff] }
 0x33a   :  { %v1562_v15 = vmul.f32 %v7114_v11, %v7091_v51  ;;  %v4798_v62 = vpack.c.bf16 %v3576_v43, %v3572_v45  ;;  %v3588_v27 = vld [vmem:[%s8077_s5 + $0x500] sm:$0xff] }
 0x33b   :  { %v1563_v14 = vmul.f32 %v6771_v35, %v7100_v59  ;;  %4733 = vmatpush3.bf16.msra.mxu0 %v6539_v23  ;;  %v3568_v35 = vld [vmem:[%s8077_s5 + $0x460] sm:$0xff] }
 0x33c   :  { %4735 = vmatprep.subr.bf16.mxu0 %v6546_v25  ;;  %v4794_v36 = vpack.c.bf16 %v3568_v35, %v3564_v26  ;;  %v3592_v29 = vld [vmem:[%s8077_s5 + $0x520] sm:$0xff] }
 0x33d   :  { %3554 = vmatprep.mubr.msk.f32.mxu1 %vm374_vm0, %v1563_v14  ;;  %v3580_v14 = vld [vmem:[%s8077_s5 + $0x4c0] sm:$0xff]  ;;  %v4806_v45 = vpack.c.bf16 %v3592_v29, %v3588_v27  ;;  %v1707_v27 = vmul.f32 %v7082_v20, %v6829_v3  ;;  %v3559_v20 = vld [vmem:[%s8077_s5 + $0x418] sm:$0xff] }
 0x33e   :  { %1702 = vmatmul.mubr.f32.vlgmr.msra.gmra.mrb[14].mxu1 %v1562_v15  ;;  %v3589_v15 = vld [vmem:[%s8077_s5 + $0x508] sm:$0xff] }
 0x33f   :  { %4737 = vmatpush3.bf16.msra.mxu0 %v6567_v32  ;;  %4791 = vmatpush1.bf16.msra.mxu1 %v4790_v7  ;;  %v3584_v7 = vld [vmem:[%s8077_s5 + $0x4e0] sm:$0xff] }
 0x340   :  { %4739 = vmatprep.subr.bf16.mxu0 %v6574_v34  ;;  %4793 = vmatprep.subr.bf16.mxu1 %v4792_v24  ;;  %v3593_v24 = vld [vmem:[%s8077_s5 + $0x528] sm:$0xff]  ;;  %v4802_v26 = vpack.c.bf16 %v3584_v7, %v3580_v14  ;;  %v4810_v14 = vpack.c.bf16 %v3600_v54, %v3596_v19  ;;  %v3563_v19 = vld [vmem:[%s8077_s5 + $0x438] sm:$0xff] }
 0x341   :  { %2017 = vmatprep.mubr.f32.mxu1 %v5401_v4  ;;  %v4804_v35 = vpack.c.bf16 %v3593_v24, %v3589_v15  ;;  %v3604_v15 = vld [vmem:[%s8077_s5 + $0x580] sm:$0xff]  ;;  %v4820_v54 = vpack.c.bf16 %v3563_v19, %v3559_v20  ;;  %v3587_v20 = vld [vmem:[%s8077_s5 + $0x4f8] sm:$0xff] }
 0x342   :  { %v3608_v24 = vld [vmem:[%s8077_s5 + $0x5a0] sm:$0xff] }
 0x343   :  { %4741 = vmatpush3.bf16.msra.mxu0 %v6595_v44  ;;  %4795 = vmatpush1.bf16.msra.mxu1 %v4794_v36  ;;  %v3597_v36 = vld [vmem:[%s8077_s5 + $0x548] sm:$0xff]  ;;  %v4814_v29 = vpack.c.bf16 %v3608_v24, %v3604_v15 }
 0x344   :  { %4743 = vmatprep.subr.bf16.mxu0 %v6602_v47  ;;  %4797 = vmatprep.subr.bf16.mxu1 %v4796_v42  ;;  %v3601_v42 = vld [vmem:[%s8077_s5 + $0x568] sm:$0xff] }
 0x345   :  { %v4808_v43 = vpack.c.bf16 %v3601_v42, %v3597_v36  ;;  %v1710_v36 = vmul.f32 %v7100_v59, %v6766_v31  ;;  %v360_v59 = vrot.slane %v6480_v1, %v6738_v56 }
 0x347   :  { %4745 = vmatpush3.bf16.msra.mxu0 %v6623_v53  ;;  %4799 = vmatpush1.bf16.msra.mxu1 %v4798_v62  ;;  %v3605_v62 = vld [vmem:[%s8077_s5 + $0x588] sm:$0xff]  ;;  %v7241_v15 = vadd.f32 %v6672_v9, %v360_v59  ;;  %v3582_v59 = vld [vmem:[%s8077_s5 + $0x4d0] sm:$0xff] }
 0x348   :  { %4747 = vmatprep.subr.bf16.mxu0 %v6630_v55  ;;  %4801 = vmatprep.subr.bf16.mxu1 %v4800_v6  ;;  %v3609_v6 = vld [vmem:[%s8077_s5 + $0x5a8] sm:$0xff] }
 0x349   :  { %v4812_v7 = vpack.c.bf16 %v3609_v6, %v3605_v62  ;;  %v3558_v62 = vld [vmem:[%s8077_s5 + $0x410] sm:$0xff] }
 0x34a   :  { %v3562_v6 = vld [vmem:[%s8077_s5 + $0x430] sm:$0xff] }
 0x34b   :  { %4749 = vmatpush3.bf16.msra.mxu0 %v6651_v2  ;;  %4803 = vmatpush1.bf16.msra.mxu1 %v4802_v26  ;;  %v3613_v26 = vld [vmem:[%s8077_s5 + $0x5c8] sm:$0xff]  ;;  %v4822_v1 = vpack.c.bf16 %v3562_v6, %v3558_v62  ;;  %v3591_v62 = vld [vmem:[%s8077_s5 + $0x518] sm:$0xff] }
 0x34c   :  { %4751 = vmatprep.subr.bf16.mxu0 %v6658_v5  ;;  %4805 = vmatprep.subr.bf16.mxu1 %v4804_v35  ;;  %v3617_v35 = vld [vmem:[%s8077_s5 + $0x5e8] sm:$0xff]  ;;  %v3595_v6 = vld [vmem:[%s8077_s5 + $0x538] sm:$0xff] }
 0x34d   :  { %v4816_v42 = vpack.c.bf16 %v3617_v35, %v3613_v26  ;;  %v3566_v26 = vld [vmem:[%s8077_s5 + $0x450] sm:$0xff] }
 0x34e   :  { %v3570_v35 = vld [vmem:[%s8077_s5 + $0x470] sm:$0xff] }
 0x34f   :  { %4753 = vmatpush3.bf16.msra.mxu0 %v6670_v8  ;;  %4807 = vmatpush1.bf16.msra.mxu1 %v4806_v45  ;;  %v3612_v45 = vld [vmem:[%s8077_s5 + $0x5c0] sm:$0xff]  ;;  %v4826_v9 = vpack.c.bf16 %v3570_v35, %v3566_v26  ;;  %v3599_v26 = vld [vmem:[%s8077_s5 + $0x558] sm:$0xff] }
 0x350   :  { %4755 = vmatprep.subr.bf16.mxu0 %v6708_v33  ;;  %4809 = vmatprep.subr.bf16.mxu1 %v4808_v43  ;;  %v3616_v43 = vld [vmem:[%s8077_s5 + $0x5e0] sm:$0xff]  ;;  %v3603_v35 = vld [vmem:[%s8077_s5 + $0x578] sm:$0xff] }
 0x351   :  { %v4818_v31 = vpack.c.bf16 %v3616_v43, %v3612_v45  ;;  %v3578_v45 = vld [vmem:[%s8077_s5 + $0x4b0] sm:$0xff]  ;;  %v3583_v43 = vld [vmem:[%s8077_s5 + $0x4d8] sm:$0xff] }
 0x353   :  { %4757 = vmatpush3.bf16.msra.mxu0 %v6719_v38  ;;  %4811 = vmatpush1.bf16.msra.mxu1 %v4810_v14  ;;  %v3567_v14 = vld [vmem:[%s8077_s5 + $0x458] sm:$0xff] }
 0x354   :  { %4758 = vmatprep.subr.bf16.mxu0 %v5400_v39  ;;  %4813 = vmatprep.subr.bf16.mxu1 %v4812_v7  ;;  %v3571_v7 = vld [vmem:[%s8077_s5 + $0x478] sm:$0xff] }
 0x355   :  { %v4824_v24 = vpack.c.bf16 %v3571_v7, %v3567_v14  ;;  %v4836_v7 = vpack.c.bf16 %v3595_v6, %v3591_v62 }
 0x356   :  { %1779 = vmatmul.mubr.f32.vlgmr.msra.gmra.mrb[12].mxu0 %v1707_v27  ;;  %v3575_v27 = vld [vmem:[%s8077_s5 + $0x498] sm:$0xff] }
 0x357   :  { %4760 = vmatpush1.bf16.msra.mxu0 %v6502_v10  ;;  %3555 = vmatprep.mubr.msk.f32.mxu0 %vm374_vm0, %v1710_v36 }
 0x358   :  { %4815 = vmatpush1.bf16.msra.mxu1 %v4814_v29  ;;  %4761 = vmatprep.subr.bf16.mxu0 %v5400_v39  ;;  %v3579_v29 = vld [vmem:[%s8077_s5 + $0x4b8] sm:$0xff] }
 0x359   :  { %4817 = vmatprep.subr.bf16.mxu1 %v4816_v42  ;;  %v4828_v36 = vpack.c.bf16 %v3579_v29, %v3575_v27  ;;  %v3574_v42 = vld [vmem:[%s8077_s5 + $0x490] sm:$0xff]  ;;  %v4840_v29 = vpack.c.bf16 %v3603_v35, %v3599_v26 }
 0x35a   :  { %v4830_v19 = vpack.c.bf16 %v3578_v45, %v3574_v42  ;;  %v3607_v42 = vld [vmem:[%s8077_s5 + $0x598] sm:$0xff] }
 0x35b   :  { %4763 = vmatpush1.bf16.msra.mxu0 %v6533_v21  ;;  %v3611_v45 = vld [vmem:[%s8077_s5 + $0x5b8] sm:$0xff] }
 0x35c   :  { %4819 = vmatpush1.bf16.msra.mxu1 %v4818_v31  ;;  %4764 = vmatprep.subr.bf16.mxu0 %v5400_v39  ;;  %v4832_v31 = vpack.c.bf16 %v3587_v20, %v3583_v43  ;;  %v4844_v20 = vpack.c.bf16 %v3611_v45, %v3607_v42 }
 0x35d   :  { %4821 = vmatprep.subr.bf16.mxu1 %v4820_v54  ;;  %v3586_v54 = vld [vmem:[%s8077_s5 + $0x4f0] sm:$0xff] }
 0x35e   :  { %v4834_v14 = vpack.c.bf16 %v3586_v54, %v3582_v59  ;;  %v3615_v59 = vld [vmem:[%s8077_s5 + $0x5d8] sm:$0xff] }
 0x35f   :  { %2018 = vmatmul.mubr.f32.vlgmr.msra.gmra.mrb[16].mxu1 %v7241_v15  ;;  %4766 = vmatpush1.bf16.msra.mxu0 %v6561_v30  ;;  %v3619_v54 = vld [vmem:[%s8077_s5 + $0x5f8] sm:$0xff] }
 0x360   :  { %4823 = vmatpush1.bf16.msra.mxu1 %v4822_v1  ;;  %4767 = vmatprep.subr.bf16.mxu0 %v5400_v39  ;;  %v3590_v1 = vld [vmem:[%s8077_s5 + $0x510] sm:$0xff]  ;;  %v4848_v6 = vpack.c.bf16 %v3619_v54, %v3615_v59 }
 0x361   :  { %4825 = vmatprep.subr.bf16.mxu1 %v4824_v24  ;;  %2088 = vmatprep.mubr.f32.mxu1 %v5401_v4  ;;  %v3594_v24 = vld [vmem:[%s8077_s5 + $0x530] sm:$0xff] }
 0x362   :  { %v4838_v27 = vpack.c.bf16 %v3594_v24, %v3590_v1  ;;  %v1709_v24 = vmul.f32 %v7091_v51, %v6862_v48  ;;  %v3624_v48 = vld [vmem:[%s8077_s5 + $0x608] sm:$0xff] }
 0x363   :  { %4769 = vmatpush1.bf16.msra.mxu0 %v6589_v40  ;;  %v3628_v51 = vld [vmem:[%s8077_s5 + $0x628] sm:$0xff] }
 0x364   :  { %4827 = vmatpush1.bf16.msra.mxu1 %v4826_v9  ;;  %4770 = vmatprep.subr.bf16.mxu0 %v5400_v39  ;;  %v3598_v9 = vld [vmem:[%s8077_s5 + $0x550] sm:$0xff]  ;;  %v4976_v26 = vpack.c.bf16 %v3628_v51, %v3624_v48 }
 0x365   :  { %4829 = vmatprep.subr.bf16.mxu1 %v4828_v36  ;;  %v3602_v36 = vld [vmem:[%s8077_s5 + $0x570] sm:$0xff] }
 0x366   :  { %v4842_v43 = vpack.c.bf16 %v3602_v36, %v3598_v9 }
 0x367   :  { %4772 = vmatpush1.bf16.msra.mxu0 %v6617_v50 }
 0x368   :  { %4831 = vmatpush1.bf16.msra.mxu1 %v4830_v19  ;;  %4773 = vmatprep.subr.bf16.mxu0 %v5400_v39  ;;  %v3606_v19 = vld [vmem:[%s8077_s5 + $0x590] sm:$0xff] }
 0x369   :  { %4833 = vmatprep.subr.bf16.mxu1 %v4832_v31  ;;  %v3610_v31 = vld [vmem:[%s8077_s5 + $0x5b0] sm:$0xff] }
 0x36a   :  { %v4846_v62 = vpack.c.bf16 %v3610_v31, %v3606_v19  ;;  %v3620_v19 = vld [vmem:[%s8078_s6 + $0x8] sm:$0xf] }
 0x36b   :  { %4775 = vmatpush1.bf16.msra.mxu0 %v6645_v60  ;;  %v1936_v31 = vrot.slane %v3620_v19, %v6475_v0  ;;  %v1940_v59 = vrot.slane %v3620_v19, %v6741_v57 }
 0x36c   :  { %4835 = vmatpush1.bf16.msra.mxu1 %v4834_v14  ;;  %4776 = vmatprep.subr.bf16.mxu0 %v5400_v39  ;;  %v3614_v14 = vld [vmem:[%s8077_s5 + $0x5d0] sm:$0xff] }
 0x36d   :  { %4837 = vmatprep.subr.bf16.mxu1 %v4836_v7  ;;  %v3618_v7 = vld [vmem:[%s8077_s5 + $0x5f0] sm:$0xff] }
 0x36e   :  { %v4850_v1 = vpack.c.bf16 %v3618_v7, %v3614_v14 }
 0x36f   :  { %4778 = vmatpush1.bf16.msra.mxu0 %v6667_v41 }
 0x370   :  { %4839 = vmatpush1.bf16.msra.mxu1 %v4838_v27  ;;  %4779 = vmatprep.subr.bf16.mxu0 %v5400_v39 }
 0x371   :  { %4841 = vmatprep.subr.bf16.mxu1 %v4840_v29 }
 0x373   :  { %4781 = vmatpush1.bf16.msra.mxu0 %v6685_v18 }
 0x374   :  { %4843 = vmatpush1.bf16.msra.mxu1 %v4842_v43  ;;  %4782 = vmatprep.subr.bf16.mxu0 %v5400_v39 }
 0x375   :  { %4845 = vmatprep.subr.bf16.mxu1 %v4844_v20 }
 0x377   :  { %4784 = vmatpush1.bf16.msra.mxu0 %v6696_v22 }
 0x378   :  { %4847 = vmatpush1.bf16.msra.mxu1 %v4846_v62  ;;  %4785 = vmatprep.subr.bf16.mxu0 %v5400_v39 }
 0x379   :  { %4849 = vmatprep.subr.bf16.mxu1 %v4848_v6 }
 0x37b   :  { %4787 = vmatpush1.bf16.msra.mxu0 %v6725_v46 }
 0x37c   :  { %4851 = vmatpush1.bf16.msra.mxu1 %v4850_v1  ;;  %4853 = vmatprep.subr.bf16.mxu0 %v6469_v61 }
 0x37d   :  { %4884 = vmatprep.subr.bf16.mxu1 %v5400_v39 }
 0x37e   :  { %1849 = vmatmul.mubr.f32.vlgmr.msra.gmra.mrb[14].mxu0 %v1709_v24 }
 0x37f   :  { %2089 = vmatmul.mubr.f32.vlgmr.msra.gmra.mrb[18].mxu1 %v7241_v15  ;;  %4855 = vmatpush3.bf16.msra.mxu0 %v6507_v12 }
 0x380   :  { %4857 = vmatprep.subr.bf16.mxu0 %v6516_v16  ;;  %4886 = vmatpush1.bf16.msra.mxu1 %v6502_v10 }
 0x381   :  { %4887 = vmatprep.subr.bf16.mxu1 %v5400_v39 }
 0x383   :  { %4859 = vmatpush3.bf16.msra.mxu0 %v6539_v23 }
 0x384   :  { %4861 = vmatprep.subr.bf16.mxu0 %v6546_v25  ;;  %4889 = vmatpush1.bf16.msra.mxu1 %v6533_v21 }
 0x385   :  { %4890 = vmatprep.subr.bf16.mxu1 %v5400_v39 }
 0x387   :  { %4863 = vmatpush3.bf16.msra.mxu0 %v6567_v32 }
 0x388   :  { %4865 = vmatprep.subr.bf16.mxu0 %v6574_v34  ;;  %4892 = vmatpush1.bf16.msra.mxu1 %v6561_v30 }
 0x389   :  { %4893 = vmatprep.subr.bf16.mxu1 %v5400_v39 }
 0x38b   :  { %4867 = vmatpush3.bf16.msra.mxu0 %v6595_v44 }
 0x38c   :  { %4869 = vmatprep.subr.bf16.mxu0 %v6602_v47  ;;  %4895 = vmatpush1.bf16.msra.mxu1 %v6589_v40 }
 0x38d   :  { %4896 = vmatprep.subr.bf16.mxu1 %v5400_v39 }
 0x38f   :  { %4871 = vmatpush3.bf16.msra.mxu0 %v6623_v53 }
 0x390   :  { %4873 = vmatprep.subr.bf16.mxu0 %v6630_v55  ;;  %4898 = vmatpush1.bf16.msra.mxu1 %v6617_v50 }
 0x391   :  { %4899 = vmatprep.subr.bf16.mxu1 %v5400_v39 }
 0x393   :  { %4875 = vmatpush3.bf16.msra.mxu0 %v6651_v2 }
 0x394   :  { %4877 = vmatprep.subr.bf16.mxu0 %v6658_v5  ;;  %4901 = vmatpush1.bf16.msra.mxu1 %v6645_v60 }
 0x395   :  { %4902 = vmatprep.subr.bf16.mxu1 %v5400_v39 }
 0x397   :  { %4879 = vmatpush3.bf16.msra.mxu0 %v6670_v8 }
 0x398   :  { %4881 = vmatprep.subr.bf16.mxu0 %v6708_v33  ;;  %4904 = vmatpush1.bf16.msra.mxu1 %v6667_v41 }
 0x399   :  { %4905 = vmatprep.subr.bf16.mxu1 %v5400_v39 }
 0x39b   :  { %4883 = vmatpush3.bf16.msra.mxu0 %v6719_v38 }
 0x39c   :  { %4915 = vmatprep.subr.bf16.mxu0 %v6469_v61  ;;  %4907 = vmatpush1.bf16.msra.mxu1 %v6685_v18 }
 0x39d   :  { %4908 = vmatprep.subr.bf16.mxu1 %v5400_v39 }
 0x3a0   :  { %4910 = vmatpush1.bf16.msra.mxu1 %v6696_v22 }
 0x3a1   :  { %4911 = vmatprep.subr.bf16.mxu1 %v5400_v39 }
 0x3a4   :  { %4913 = vmatpush1.bf16.msra.mxu1 %v6725_v46 }
 0x3a5   :  { %4977 = vmatprep.subr.bf16.mxu1 %v4976_v26 }
 0x409   :  { %v3894_v35 = vpop.f32.mrb[10].mxu0 }
 0x40a   :  { %v3895_v27 = vpop.f32.mrb[11].mxu0 }
 0x40b   :  { %v3896_v29 = vadd.f32 %v3895_v27, %v3894_v35 }
 0x411   :  { %v1703_v9 = vpop.f32.mrb[14].mxu1 }
 0x412   :  { %v1704_v36 = vadd.f32 %v3896_v29, %v1703_v9  ;;  %v1705_v42 = vpop.f32.mrb[15].mxu1 }
 0x414   :  { %v1854_v29 = vmul.f32 %v1704_v36, %v1704_v36  ;;  %v7425_v36 = vld [vmem:[%s8072_s0 + $0x18] sm:$0xff] }
 0x429   :  { %v3929_v45 = vpop.f32.mrb[12].mxu0 }
 0x42a   :  { %v3930_v43 = vpop.f32.mrb[13].mxu0 }
 0x42b   :  { %v3931_v20 = vadd.f32 %v3930_v43, %v3929_v45  ;;  %v3623_v45 = vld [vmem:[%s8077_s5 + $0x600] sm:$0xff] }
 0x42c   :  { %v3627_v43 = vld [vmem:[%s8077_s5 + $0x620] sm:$0xff] }
 0x432   :  { %v2019_v54 = vpop.f32.mrb[16].mxu1 }
 0x433   :  { %v2020_v62 = vadd.f32 %v2019_v54, %v1936_v31  ;;  %v2021_v6 = vpop.f32.mrb[17].mxu1 }
 0x434   :  { %v2022_v14 = vadd.f32 %v2021_v6, %v1940_v59  ;;  %v7431_v59 = vld [vmem:[%s8073_s1 + $0x18] sm:$0xff] }
 0x435   :  { %v2095_v1 = vmul.f32 %v6777_v37, %v2020_v62 }
 0x436   :  { %v2096_v7 = vmul.f32 %v6760_v28, %v2022_v14  ;;  %v2243_v24 = vmul.f32 %v2022_v14, %v6755_v63  ;;  %v1944_v63 = vrot.slane %v3620_v19, %v6738_v56  ;;  %v1948_v28 = vrot.slane %v3620_v19, %v6744_v58  ;;  %v3636_v19 = vld [vmem:[%s8077_s5 + $0x668] sm:$0xff] }
 0x437   :  { %v2242_v14 = vmul.f32 %v2020_v62, %v6829_v3  ;;  %v3640_v3 = vld [vmem:[%s8077_s5 + $0x688] sm:$0xff] }
 0x438   :  { %2166 = vmatprep.mubr.f32.mxu0 %v2096_v7 }
 0x439   :  { %2167 = vmatmul.mubr.f32.vlgmr.msra.gmra.mrb[16].mxu0 %v2095_v1  ;;  %v4978_v1 = vpack.c.bf16 %v3627_v43, %v3623_v45  ;;  %v3651_v45 = vld [vmem:[%s8077_s5 + $0x6e0] sm:$0xff]  ;;  %v3656_v43 = vld [vmem:[%s8077_s5 + $0x708] sm:$0xff] }
 0x43a   :  { %4917 = vmatpush3.bf16.msra.mxu0 %v6507_v12  ;;  %2313 = vmatprep.mubr.f32.mxu0 %v2243_v24 }
 0x43b   :  { %4919 = vmatprep.subr.bf16.mxu0 %v6516_v16 }
 0x43e   :  { %4921 = vmatpush3.bf16.msra.mxu0 %v6539_v23 }
 0x43f   :  { %4923 = vmatprep.subr.bf16.mxu0 %v6546_v25 }
 0x442   :  { %4925 = vmatpush3.bf16.msra.mxu0 %v6567_v32 }
 0x443   :  { %4927 = vmatprep.subr.bf16.mxu0 %v6574_v34 }
 0x446   :  { %4929 = vmatpush3.bf16.msra.mxu0 %v6595_v44 }
 0x447   :  { %4931 = vmatprep.subr.bf16.mxu0 %v6602_v47 }
 0x44a   :  { %4933 = vmatpush3.bf16.msra.mxu0 %v6623_v53 }
 0x44b   :  { %4935 = vmatprep.subr.bf16.mxu0 %v6630_v55 }
 0x44e   :  { %4937 = vmatpush3.bf16.msra.mxu0 %v6651_v2 }
 0x44f   :  { %4939 = vmatprep.subr.bf16.mxu0 %v6658_v5 }
 0x451   :  { %v1850_v37 = vpop.f32.mrb[14].mxu0 }
 0x452   :  { %4941 = vmatpush3.bf16.msra.mxu0 %v6670_v8  ;;  %v1851_v48 = vadd.f32 %v3931_v20, %v1850_v37  ;;  %v2090_v51 = vpop.f32.mrb[18].mxu1  ;;  %v1852_v26 = vpop.f32.mrb[15].mxu0  ;;  %v3632_v20 = vld [vmem:[%s8077_s5 + $0x648] sm:$0xff] }
 0x453   :  { %v7407_v35 = vadd.f32 %v2090_v51, %v1944_v63  ;;  %v2092_v27 = vpop.f32.mrb[19].mxu1  ;;  %4943 = vmatprep.subr.bf16.mxu0 %v6708_v33  ;;  %v4980_v24 = vpack.c.bf16 %v3636_v19, %v3632_v20  ;;  %v3631_v63 = vld [vmem:[%s8077_s5 + $0x640] sm:$0xff]  ;;  %v3648_v26 = vld [vmem:[%s8077_s5 + $0x6c8] sm:$0xff] }
 0x454   :  { %v1855_v9 = vmul.f32 %v1851_v48, %v1851_v48  ;;  %v2093_v42 = vadd.f32 %v2092_v27, %v1948_v28  ;;  %v3635_v28 = vld [vmem:[%s8077_s5 + $0x660] sm:$0xff]  ;;  %v3652_v27 = vld [vmem:[%s8077_s5 + $0x6e8] sm:$0xff] }
 0x455   :  { %v2097_v7 = vmul.f32 %v7114_v11, %v7407_v35  ;;  %v3644_v11 = vld [vmem:[%s8077_s5 + $0x6a8] sm:$0xff]  ;;  %v4982_v62 = vpack.c.bf16 %v3635_v28, %v3631_v63  ;;  %v3639_v48 = vld [vmem:[%s8077_s5 + $0x680] sm:$0xff] }
 0x456   :  { %v2098_v31 = vmul.f32 %v7425_v36, %v2093_v42  ;;  %v2245_v54 = vmul.f32 %v7431_v59, %v2093_v42  ;;  %4945 = vmatpush3.bf16.msra.mxu0 %v6719_v38  ;;  %v1856_v6 = vadd.f32 %v1855_v9, %v1854_v29  ;;  %v4984_v37 = vpack.c.bf16 %v3644_v11, %v3640_v3  ;;  %v3643_v51 = vld [vmem:[%s8077_s5 + $0x6a0] sm:$0xff]  ;;  %v3660_v20 = vld [vmem:[%s8077_s5 + $0x728] sm:$0xff] }
 0x457   :  { %4946 = vmatprep.subr.bf16.mxu0 %v5400_v39  ;;  %v4986_v29 = vpack.c.bf16 %v3643_v51, %v3639_v48  ;;  %v4988_v9 = vpack.c.bf16 %v3652_v27, %v3648_v26  ;;  %v3647_v42 = vld [vmem:[%s8077_s5 + $0x6c0] sm:$0xff]  ;;  %v3672_v3 = vld [vmem:[%s8077_s5 + $0x788] sm:$0xff] }
 0x458   :  { %3621 = vmatprep.mubr.msk.f32.mxu1 %vm374_vm0, %v2098_v31  ;;  %1857 = vadd.xlane.f32.xlu0 %v1856_v6  ;;  %v4990_v19 = vpack.c.bf16 %v3651_v45, %v3647_v42  ;;  %v4992_v31 = vpack.c.bf16 %v3660_v20, %v3656_v43  ;;  %v3659_v6 = vld [vmem:[%s8077_s5 + $0x720] sm:$0xff]  ;;  %v3676_v11 = vld [vmem:[%s8077_s5 + $0x7a8] sm:$0xff]  ;;  %v3626_v43 = vld [vmem:[%s8077_s5 + $0x618] sm:$0xff] }
 0x459   :  { %2314 = vmatmul.mubr.f32.vlgmr.msra.gmra.mrb[18].mxu0 %v2242_v14  ;;  %2237 = vmatmul.mubr.f32.vlgmr.msra.gmra.mrb[20].mxu1 %v2097_v7  ;;  %v3664_v14 = vld [vmem:[%s8077_s5 + $0x748] sm:$0xff]  ;;  %v3663_v63 = vld [vmem:[%s8077_s5 + $0x740] sm:$0xff]  ;;  %v3630_v20 = vld [vmem:[%s8077_s5 + $0x638] sm:$0xff] }
 0x45a   :  { %4948 = vmatpush1.bf16.msra.mxu0 %v6502_v10  ;;  %3622 = vmatprep.mubr.msk.f32.mxu0 %vm374_vm0, %v2245_v54  ;;  %v3655_v54 = vld [vmem:[%s8077_s5 + $0x700] sm:$0xff]  ;;  %v3668_v7 = vld [vmem:[%s8077_s5 + $0x768] sm:$0xff] }
 0x45b   :  { %4979 = vmatpush1.bf16.msra.mxu1 %v4978_v1  ;;  %4949 = vmatprep.subr.bf16.mxu0 %v5400_v39  ;;  %v4994_v1 = vpack.c.bf16 %v3659_v6, %v3655_v54  ;;  %v3667_v28 = vld [vmem:[%s8077_s5 + $0x760] sm:$0xff]  ;;  %v3680_v26 = vld [vmem:[%s8077_s5 + $0x7c8] sm:$0xff]  ;;  %v5008_v6 = vpack.c.bf16 %v3630_v20, %v3626_v43 }
 0x45c   :  { %4981 = vmatprep.subr.bf16.mxu1 %v4980_v24  ;;  %2552 = vmatprep.mubr.f32.mxu1 %v5401_v4  ;;  %v4996_v24 = vpack.c.bf16 %v3668_v7, %v3664_v14  ;;  %v3671_v48 = vld [vmem:[%s8077_s5 + $0x780] sm:$0xff]  ;;  %v3684_v27 = vld [vmem:[%s8077_s5 + $0x7e8] sm:$0xff]  ;;  %v3625_v14 = vld [vmem:[%s8077_s5 + $0x610] sm:$0xff] }
 0x45d   :  { %v3675_v51 = vld [vmem:[%s8077_s5 + $0x7a0] sm:$0xff]  ;;  %v3629_v7 = vld [vmem:[%s8077_s5 + $0x630] sm:$0xff] }
 0x45e   :  { %4951 = vmatpush1.bf16.msra.mxu0 %v6533_v21  ;;  %v3679_v42 = vld [vmem:[%s8077_s5 + $0x7c0] sm:$0xff] }
 0x45f   :  { %4983 = vmatpush1.bf16.msra.mxu1 %v4982_v62  ;;  %4952 = vmatprep.subr.bf16.mxu0 %v5400_v39  ;;  %v4998_v62 = vpack.c.bf16 %v3667_v28, %v3663_v63  ;;  %v3683_v45 = vld [vmem:[%s8077_s5 + $0x7e0] sm:$0xff]  ;;  %v5010_v63 = vpack.c.bf16 %v3629_v7, %v3625_v14  ;;  %v3657_v7 = vld [vmem:[%s8077_s5 + $0x710] sm:$0xff] }
 0x460   :  { %4985 = vmatprep.subr.bf16.mxu1 %v4984_v37  ;;  %v5000_v37 = vpack.c.bf16 %v3676_v11, %v3672_v3  ;;  %v3633_v11 = vld [vmem:[%s8077_s5 + $0x650] sm:$0xff] }
 0x462   :  { %4954 = vmatpush1.bf16.msra.mxu0 %v6561_v30 }
 0x463   :  { %4987 = vmatpush1.bf16.msra.mxu1 %v4986_v29  ;;  %4955 = vmatprep.subr.bf16.mxu0 %v5400_v39  ;;  %v5002_v29 = vpack.c.bf16 %v3675_v51, %v3671_v48  ;;  %v3646_v48 = vld [vmem:[%s8077_s5 + $0x6b8] sm:$0xff] }
 0x464   :  { %4989 = vmatprep.subr.bf16.mxu1 %v4988_v9  ;;  %v5004_v9 = vpack.c.bf16 %v3684_v27, %v3680_v26  ;;  %v3641_v26 = vld [vmem:[%s8077_s5 + $0x690] sm:$0xff] }
 0x465   :  { %v3645_v27 = vld [vmem:[%s8077_s5 + $0x6b0] sm:$0xff] }
 0x466   :  { %4957 = vmatpush1.bf16.msra.mxu0 %v6589_v40  ;;  %v5018_v43 = vpack.c.bf16 %v3645_v27, %v3641_v26  ;;  %v3673_v27 = vld [vmem:[%s8077_s5 + $0x790] sm:$0xff] }
 0x467   :  { %4991 = vmatpush1.bf16.msra.mxu1 %v4990_v19  ;;  %4958 = vmatprep.subr.bf16.mxu0 %v5400_v39  ;;  %v5006_v19 = vpack.c.bf16 %v3683_v45, %v3679_v42  ;;  %v7593_v42 = vld [vmem:[%s8073_s1 + $0x10] sm:$0xff] }
 0x468   :  { %4993 = vmatprep.subr.bf16.mxu1 %v4992_v31  ;;  %v5369_v31 = vld [vmem:[%s8076_s4] sm:$0x1f]  ;;  %v2244_v45 = vmul.f32 %v7593_v42, %v7407_v35  ;;  %v3662_v35 = vld [vmem:[%s8077_s5 + $0x738] sm:$0xff] }
 0x469   :  { %v364_v54 = vrot.slane %v5369_v31, %v6744_v58  ;;  %v3653_v31 = vld [vmem:[%s8077_s5 + $0x6f0] sm:$0xff] }
 0x46a   :  { %4960 = vmatpush1.bf16.msra.mxu0 %v6617_v50 }
 0x46b   :  { %4995 = vmatpush1.bf16.msra.mxu1 %v4994_v1  ;;  %4961 = vmatprep.subr.bf16.mxu0 %v5400_v39  ;;  %v3634_v1 = vld [vmem:[%s8077_s5 + $0x658] sm:$0xff]  ;;  %v7559_v28 = vadd.f32 %v6682_v17, %v364_v54 }
 0x46c   :  { %4997 = vmatprep.subr.bf16.mxu1 %v4996_v24  ;;  %v3638_v24 = vld [vmem:[%s8077_s5 + $0x678] sm:$0xff] }
 0x46d   :  { %v5012_v3 = vpack.c.bf16 %v3638_v24, %v3634_v1  ;;  %v3658_v54 = vld [vmem:[%s8077_s5 + $0x718] sm:$0xff]  ;;  %v3661_v1 = vld [vmem:[%s8077_s5 + $0x730] sm:$0xff] }
 0x46e   :  { %4963 = vmatpush1.bf16.msra.mxu0 %v6645_v60  ;;  %v5024_v14 = vpack.c.bf16 %v3662_v35, %v3658_v54  ;;  %v3666_v24 = vld [vmem:[%s8077_s5 + $0x758] sm:$0xff]  ;;  %v3691_v35 = vld [vmem:[%s8077_s5 + $0x808] sm:$0xff] }
 0x46f   :  { %4999 = vmatpush1.bf16.msra.mxu1 %v4998_v62  ;;  %4964 = vmatprep.subr.bf16.mxu0 %v5400_v39  ;;  %v3637_v62 = vld [vmem:[%s8077_s5 + $0x670] sm:$0xff] }
 0x470   :  { %5001 = vmatprep.subr.bf16.mxu1 %v5000_v37  ;;  %v3642_v37 = vld [vmem:[%s8077_s5 + $0x698] sm:$0xff]  ;;  %v5014_v17 = vpack.c.bf16 %v3637_v62, %v3633_v11  ;;  %v3665_v62 = vld [vmem:[%s8077_s5 + $0x750] sm:$0xff] }
 0x471   :  { %v5016_v51 = vpack.c.bf16 %v3646_v48, %v3642_v37  ;;  %v3669_v37 = vld [vmem:[%s8077_s5 + $0x770] sm:$0xff]  ;;  %v3674_v48 = vld [vmem:[%s8077_s5 + $0x798] sm:$0xff] }
 0x472   :  { %4966 = vmatpush1.bf16.msra.mxu0 %v6667_v41 }
 0x473   :  { %5003 = vmatpush1.bf16.msra.mxu1 %v5002_v29  ;;  %4967 = vmatprep.subr.bf16.mxu0 %v5400_v39  ;;  %v3650_v29 = vld [vmem:[%s8077_s5 + $0x6d8] sm:$0xff] }
 0x474   :  { %5005 = vmatprep.subr.bf16.mxu1 %v5004_v9  ;;  %v3654_v9 = vld [vmem:[%s8077_s5 + $0x6f8] sm:$0xff] }
 0x475   :  { %v5020_v20 = vpack.c.bf16 %v3654_v9, %v3650_v29  ;;  %v3677_v29 = vld [vmem:[%s8077_s5 + $0x7b0] sm:$0xff]  ;;  %v3682_v9 = vld [vmem:[%s8077_s5 + $0x7d8] sm:$0xff] }
 0x476   :  { %4969 = vmatpush1.bf16.msra.mxu0 %v6685_v18 }
 0x477   :  { %5007 = vmatpush1.bf16.msra.mxu1 %v5006_v19  ;;  %4970 = vmatprep.subr.bf16.mxu0 %v5400_v39  ;;  %v3649_v19 = vld [vmem:[%s8077_s5 + $0x6d0] sm:$0xff] }
 0x478   :  { %5009 = vmatprep.subr.bf16.mxu1 %v5008_v6  ;;  %v5022_v6 = vpack.c.bf16 %v3653_v31, %v3649_v19  ;;  %v3681_v19 = vld [vmem:[%s8077_s5 + $0x7d0] sm:$0xff] }
 0x479   :  { %v3685_v31 = vld [vmem:[%s8077_s5 + $0x7f0] sm:$0xff] }
 0x47a   :  { %2553 = vmatmul.mubr.f32.vlgmr.msra.gmra.mrb[22].mxu1 %v7559_v28  ;;  %4972 = vmatpush1.bf16.msra.mxu0 %v6696_v22  ;;  %v5038_v54 = vpack.c.bf16 %v3685_v31, %v3681_v19  ;;  %v7709_v19 = vld [vmem:[%s8072_s0] sm:$0xff] }
 0x47b   :  { %5011 = vmatpush1.bf16.msra.mxu1 %v5010_v63  ;;  %4973 = vmatprep.subr.bf16.mxu0 %v5400_v39  ;;  %v3670_v63 = vld [vmem:[%s8077_s5 + $0x778] sm:$0xff] }
 0x47c   :  { %5013 = vmatprep.subr.bf16.mxu1 %v5012_v3  ;;  %2623 = vmatprep.mubr.f32.mxu1 %v5401_v4  ;;  %v5026_v3 = vpack.c.bf16 %v3661_v1, %v3657_v7  ;;  %v5028_v11 = vpack.c.bf16 %v3670_v63, %v3666_v24 }
 0x47e   :  { %4975 = vmatpush1.bf16.msra.mxu0 %v6725_v46 }
 0x47f   :  { %5015 = vmatpush1.bf16.msra.mxu1 %v5014_v17  ;;  %5041 = vmatprep.subr.bf16.mxu0 %v6469_v61  ;;  %v3678_v17 = vld [vmem:[%s8077_s5 + $0x7b8] sm:$0xff] }
 0x480   :  { %5017 = vmatprep.subr.bf16.mxu1 %v5016_v51  ;;  %v5030_v51 = vpack.c.bf16 %v3669_v37, %v3665_v62  ;;  %v5032_v26 = vpack.c.bf16 %v3678_v17, %v3674_v48  ;;  %v3687_v17 = vld [vmem:[%s8078_s6 + $0xc] sm:$0xf] }
 0x481   :  { %2384 = vmatmul.mubr.f32.vlgmr.msra.gmra.mrb[20].mxu0 %v2244_v45  ;;  %v3686_v45 = vld [vmem:[%s8077_s5 + $0x7f8] sm:$0xff] }
 0x482   :  { %5043 = vmatpush3.bf16.msra.mxu0 %v6507_v12 }
 0x483   :  { %5019 = vmatpush1.bf16.msra.mxu1 %v5018_v43  ;;  %5045 = vmatprep.subr.bf16.mxu0 %v6516_v16  ;;  %v5034_v43 = vpack.c.bf16 %v3677_v29, %v3673_v27 }
 0x484   :  { %5021 = vmatprep.subr.bf16.mxu1 %v5020_v20  ;;  %v5036_v20 = vpack.c.bf16 %v3686_v45, %v3682_v9 }
 0x486   :  { %5047 = vmatpush3.bf16.msra.mxu0 %v6539_v23 }
 0x487   :  { %5023 = vmatpush1.bf16.msra.mxu1 %v5022_v6  ;;  %5049 = vmatprep.subr.bf16.mxu0 %v6546_v25  ;;  %v3695_v6 = vld [vmem:[%s8077_s5 + $0x828] sm:$0xff] }
 0x488   :  { %5025 = vmatprep.subr.bf16.mxu1 %v5024_v14  ;;  %v5164_v14 = vpack.c.bf16 %v3695_v6, %v3691_v35 }
 0x48a   :  { %5051 = vmatpush3.bf16.msra.mxu0 %v6567_v32 }
 0x48b   :  { %5027 = vmatpush1.bf16.msra.mxu1 %v5026_v3  ;;  %5053 = vmatprep.subr.bf16.mxu0 %v6574_v34 }
 0x48c   :  { %5029 = vmatprep.subr.bf16.mxu1 %v5028_v11 }
 0x48e   :  { %5055 = vmatpush3.bf16.msra.mxu0 %v6595_v44 }
 0x48f   :  { %5031 = vmatpush1.bf16.msra.mxu1 %v5030_v51  ;;  %5057 = vmatprep.subr.bf16.mxu0 %v6602_v47  ;;  %v2471_v51 = vrot.slane %v3687_v17, %v6475_v0 }
 0x490   :  { %5033 = vmatprep.subr.bf16.mxu1 %v5032_v26  ;;  %v2475_v26 = vrot.slane %v3687_v17, %v6741_v57 }
 0x492   :  { %5059 = vmatpush3.bf16.msra.mxu0 %v6623_v53 }
 0x493   :  { %5035 = vmatpush1.bf16.msra.mxu1 %v5034_v43  ;;  %5061 = vmatprep.subr.bf16.mxu0 %v6630_v55  ;;  %v7703_v43 = vld [vmem:[%s8072_s0 + $0x8] sm:$0xff] }
 0x494   :  { %5037 = vmatprep.subr.bf16.mxu1 %v5036_v20 }
 0x496   :  { %5063 = vmatpush3.bf16.msra.mxu0 %v6651_v2 }
 0x497   :  { %5039 = vmatpush1.bf16.msra.mxu1 %v5038_v54  ;;  %5065 = vmatprep.subr.bf16.mxu0 %v6658_v5  ;;  %v7715_v54 = vld [vmem:[%s8073_s1 + $0x8] sm:$0xff] }
 0x498   :  { %5072 = vmatprep.subr.bf16.mxu1 %v5400_v39 }
 0x49a   :  { %2624 = vmatmul.mubr.f32.vlgmr.msra.gmra.mrb[24].mxu1 %v7559_v28  ;;  %5067 = vmatpush3.bf16.msra.mxu0 %v6670_v8 }
 0x49b   :  { %5074 = vmatpush1.bf16.msra.mxu1 %v6502_v10  ;;  %5069 = vmatprep.subr.bf16.mxu0 %v6708_v33 }
 0x49c   :  { %5075 = vmatprep.subr.bf16.mxu1 %v5400_v39 }
 0x49e   :  { %5071 = vmatpush3.bf16.msra.mxu0 %v6719_v38 }
 0x49f   :  { %5077 = vmatpush1.bf16.msra.mxu1 %v6533_v21  ;;  %5103 = vmatprep.subr.bf16.mxu0 %v6469_v61 }
 0x4a0   :  { %5078 = vmatprep.subr.bf16.mxu1 %v5400_v39 }
 0x4a3   :  { %5080 = vmatpush1.bf16.msra.mxu1 %v6561_v30 }
 0x4a4   :  { %5081 = vmatprep.subr.bf16.mxu1 %v5400_v39 }
 0x4a7   :  { %5083 = vmatpush1.bf16.msra.mxu1 %v6589_v40 }
 0x4a8   :  { %5084 = vmatprep.subr.bf16.mxu1 %v5400_v39 }
 0x4ab   :  { %5086 = vmatpush1.bf16.msra.mxu1 %v6617_v50 }
 0x4ac   :  { %5087 = vmatprep.subr.bf16.mxu1 %v5400_v39 }
 0x4af   :  { %5089 = vmatpush1.bf16.msra.mxu1 %v6645_v60 }
 0x4b0   :  { %5090 = vmatprep.subr.bf16.mxu1 %v5400_v39 }
 0x4b3   :  { %5092 = vmatpush1.bf16.msra.mxu1 %v6667_v41 }
 0x4b4   :  { %5093 = vmatprep.subr.bf16.mxu1 %v5400_v39 }
 0x4b7   :  { %5095 = vmatpush1.bf16.msra.mxu1 %v6685_v18 }
 0x4b8   :  { %5096 = vmatprep.subr.bf16.mxu1 %v5400_v39 }
 0x4bb   :  { %5098 = vmatpush1.bf16.msra.mxu1 %v6696_v22 }
 0x4bc   :  { %5099 = vmatprep.subr.bf16.mxu1 %v5400_v39 }
 0x4bf   :  { %5101 = vmatpush1.bf16.msra.mxu1 %v6725_v46 }
 0x4c0   :  { %5165 = vmatprep.subr.bf16.mxu1 %v5164_v14 }
 0x50c   :  { %v3964_v7 = vpop.f32.mrb[16].mxu0 }
 0x50d   :  { %v3965_v1 = vpop.f32.mrb[17].mxu0 }
 0x50e   :  { %v3966_v24 = vadd.f32 %v3965_v1, %v3964_v7 }
 0x52c   :  { %v3999_v63 = vpop.f32.mrb[18].mxu0  ;;  %v2238_v3 = vpop.f32.mrb[20].mxu1 }
 0x52d   :  { %v2239_v11 = vadd.f32 %v3966_v24, %v2238_v3  ;;  %v4000_v62 = vpop.f32.mrb[19].mxu0  ;;  %v2240_v37 = vpop.f32.mrb[21].mxu1  ;;  %v2479_v3 = vrot.slane %v3687_v17, %v6738_v56 }
 0x52e   :  { %v4001_v48 = vadd.f32 %v4000_v62, %v3999_v63 }
 0x52f   :  { %v2389_v1 = vmul.f32 %v2239_v11, %v2239_v11  ;;  %v2483_v11 = vrot.slane %v3687_v17, %v6744_v58  ;;  %v3699_v17 = vld [vmem:[%s8077_s5 + $0x848] sm:$0xff] }
 0x54d   :  { %v2554_v27 = vpop.f32.mrb[22].mxu1 }
 0x54e   :  { %v2555_v29 = vadd.f32 %v2554_v27, %v2471_v51  ;;  %v2556_v9 = vpop.f32.mrb[23].mxu1  ;;  %v3694_v27 = vld [vmem:[%s8077_s5 + $0x820] sm:$0xff] }
 0x54f   :  { %v2557_v45 = vadd.f32 %v2556_v9, %v2475_v26  ;;  %v3690_v26 = vld [vmem:[%s8077_s5 + $0x800] sm:$0xff]  ;;  %v3703_v9 = vld [vmem:[%s8077_s5 + $0x868] sm:$0xff] }
 0x550   :  { %v2630_v31 = vmul.f32 %v7709_v19, %v2555_v29 }
 0x551   :  { %v2631_v20 = vmul.f32 %v7703_v43, %v2557_v45  ;;  %v2778_v35 = vmul.f32 %v7715_v54, %v2557_v45 }
 0x553   :  { %2701 = vmatprep.mubr.f32.mxu0 %v2631_v20 }
 0x554   :  { %2702 = vmatmul.mubr.f32.vlgmr.msra.gmra.mrb[22].mxu0 %v2630_v31  ;;  %v2385_v6 = vpop.f32.mrb[20].mxu0  ;;  %v7754_v31 = vld [vmem:[%s8073_s1] sm:$0xff] }
 0x555   :  { %5105 = vmatpush3.bf16.msra.mxu0 %v6507_v12  ;;  %v2386_v14 = vadd.f32 %v4001_v48, %v2385_v6  ;;  %2848 = vmatprep.mubr.f32.mxu0 %v2778_v35  ;;  %v2387_v7 = vpop.f32.mrb[21].mxu0  ;;  %v2777_v35 = vmul.f32 %v7754_v31, %v2555_v29  ;;  %v7760_v6 = vld [vmem:[%s8072_s0 + $0x10] sm:$0xff]  ;;  %v3702_v29 = vld [vmem:[%s8077_s5 + $0x860] sm:$0xff] }
 0x556   :  { %5107 = vmatprep.subr.bf16.mxu0 %v6516_v16  ;;  %v5166_v7 = vpack.c.bf16 %v3694_v27, %v3690_v26  ;;  %v3715_v26 = vld [vmem:[%s8077_s5 + $0x8c8] sm:$0xff] }
 0x557   :  { %v2390_v24 = vmul.f32 %v2386_v14, %v2386_v14  ;;  %v3719_v27 = vld [vmem:[%s8077_s5 + $0x8e8] sm:$0xff] }
 0x559   :  { %5109 = vmatpush3.bf16.msra.mxu0 %v6539_v23  ;;  %v2391_v63 = vadd.f32 %v2390_v24, %v2389_v1  ;;  %v5168_v1 = vpack.c.bf16 %v3703_v9, %v3699_v17  ;;  %v3698_v24 = vld [vmem:[%s8077_s5 + $0x840] sm:$0xff]  ;;  %v5176_v9 = vpack.c.bf16 %v3719_v27, %v3715_v26  ;;  %v3739_v26 = vld [vmem:[%s8077_s5 + $0x988] sm:$0xff] }
 0x55a   :  { %5111 = vmatprep.subr.bf16.mxu0 %v6546_v25  ;;  %v3743_v27 = vld [vmem:[%s8077_s5 + $0x9a8] sm:$0xff] }
 0x55b   :  { %2392 = vadd.xlane.f32.xlu1 %v2391_v63  ;;  %v3707_v63 = vld [vmem:[%s8077_s5 + $0x888] sm:$0xff] }
 0x55d   :  { %5113 = vmatpush3.bf16.msra.mxu0 %v6567_v32 }
 0x55e   :  { %5115 = vmatprep.subr.bf16.mxu0 %v6574_v34 }
 0x561   :  { %5117 = vmatpush3.bf16.msra.mxu0 %v6595_v44 }
 0x562   :  { %5119 = vmatprep.subr.bf16.mxu0 %v6602_v47 }
 0x565   :  { %5121 = vmatpush3.bf16.msra.mxu0 %v6623_v53 }
 0x566   :  { %5123 = vmatprep.subr.bf16.mxu0 %v6630_v55 }
 0x569   :  { %5125 = vmatpush3.bf16.msra.mxu0 %v6651_v2 }
 0x56a   :  { %5127 = vmatprep.subr.bf16.mxu0 %v6658_v5 }
 0x56d   :  { %5129 = vmatpush3.bf16.msra.mxu0 %v6670_v8  ;;  %v2625_v62 = vpop.f32.mrb[24].mxu1 }
 0x56e   :  { %v7733_v37 = vadd.f32 %v2625_v62, %v2479_v3  ;;  %v2627_v48 = vpop.f32.mrb[25].mxu1  ;;  %5131 = vmatprep.subr.bf16.mxu0 %v6708_v33  ;;  %v3711_v3 = vld [vmem:[%s8077_s5 + $0x8a8] sm:$0xff] }
 0x56f   :  { %v2628_v51 = vadd.f32 %v2627_v48, %v2483_v11  ;;  %v5170_v11 = vpack.c.bf16 %v3702_v29, %v3698_v24  ;;  %v5172_v62 = vpack.c.bf16 %v3711_v3, %v3707_v63  ;;  %v3706_v48 = vld [vmem:[%s8077_s5 + $0x880] sm:$0xff]  ;;  %v3731_v63 = vld [vmem:[%s8077_s5 + $0x948] sm:$0xff] }
 0x570   :  { %v2632_v14 = vmul.f32 %v7760_v6, %v7733_v37  ;;  %v3722_v24 = vld [vmem:[%s8077_s5 + $0x900] sm:$0xff]  ;;  %v3735_v3 = vld [vmem:[%s8077_s5 + $0x968] sm:$0xff] }
 0x571   :  { %v2633_v45 = vmul.f32 %v7425_v36, %v2628_v51  ;;  %v2780_v20 = vmul.f32 %v7431_v59, %v2628_v51  ;;  %5133 = vmatpush3.bf16.msra.mxu0 %v6719_v38  ;;  %v3710_v51 = vld [vmem:[%s8077_s5 + $0x8a0] sm:$0xff] }
 0x572   :  { %5134 = vmatprep.subr.bf16.mxu0 %v5400_v39  ;;  %v5174_v17 = vpack.c.bf16 %v3710_v51, %v3706_v48  ;;  %v3726_v29 = vld [vmem:[%s8077_s5 + $0x920] sm:$0xff] }
 0x573   :  { %3688 = vmatprep.mubr.msk.f32.mxu1 %vm374_vm0, %v2633_v45  ;;  %v3714_v45 = vld [vmem:[%s8077_s5 + $0x8c0] sm:$0xff] }
 0x574   :  { %2849 = vmatmul.mubr.f32.vlgmr.msra.gmra.mrb[24].mxu0 %v2777_v35  ;;  %2772 = vmatmul.mubr.f32.vlgmr.msra.gmra.mrb[26].mxu1 %v2632_v14  ;;  %v3723_v35 = vld [vmem:[%s8077_s5 + $0x908] sm:$0xff]  ;;  %v3730_v48 = vld [vmem:[%s8077_s5 + $0x940] sm:$0xff] }
 0x575   :  { %5136 = vmatpush1.bf16.msra.mxu0 %v6502_v10  ;;  %3689 = vmatprep.mubr.msk.f32.mxu0 %vm374_vm0, %v2780_v20  ;;  %v3718_v20 = vld [vmem:[%s8077_s5 + $0x8e0] sm:$0xff]  ;;  %v3727_v14 = vld [vmem:[%s8077_s5 + $0x928] sm:$0xff] }
 0x576   :  { %5167 = vmatpush1.bf16.msra.mxu1 %v5166_v7  ;;  %5137 = vmatprep.subr.bf16.mxu0 %v5400_v39  ;;  %v5178_v7 = vpack.c.bf16 %v3718_v20, %v3714_v45  ;;  %v3734_v51 = vld [vmem:[%s8077_s5 + $0x960] sm:$0xff] }
 0x577   :  { %5169 = vmatprep.subr.bf16.mxu1 %v5168_v1  ;;  %3087 = vmatprep.mubr.f32.mxu1 %v5401_v4  ;;  %v5180_v1 = vpack.c.bf16 %v3727_v14, %v3723_v35  ;;  %v3738_v45 = vld [vmem:[%s8077_s5 + $0x980] sm:$0xff]  ;;  %v3747_v35 = vld [vmem:[%s8077_s5 + $0x9c8] sm:$0xff] }
 0x578   :  { %v3742_v20 = vld [vmem:[%s8077_s5 + $0x9a0] sm:$0xff]  ;;  %v3751_v14 = vld [vmem:[%s8077_s5 + $0x9e8] sm:$0xff] }
 0x579   :  { %5139 = vmatpush1.bf16.msra.mxu0 %v6533_v21 }
 0x57a   :  { %5171 = vmatpush1.bf16.msra.mxu1 %v5170_v11  ;;  %5140 = vmatprep.subr.bf16.mxu0 %v5400_v39  ;;  %v5182_v11 = vpack.c.bf16 %v3726_v29, %v3722_v24  ;;  %v3746_v24 = vld [vmem:[%s8077_s5 + $0x9c0] sm:$0xff] }
 0x57b   :  { %5173 = vmatprep.subr.bf16.mxu1 %v5172_v62  ;;  %v5184_v62 = vpack.c.bf16 %v3735_v3, %v3731_v63  ;;  %v3750_v29 = vld [vmem:[%s8077_s5 + $0x9e0] sm:$0xff]  ;;  %v3693_v63 = vld [vmem:[%s8077_s5 + $0x818] sm:$0xff] }
 0x57c   :  { %v3697_v3 = vld [vmem:[%s8077_s5 + $0x838] sm:$0xff] }
 0x57d   :  { %5142 = vmatpush1.bf16.msra.mxu0 %v6561_v30 }
 0x57e   :  { %5175 = vmatpush1.bf16.msra.mxu1 %v5174_v17  ;;  %5143 = vmatprep.subr.bf16.mxu0 %v5400_v39  ;;  %v5186_v17 = vpack.c.bf16 %v3734_v51, %v3730_v48  ;;  %v3692_v48 = vld [vmem:[%s8077_s5 + $0x810] sm:$0xff] }
 0x57f   :  { %5177 = vmatprep.subr.bf16.mxu1 %v5176_v9  ;;  %v5188_v9 = vpack.c.bf16 %v3743_v27, %v3739_v26  ;;  %v3696_v51 = vld [vmem:[%s8077_s5 + $0x830] sm:$0xff]  ;;  %v3701_v26 = vld [vmem:[%s8077_s5 + $0x858] sm:$0xff] }
 0x580   :  { %v3705_v27 = vld [vmem:[%s8077_s5 + $0x878] sm:$0xff] }
 0x581   :  { %5145 = vmatpush1.bf16.msra.mxu0 %v6589_v40 }
 0x582   :  { %5179 = vmatpush1.bf16.msra.mxu1 %v5178_v7  ;;  %5146 = vmatprep.subr.bf16.mxu0 %v5400_v39  ;;  %v5190_v7 = vpack.c.bf16 %v3742_v20, %v3738_v45  ;;  %v3700_v45 = vld [vmem:[%s8077_s5 + $0x850] sm:$0xff] }
 0x583   :  { %5181 = vmatprep.subr.bf16.mxu1 %v5180_v1  ;;  %v5192_v1 = vpack.c.bf16 %v3751_v14, %v3747_v35  ;;  %v3704_v20 = vld [vmem:[%s8077_s5 + $0x870] sm:$0xff]  ;;  %v3709_v35 = vld [vmem:[%s8077_s5 + $0x898] sm:$0xff] }
 0x584   :  { %v3713_v14 = vld [vmem:[%s8077_s5 + $0x8b8] sm:$0xff] }
 0x585   :  { %5148 = vmatpush1.bf16.msra.mxu0 %v6617_v50 }
 0x586   :  { %5183 = vmatpush1.bf16.msra.mxu1 %v5182_v11  ;;  %5149 = vmatprep.subr.bf16.mxu0 %v5400_v39  ;;  %v5194_v11 = vpack.c.bf16 %v3750_v29, %v3746_v24  ;;  %v3708_v24 = vld [vmem:[%s8077_s5 + $0x890] sm:$0xff] }
 0x587   :  { %5185 = vmatprep.subr.bf16.mxu1 %v5184_v62  ;;  %v5196_v62 = vpack.c.bf16 %v3697_v3, %v3693_v63  ;;  %v3712_v29 = vld [vmem:[%s8077_s5 + $0x8b0] sm:$0xff]  ;;  %v3717_v63 = vld [vmem:[%s8077_s5 + $0x8d8] sm:$0xff] }
 0x588   :  { %v3721_v3 = vld [vmem:[%s8077_s5 + $0x8f8] sm:$0xff] }
 0x589   :  { %5151 = vmatpush1.bf16.msra.mxu0 %v6645_v60 }
 0x58a   :  { %5187 = vmatpush1.bf16.msra.mxu1 %v5186_v17  ;;  %5152 = vmatprep.subr.bf16.mxu0 %v5400_v39  ;;  %v5198_v17 = vpack.c.bf16 %v3696_v51, %v3692_v48  ;;  %v5208_v48 = vpack.c.bf16 %v3721_v3, %v3717_v63  ;;  %v3720_v51 = vld [vmem:[%s8077_s5 + $0x8f0] sm:$0xff]  ;;  %v3745_v63 = vld [vmem:[%s8077_s5 + $0x9b8] sm:$0xff] }
 0x58b   :  { %5189 = vmatprep.subr.bf16.mxu1 %v5188_v9  ;;  %v5200_v9 = vpack.c.bf16 %v3705_v27, %v3701_v26  ;;  %v3725_v26 = vld [vmem:[%s8077_s5 + $0x918] sm:$0xff] }
 0x58d   :  { %5154 = vmatpush1.bf16.msra.mxu0 %v6667_v41 }
 0x58e   :  { %5191 = vmatpush1.bf16.msra.mxu1 %v5190_v7  ;;  %5155 = vmatprep.subr.bf16.mxu0 %v5400_v39  ;;  %v5202_v7 = vpack.c.bf16 %v3704_v20, %v3700_v45  ;;  %v3728_v45 = vld [vmem:[%s8077_s5 + $0x930] sm:$0xff]  ;;  %v3733_v20 = vld [vmem:[%s8077_s5 + $0x958] sm:$0xff] }
 0x58f   :  { %5193 = vmatprep.subr.bf16.mxu1 %v5192_v1  ;;  %v5204_v1 = vpack.c.bf16 %v3713_v14, %v3709_v35  ;;  %v3737_v35 = vld [vmem:[%s8077_s5 + $0x978] sm:$0xff] }
 0x591   :  { %5157 = vmatpush1.bf16.msra.mxu0 %v6685_v18 }
 0x592   :  { %5195 = vmatpush1.bf16.msra.mxu1 %v5194_v11  ;;  %5158 = vmatprep.subr.bf16.mxu0 %v5400_v39  ;;  %v2779_v11 = vmul.f32 %v7593_v42, %v7733_v37  ;;  %v3729_v37 = vld [vmem:[%s8077_s5 + $0x938] sm:$0xff] }
 0x593   :  { %5197 = vmatprep.subr.bf16.mxu1 %v5196_v62  ;;  %v5206_v62 = vpack.c.bf16 %v3712_v29, %v3708_v24  ;;  %v3736_v24 = vld [vmem:[%s8077_s5 + $0x970] sm:$0xff]  ;;  %v3741_v29 = vld [vmem:[%s8077_s5 + $0x998] sm:$0xff] }
 0x595   :  { %3088 = vmatmul.mubr.f32.vlgmr.msra.gmra.mrb[28].mxu1 %v6732_v49  ;;  %5160 = vmatpush1.bf16.msra.mxu0 %v6696_v22 }
 0x596   :  { %5199 = vmatpush1.bf16.msra.mxu1 %v5198_v17  ;;  %5161 = vmatprep.subr.bf16.mxu0 %v5400_v39  ;;  %v5212_v17 = vpack.c.bf16 %v3729_v37, %v3725_v26 }
 0x597   :  { %5201 = vmatprep.subr.bf16.mxu1 %v5200_v9  ;;  %3158 = vmatprep.mubr.f32.mxu1 %v5401_v4  ;;  %v3716_v4 = vld [vmem:[%s8077_s5 + $0x8d0] sm:$0xff] }
 0x598   :  { %v5210_v27 = vpack.c.bf16 %v3720_v51, %v3716_v4  ;;  %v3724_v9 = vld [vmem:[%s8077_s5 + $0x910] sm:$0xff]  ;;  %v3749_v4 = vld [vmem:[%s8077_s5 + $0x9d8] sm:$0xff] }
 0x599   :  { %5163 = vmatpush1.bf16.msra.mxu0 %v6725_v46  ;;  %v5214_v14 = vpack.c.bf16 %v3728_v45, %v3724_v9  ;;  %v3753_v51 = vld [vmem:[%s8077_s5 + $0x9f8] sm:$0xff] }
 0x59a   :  { %5203 = vmatpush1.bf16.msra.mxu1 %v5202_v7  ;;  %5229 = vmatprep.subr.bf16.mxu0 %v6469_v61  ;;  %v5216_v7 = vpack.c.bf16 %v3737_v35, %v3733_v20  ;;  %v5224_v37 = vpack.c.bf16 %v3753_v51, %v3749_v4 }
 0x59b   :  { %5205 = vmatprep.subr.bf16.mxu1 %v5204_v1  ;;  %v3732_v1 = vld [vmem:[%s8077_s5 + $0x950] sm:$0xff] }
 0x59c   :  { %2919 = vmatmul.mubr.f32.vlgmr.msra.gmra.mrb[26].mxu0 %v2779_v11  ;;  %v5218_v3 = vpack.c.bf16 %v3736_v24, %v3732_v1  ;;  %v5220_v11 = vpack.c.bf16 %v3745_v63, %v3741_v29  ;;  %v3754_v63 = vld [vmem:[%s8078_s6 + $0x10] sm:$0xf]  ;;  %s5402_s6 = smov [#allocation2]  }
 0x59d   :  { %5231 = vmatpush3.bf16.msra.mxu0 %v6507_v12  ;;  %s3476_s30 = sshll.u32 %s5402_s6, 4  ;;  %s3477_s30 = int_to_ptr.vmem [resolvable:$true] %s3476_s30 }
 0x59e   :  { %5207 = vmatpush1.bf16.msra.mxu1 %v5206_v62  ;;  %5233 = vmatprep.subr.bf16.mxu0 %v6516_v16  ;;  %v3740_v62 = vld [vmem:[%s8077_s5 + $0x990] sm:$0xff]  ;;  %s5376_s8 = scalar_lea.vmem %s3477_s30, 128  ;;  %p5381_p1 = scmp.lt.s32.totalorder %s3477_s30, %s3477_s30 }
 0x59f   :  { %5209 = vmatprep.subr.bf16.mxu1 %v5208_v48  ;;  %v3744_v48 = vld [vmem:[%s8077_s5 + $0x9b0] sm:$0xff]  ;;  %p5377_p0 = scmp.ne.s32.totalorder %s3477_s30, %s5376_s8  ;;  %p5382_p2 = scmp.lt.s32.totalorder %s5376_s8, %s5376_s8 }
 0x5a0   :  { %v5222_v26 = vpack.c.bf16 %v3744_v48, %v3740_v62 }
 0x5a1   :  { %5235 = vmatpush3.bf16.msra.mxu0 %v6539_v23  ;;  %p5383_p3 = por %p5382_p2, %p5381_p1 }
 0x5a2   :  { %5211 = vmatpush1.bf16.msra.mxu1 %v5210_v27  ;;  %5237 = vmatprep.subr.bf16.mxu0 %v6546_v25  ;;  %v3748_v27 = vld [vmem:[%s8077_s5 + $0x9d0] sm:$0xff] }
 0x5a3   :  { %5213 = vmatprep.subr.bf16.mxu1 %v5212_v17  ;;  %v3752_v17 = vld [vmem:[%s8077_s5 + $0x9f0] sm:$0xff]  ;;  %p5384_p4 = pnand %p5383_p3, %p5377_p0 }
 0x5a4   :  { %v5226_v9 = vpack.c.bf16 %v3752_v17, %v3748_v27 }
 0x5a5   :  { %5239 = vmatpush3.bf16.msra.mxu0 %v6567_v32 }
 0x5a6   :  { %5215 = vmatpush1.bf16.msra.mxu1 %v5214_v14  ;;  %5241 = vmatprep.subr.bf16.mxu0 %v6574_v34 }
 0x5a7   :  { %5217 = vmatprep.subr.bf16.mxu1 %v5216_v7 }
 0x5a9   :  { %5243 = vmatpush3.bf16.msra.mxu0 %v6595_v44 }
 0x5aa   :  { %5219 = vmatpush1.bf16.msra.mxu1 %v5218_v3  ;;  %5245 = vmatprep.subr.bf16.mxu0 %v6602_v47  ;;  %v3006_v3 = vrot.slane %v3754_v63, %v6475_v0 }
 0x5ab   :  { %5221 = vmatprep.subr.bf16.mxu1 %v5220_v11  ;;  %v3010_v11 = vrot.slane %v3754_v63, %v6741_v57 }
 0x5ad   :  { %5247 = vmatpush3.bf16.msra.mxu0 %v6623_v53 }
 0x5ae   :  { %5223 = vmatpush1.bf16.msra.mxu1 %v5222_v26  ;;  %5249 = vmatprep.subr.bf16.mxu0 %v6630_v55 }
 0x5af   :  { %5225 = vmatprep.subr.bf16.mxu1 %v5224_v37 }
 0x5b1   :  { %5251 = vmatpush3.bf16.msra.mxu0 %v6651_v2 }
 0x5b2   :  { %5227 = vmatpush1.bf16.msra.mxu1 %v5226_v9  ;;  %5253 = vmatprep.subr.bf16.mxu0 %v6658_v5 }
 0x5b3   :  { %5260 = vmatprep.subr.bf16.mxu1 %v5400_v39 }
 0x5b5   :  { %3159 = vmatmul.mubr.f32.vlgmr.msra.gmra.mrb[30].mxu1 %v6732_v49  ;;  %5255 = vmatpush3.bf16.msra.mxu0 %v6670_v8 }
 0x5b6   :  { %5262 = vmatpush1.bf16.msra.mxu1 %v6502_v10  ;;  %5257 = vmatprep.subr.bf16.mxu0 %v6708_v33 }
 0x5b7   :  { %5263 = vmatprep.subr.bf16.mxu1 %v5400_v39 }
 0x5b9   :  { %5259 = vmatpush3.bf16.msra.mxu0 %v6719_v38 }
 0x5ba   :  { %5265 = vmatpush1.bf16.msra.mxu1 %v6533_v21  ;;  %5291 = vmatprep.subr.bf16.mxu0 %v6469_v61 }
 0x5bb   :  { %5266 = vmatprep.subr.bf16.mxu1 %v5400_v39 }
 0x5be   :  { %5268 = vmatpush1.bf16.msra.mxu1 %v6561_v30 }
 0x5bf   :  { %5269 = vmatprep.subr.bf16.mxu1 %v5400_v39 }
 0x5c2   :  { %5271 = vmatpush1.bf16.msra.mxu1 %v6589_v40 }
 0x5c3   :  { %5272 = vmatprep.subr.bf16.mxu1 %v5400_v39 }
 0x5c6   :  { %5274 = vmatpush1.bf16.msra.mxu1 %v6617_v50 }
 0x5c7   :  { %5275 = vmatprep.subr.bf16.mxu1 %v5400_v39 }
 0x5ca   :  { %5277 = vmatpush1.bf16.msra.mxu1 %v6645_v60 }
 0x5cb   :  { %5278 = vmatprep.subr.bf16.mxu1 %v5400_v39 }
 0x5ce   :  { %5280 = vmatpush1.bf16.msra.mxu1 %v6667_v41 }
 0x5cf   :  { %5281 = vmatprep.subr.bf16.mxu1 %v5400_v39 }
 0x5d2   :  { %5283 = vmatpush1.bf16.msra.mxu1 %v6685_v18 }
 0x5d3   :  { %5284 = vmatprep.subr.bf16.mxu1 %v5400_v39 }
 0x5d6   :  { %5286 = vmatpush1.bf16.msra.mxu1 %v6696_v22 }
 0x5d7   :  { %5287 = vmatprep.subr.bf16.mxu1 %v5400_v39 }
 0x5da   :  { %5289 = vmatpush1.bf16.msra.mxu1 %v6725_v46 }
 0x627   :  { %v4034_v61 = vpop.f32.mrb[22].mxu0 }
 0x628   :  { %v4035_v45 = vpop.f32.mrb[23].mxu0 }
 0x629   :  { %v4036_v20 = vadd.f32 %v4035_v45, %v4034_v61 }
 0x647   :  { %v4069_v35 = vpop.f32.mrb[24].mxu0  ;;  %v2773_v14 = vpop.f32.mrb[26].mxu1 }
 0x648   :  { %v2774_v7 = vadd.f32 %v4036_v20, %v2773_v14  ;;  %v4070_v1 = vpop.f32.mrb[25].mxu0  ;;  %v2775_v24 = vpop.f32.mrb[27].mxu1 }
 0x649   :  { %v4071_v29 = vadd.f32 %v4070_v1, %v4069_v35 }
 0x64a   :  { %v2924_v57 = vmul.f32 %v2774_v7, %v2774_v7 }
 0x668   :  { %v3089_v62 = vpop.f32.mrb[28].mxu1 }
 0x669   :  { %v3090_v48 = vadd.f32 %v3089_v62, %v3006_v3  ;;  %v3091_v4 = vpop.f32.mrb[29].mxu1 }
 0x66a   :  { %v3092_v51 = vadd.f32 %v3091_v4, %v3010_v11 }
 0x66b   :  { %v3165_v37 = vmul.f32 %v7709_v19, %v3090_v48 }
 0x66c   :  { %v3166_v26 = vmul.f32 %v7703_v43, %v3092_v51  ;;  %v3313_v27 = vmul.f32 %v7715_v54, %v3092_v51 }
 0x66e   :  { %3236 = vmatprep.mubr.f32.mxu0 %v3166_v26 }
 0x66f   :  { %3237 = vmatmul.mubr.f32.vlgmr.msra.gmra.mrb[28].mxu0 %v3165_v37  ;;  %v2920_v17 = vpop.f32.mrb[26].mxu0 }
 0x670   :  { %5293 = vmatpush3.bf16.msra.mxu0 %v6507_v12  ;;  %v2921_v9 = vadd.f32 %v4071_v29, %v2920_v17  ;;  %3383 = vmatprep.mubr.f32.mxu0 %v3313_v27  ;;  %v2922_v0 = vpop.f32.mrb[27].mxu0  ;;  %v3014_v12 = vrot.slane %v3754_v63, %v6738_v56 }
 0x671   :  { %5295 = vmatprep.subr.bf16.mxu0 %v6516_v16  ;;  %v3018_v16 = vrot.slane %v3754_v63, %v6744_v58 }
 0x672   :  { %v2925_v61 = vmul.f32 %v2921_v9, %v2921_v9 }
 0x674   :  { %5297 = vmatpush3.bf16.msra.mxu0 %v6539_v23  ;;  %v2926_v45 = vadd.f32 %v2925_v61, %v2924_v57 }
 0x675   :  { %5299 = vmatprep.subr.bf16.mxu0 %v6546_v25 }
 0x676   :  { %2927 = vadd.xlane.f32.xlu1 %v2926_v45 }
 0x678   :  { %5301 = vmatpush3.bf16.msra.mxu0 %v6567_v32 }
 0x679   :  { %5303 = vmatprep.subr.bf16.mxu0 %v6574_v34 }
 0x67c   :  { %5305 = vmatpush3.bf16.msra.mxu0 %v6595_v44 }
 0x67d   :  { %5307 = vmatprep.subr.bf16.mxu0 %v6602_v47 }
 0x680   :  { %5309 = vmatpush3.bf16.msra.mxu0 %v6623_v53  ;;  %v3312_v53 = vmul.f32 %v7754_v31, %v3090_v48 }
 0x681   :  { %5311 = vmatprep.subr.bf16.mxu0 %v6630_v55 }
 0x684   :  { %5313 = vmatpush3.bf16.msra.mxu0 %v6651_v2 }
 0x685   :  { %5315 = vmatprep.subr.bf16.mxu0 %v6658_v5 }
 0x688   :  { %5317 = vmatpush3.bf16.msra.mxu0 %v6670_v8  ;;  %v3160_v23 = vpop.f32.mrb[30].mxu1 }
 0x689   :  { %v3161_v25 = vadd.f32 %v3160_v23, %v3014_v12  ;;  %v3162_v32 = vpop.f32.mrb[31].mxu1  ;;  %5319 = vmatprep.subr.bf16.mxu0 %v6708_v33 }
 0x68a   :  { %v3163_v34 = vadd.f32 %v3162_v32, %v3018_v16 }
 0x68b   :  { %v3167_v55 = vmul.f32 %v7760_v6, %v3161_v25 }
 0x68c   :  { %v3168_v44 = vmul.f32 %v7425_v36, %v3163_v34  ;;  %v3315_v47 = vmul.f32 %v7431_v59, %v3163_v34  ;;  %5321 = vmatpush3.bf16.msra.mxu0 %v6719_v38  ;;  %v2393_v59 = vpop.xlane.xlu1 %2392 }
 0x68d   :  { %5322 = vmatprep.subr.bf16.mxu0 %v5400_v39  ;;  %v2394_v43 = vmul.f32 0.07692308, %v2393_v59 }
 0x68e   :  { %3755 = vmatprep.mubr.msk.f32.mxu1 %vm374_vm0, %v3168_v44 }
 0x68f   :  { %3384 = vmatmul.mubr.f32.vlgmr.msra.gmra.mrb[30].mxu0 %v3312_v53  ;;  %3307 = vmatmul.mubr.f32.vlgmr.msra.gmra.mrb[32].mxu1 %v3167_v55 }
 0x690   :  { %5324 = vmatpush1.bf16.msra.mxu0 %v6502_v10  ;;  %3756 = vmatprep.mubr.msk.f32.mxu0 %vm374_vm0, %v3315_v47  ;;  %v3314_v10 = vmul.f32 %v7593_v42, %v3161_v25 }
 0x691   :  { %5325 = vmatprep.subr.bf16.mxu0 %v5400_v39 }
 0x694   :  { %5327 = vmatpush1.bf16.msra.mxu0 %v6533_v21 }
 0x695   :  { %5328 = vmatprep.subr.bf16.mxu0 %v5400_v39 }
 0x698   :  { %5330 = vmatpush1.bf16.msra.mxu0 %v6561_v30 }
 0x699   :  { %5331 = vmatprep.subr.bf16.mxu0 %v5400_v39 }
 0x69c   :  { %5333 = vmatpush1.bf16.msra.mxu0 %v6589_v40 }
 0x69d   :  { %5334 = vmatprep.subr.bf16.mxu0 %v5400_v39 }
 0x6a0   :  { %5336 = vmatpush1.bf16.msra.mxu0 %v6617_v50 }
 0x6a1   :  { %5337 = vmatprep.subr.bf16.mxu0 %v5400_v39 }
 0x6a4   :  { %5339 = vmatpush1.bf16.msra.mxu0 %v6645_v60 }
 0x6a5   :  { %5340 = vmatprep.subr.bf16.mxu0 %v5400_v39 }
 0x6a8   :  { %5342 = vmatpush1.bf16.msra.mxu0 %v6667_v41 }
 0x6a9   :  { %5343 = vmatprep.subr.bf16.mxu0 %v5400_v39 }
 0x6ac   :  { %5345 = vmatpush1.bf16.msra.mxu0 %v6685_v18 }
 0x6ad   :  { %5346 = vmatprep.subr.bf16.mxu0 %v5400_v39 }
 0x6b0   :  { %5348 = vmatpush1.bf16.msra.mxu0 %v6696_v22 }
 0x6b1   :  { %5349 = vmatprep.subr.bf16.mxu0 %v5400_v39 }
 0x6b4   :  { %5351 = vmatpush1.bf16.msra.mxu0 %v6725_v46  ;;  %v1328_v46 = vpop.xlane.xlu0 %1327 }
 0x6b5   :  { %v1329_v42 = vmul.f32 0.07692308, %v1328_v46 }
 0x6b7   :  { %3454 = vmatmul.mubr.f32.vlgmr.msra.gmra.mrb[32].mxu0 %v3314_v10 }
 0x6b8   :  { %v1858_v58 = vpop.xlane.xlu0 %1857 }
 0x6b9   :  { %v1859_v36 = vmul.f32 0.07692308, %v1858_v58 }
 0x6bb   :  { %vm1860_vm1 = vcmp.gt.f32.partialorder %v1859_v36, %v1329_v42 }
 0x6bc   :  { %v1861_v54 = vsel %vm1860_vm1, %v1859_v36, %v1329_v42  ;;  %v1864_v35 = vsel %vm1860_vm1, %v7024_v52, %v6509_v13 }
 0x6bd   :  { %vm2395_vm2 = vcmp.gt.f32.partialorder %v2394_v43, %v1861_v54 }
 0x6be   :  { %v2396_v6 = vsel %vm2395_vm2, %v2394_v43, %v1861_v54  ;;  %v2399_v7 = vsel %vm2395_vm2, %v7241_v15, %v1864_v35 }
 0x703   :  { %v2928_v19 = vpop.xlane.xlu1 %2927 }
 0x704   :  { %v2929_v31 = vmul.f32 0.07692308, %v2928_v19 }
 0x706   :  { %vm2930_vm3 = vcmp.gt.f32.partialorder %v2929_v31, %v2396_v6 }
 0x707   :  { %v2931_v1 = vsel %vm2930_vm3, %v2929_v31, %v2396_v6  ;;  %v2934_v24 = vsel %vm2930_vm3, %v7559_v28, %v2399_v7 }
 0x742   :  { %v4104_v21 = vpop.f32.mrb[28].mxu0 }
 0x743   :  { %v4105_v30 = vpop.f32.mrb[29].mxu0 }
 0x744   :  { %v4106_v40 = vadd.f32 %v4105_v30, %v4104_v21 }
 0x762   :  { %v4139_v50 = vpop.f32.mrb[30].mxu0  ;;  %v3308_v60 = vpop.f32.mrb[32].mxu1 }
 0x763   :  { %v3309_v2 = vadd.f32 %v4106_v40, %v3308_v60  ;;  %v4140_v5 = vpop.f32.mrb[31].mxu0  ;;  %v3310_v41 = vpop.f32.mrb[33].mxu1 }
 0x764   :  { %v4141_v8 = vadd.f32 %v4140_v5, %v4139_v50 }
 0x765   :  { %v3459_v22 = vmul.f32 %v3309_v2, %v3309_v2 }
 0x78a   :  { %v3455_v18 = vpop.f32.mrb[32].mxu0 }
 0x78b   :  { %v3456_v33 = vadd.f32 %v4141_v8, %v3455_v18  ;;  %v3457_v38 = vpop.f32.mrb[33].mxu0 }
 0x78d   :  { %v3460_v56 = vmul.f32 %v3456_v33, %v3456_v33 }
 0x78f   :  { %v3461_v39 = vadd.f32 %v3460_v56, %v3459_v22 }
 0x791   :  { %3462 = vadd.xlane.f32.xlu0 %v3461_v39 }
 0x81e   :  { %v3463_v20 = vpop.xlane.xlu0 %3462 }
 0x81f   :  { %v3464_v14 = vmul.f32 0.07692308, %v3463_v20 }
 0x821   :  { %vm3465_vm4 = vcmp.gt.f32.partialorder %v3464_v14, %v2931_v1 }
 0x822   :  { %v3468_v29 = vsel %vm3465_vm4, %v6732_v49, %v2934_v24 }
 0x823   :  { %3469 = vst [vmem:[#allocation2] sm:$0xff] %v3468_v29 }
 0x824   :  { %5387 = shalt.err (!%p5384_p4)
}
 0x825   :  { %s5388_s11 = scalar_lea.hbm %s8079_s7, 128 }
 0x826   :  { %p5389_p5 = scmp.ne.s32.totalorder %s8079_s7, %s5388_s11  ;;  %p5392_p6 = scmp.lt.u32.totalorder %s5388_s11, %s8079_s7 }
 0x828   :  { %p5394_p7 = pnand %p5392_p6, %p5389_p5 }
 0x82a   :  { %5397 = shalt.err (!%p5394_p7)
}
 0x82b   :  { %3479 = dma.vmem_to_hbm [thread:$0]  %s3477_s30, 128, %s8079_s7, [#allocation3]  }
 0x82c   :  { %5398 = dma.done.wait [#allocation3], 128  }
 0x82d   :  { %5399 = vsyncadd [#allocation3], 4294967168 }
 0x82e   :  { %3483 = vsyncpa [#allocation3], 1 }

</bundles_post_ra>
